<compile_context>
chip_gen: v6e
topology: v6e:2x2x1
jax: 0.10.0
libtpu: 0.0.40
codegen_flags: <defaults>
</compile_context>

<pallas_src>
import functools

import jax
import jax.numpy as jnp
from jax.experimental import pallas as pl
from jax.experimental.pallas import tpu as pltpu


# ----------------------------------------------------------------------------
# Generation-aware sizing
# ----------------------------------------------------------------------------
def _vmem_capacity_bytes():
    try:
        info = pltpu.get_tpu_info()
        cap = getattr(info, "vmem_capacity_bytes", None)
        if cap:
            return int(cap)
    except Exception:
        pass
    return 64 * 1024 * 1024   # conservative default (v7x per-core VMEM)


_VMEM_CAP = _vmem_capacity_bytes()
VMEM_LIMIT_BYTES = int(min(96 * 1024 * 1024, (_VMEM_CAP * 3) // 4))
_ROW_CAP_LARGE = 2048                                            # Cout >= 512 layers
_ROW_CAP_SMALL = 4096 if _VMEM_CAP >= 96 * 1024 * 1024 else 2048  # Cout < 512 layers
_MAX_POOL_BLOCK_BYTES = (8 if _VMEM_CAP >= 96 * 1024 * 1024 else 4) * 1024 * 1024


# ----------------------------------------------------------------------------
# Pallas kernels
# ----------------------------------------------------------------------------
def _mm_kernel(x_ref, s_ref, t_ref, w_ref, b_ref, o_ref, *stats_refs,
               has_affine, pre_relu, p_total, tile):
    """o = relu?(x * s + t) @ w + b  (1x1 conv / linear layer).

    Optionally emits per-row-tile BatchNorm partial statistics [sum | sum^2] of the f32
    output (lane-dense (1,1,2*Cout) block) so the stored bf16 activation never has to be
    re-read from HBM to compute batch mean/var.
    """
    x = x_ref[...].astype(jnp.float32)           # f32 elementwise prologue (v5e-safe)
    if has_affine:
        x = x * s_ref[...] + t_ref[...]
    if pre_relu:
        x = jnp.maximum(x, 0.0)
    y = jnp.dot(x.astype(jnp.bfloat16), w_ref[...],
                preferred_element_type=jnp.float32)      # bf16 MXU, f32 accumulate
    y = y + b_ref[...]
    o_ref[...] = y.astype(o_ref.dtype)

    if stats_refs:
        stats_ref = stats_refs[0]
        cout = y.shape[1]

        def _stats_block(v):
            ssum = jnp.sum(v, axis=0, keepdims=True)          # (1, Cout)
            ssq = jnp.sum(v * v, axis=0, keepdims=True)       # (1, Cout)
            return jnp.concatenate([ssum, ssq], axis=1)[None]  # (1, 1, 2*Cout)

        if p_total % tile != 0:
            last = pl.num_programs(0) - 1

            @pl.when(pl.program_id(0) == last)
            def _():   # only the ragged final tile pays for the row mask
                rows = pl.program_id(0) * tile + jax.lax.broadcasted_iota(
                    jnp.int32, (tile, cout), 0)
                stats_ref[...] = _stats_block(jnp.where(rows < p_total, y, 0.0))

            @pl.when(pl.program_id(0) != last)
            def _():
                stats_ref[...] = _stats_block(y)
        else:
            stats_ref[...] = _stats_block(y)


def pointwise_conv(x, w, b, scale=None, shift=None, pre_relu=False,
                   with_stats=True, out_dtype=jnp.bfloat16):
    """x: (P, Cin), w: (Cin, Cout), b: (Cout,) -> (P, Cout) in `out_dtype`.

    If with_stats, also returns (num_tiles, 1, 2*Cout) f32 partial [sum | sum^2] of the
    layer output for fused BatchNorm batch statistics.
    """
    P, Cin = x.shape
    Cout = w.shape[1]
    cap = _ROW_CAP_LARGE if Cout >= 512 else _ROW_CAP_SMALL
    tile = P if P <= cap else cap
    num_tiles = pl.cdiv(P, tile)

    has_affine = scale is not None
    if scale is None:
        scale = jnp.ones((Cin,), jnp.float32)
        shift = jnp.zeros((Cin,), jnp.float32)

    out_shape = [jax.ShapeDtypeStruct((P, Cout), out_dtype)]
    out_specs = [pl.BlockSpec((tile, Cout), lambda i: (i, 0))]
    if with_stats:
        out_shape.append(jax.ShapeDtypeStruct((num_tiles, 1, 2 * Cout), jnp.float32))
        out_specs.append(pl.BlockSpec((1, 1, 2 * Cout), lambda i: (i, 0, 0)))

    res = pl.pallas_call(
        functools.partial(_mm_kernel, has_affine=has_affine, pre_relu=pre_relu,
                          p_total=P, tile=tile),
        out_shape=tuple(out_shape),
        grid=(num_tiles,),
        in_specs=[
            pl.BlockSpec((tile, Cin), lambda i: (i, 0)),
            pl.BlockSpec((1, Cin), lambda i: (0, 0)),
            pl.BlockSpec((1, Cin), lambda i: (0, 0)),
            pl.BlockSpec((Cin, Cout), lambda i: (0, 0)),
            pl.BlockSpec((1, Cout), lambda i: (0, 0)),
        ],
        out_specs=tuple(out_specs),
        compiler_params=pltpu.CompilerParams(
            dimension_semantics=("parallel",),
            vmem_limit_bytes=VMEM_LIMIT_BYTES),
    )(
        x,
        scale.reshape(1, Cin).astype(jnp.float32),
        shift.reshape(1, Cin).astype(jnp.float32),
        w.astype(jnp.bfloat16),
        b.reshape(1, Cout).astype(jnp.float32),
    )
    if with_stats:
        return res[0], res[1]
    return res[0]


def _max_reduce_kernel(x_ref, s_ref, t_ref, o_ref, *, apply_relu, k_total, tile_k):
    """Running max over the streamed K axis of relu?(x * s + t)."""
    j = pl.program_id(2)

    @pl.when(j == 0)
    def _():
        o_ref[...] = jnp.full(o_ref.shape, -jnp.inf, o_ref.dtype)

    x = x_ref[...].astype(jnp.float32)
    x = x * s_ref[...] + t_ref[...]
    if apply_relu:
        x = jnp.maximum(x, 0.0)
    if k_total % tile_k != 0:
        kidx = j * tile_k + jax.lax.broadcasted_iota(jnp.int32, x.shape, 1)
        x = jnp.where(kidx < k_total, x, -jnp.inf)
    o_ref[...] = jnp.maximum(o_ref[...], jnp.max(x, axis=1))


def _pool_tiles(P, K, tile_c, itemsize):
    """Choose (row, K) tiles keeping the input block under a VMEM budget (dtype-aware)."""
    tile_k = K if K <= 128 else 128
    budget_rows = max(8, _MAX_POOL_BLOCK_BYTES // (itemsize * tile_c * tile_k))
    if budget_rows >= P:
        return P, tile_k
    return max(8, min(512, (budget_rows // 8) * 8)), tile_k


def max_over_axis1(x, scale, shift, apply_relu=True):
    """x: (P, K, C) -> (P, C) f32 max over axis 1 of relu?(x*scale+shift).

    Grid is (P-tiles, C-tiles, K-tiles): the channel split keeps both v7x TensorCores
    busy when P is only the batch size; the K reduction axis is last/"arbitrary".
    """
    P, K, C = x.shape
    tile_c = 512 if (C > 512 and C % 512 == 0) else C
    tile_p, tile_k = _pool_tiles(P, K, tile_c, x.dtype.itemsize)
    grid = (pl.cdiv(P, tile_p), pl.cdiv(C, tile_c), pl.cdiv(K, tile_k))
    return pl.pallas_call(
        functools.partial(_max_reduce_kernel, apply_relu=apply_relu,
                          k_total=K, tile_k=tile_k),
        out_shape=jax.ShapeDtypeStruct((P, C), jnp.float32),
        grid=grid,
        in_specs=[
            pl.BlockSpec((tile_p, tile_k, tile_c), lambda i, c, j: (i, j, c)),
            pl.BlockSpec((1, 1, tile_c), lambda i, c, j: (0, 0, c)),
            pl.BlockSpec((1, 1, tile_c), lambda i, c, j: (0, 0, c)),
        ],
        out_specs=pl.BlockSpec((tile_p, tile_c), lambda i, c, j: (i, c)),
        compiler_params=pltpu.CompilerParams(
            dimension_semantics=("parallel", "parallel", "arbitrary"),
            vmem_limit_bytes=VMEM_LIMIT_BYTES),
    )(
        x,
        scale.reshape(1, 1, C).astype(jnp.float32),
        shift.reshape(1, 1, C).astype(jnp.float32),
    )


def _conv_maxpool_kernel(x_ref, s_ref, t_ref, w_ref, b_ref, o_ref, *, n_total, tile_n):
    """conv6 fused with the global max-over-points pool (running max per batch)."""
    j = pl.program_id(1)

    @pl.when(j == 0)
    def _():
        o_ref[...] = jnp.full(o_ref.shape, -jnp.inf, o_ref.dtype)

    x = x_ref[...].astype(jnp.float32)                      # (tile_n, Cin)
    x = jnp.maximum(x * s_ref[...] + t_ref[...], 0.0)       # fused bn5 + ReLU
    y = jnp.dot(x.astype(jnp.bfloat16), w_ref[...],
                preferred_element_type=jnp.float32) + b_ref[...]   # (tile_n, Cout)
    if n_total % tile_n != 0:
        rows = j * tile_n + jax.lax.broadcasted_iota(jnp.int32, y.shape, 0)
        y = jnp.where(rows < n_total, y, -jnp.inf)
    o_ref[...] = jnp.maximum(o_ref[...], jnp.max(y, axis=0, keepdims=True))


def conv_global_maxpool(x, w, b, scale, shift):
    """x: (B, N, Cin) -> (B, Cout) f32 = max_n( relu(x*scale+shift) @ w + b )."""
    B, N, Cin = x.shape
    Cout = w.shape[1]
    tile_n = N if N <= 1024 else 1024
    grid = (B, pl.cdiv(N, tile_n))
    out = pl.pallas_call(
        functools.partial(_conv_maxpool_kernel, n_total=N, tile_n=tile_n),
        out_shape=jax.ShapeDtypeStruct((B, 1, Cout), jnp.float32),
        grid=grid,
        in_specs=[
            pl.BlockSpec((None, tile_n, Cin), lambda bb, j: (bb, j, 0)),
            pl.BlockSpec((1, Cin), lambda bb, j: (0, 0)),
            pl.BlockSpec((1, Cin), lambda bb, j: (0, 0)),
            pl.BlockSpec((Cin, Cout), lambda bb, j: (0, 0)),
            pl.BlockSpec((1, Cout), lambda bb, j: (0, 0)),
        ],
        out_specs=pl.BlockSpec((None, 1, Cout), lambda bb, j: (bb, 0, 0)),
        compiler_params=pltpu.CompilerParams(
            dimension_semantics=("parallel", "arbitrary"),
            vmem_limit_bytes=VMEM_LIMIT_BYTES),
    )(
        x,
        scale.reshape(1, Cin).astype(jnp.float32),
        shift.reshape(1, Cin).astype(jnp.float32),
        w.astype(jnp.bfloat16),
        b.reshape(1, Cout).astype(jnp.float32),
    )
    return out.reshape(B, Cout)


# ----------------------------------------------------------------------------
# Plain-JAX glue
# ----------------------------------------------------------------------------
def _blockdiag2(w):
    """(Cin, Cout) -> blockdiag([[w,0],[0,w]]) for the lane-packed two-points-per-row path."""
    cin, cout = w.shape
    z = jnp.zeros((cin, cout), w.dtype)
    return jnp.concatenate(
        [jnp.concatenate([w, z], axis=1), jnp.concatenate([z, w], axis=1)], axis=0)


def bn_affine_from_stats(stats, count, gamma, beta, packed=False, eps=1e-5):
    """Finalize train-mode BatchNorm scale/shift from in-kernel partial [sum | sum^2]."""
    tot = jnp.sum(stats, axis=(0, 1))                 # (2*Ck,)
    ck = tot.shape[0] // 2
    ssum, ssq = tot[:ck], tot[ck:]
    if packed:                                        # fold the two packed halves
        c = ck // 2
        ssum = ssum[:c] + ssum[c:]
        ssq = ssq[:c] + ssq[c:]
    mean = ssum / count
    var = jnp.maximum(ssq / count - mean * mean, 0.0)  # biased var (PyTorch train mode)
    s = gamma * jax.lax.rsqrt(var + eps)
    t = beta - mean * s
    return s, t


def bn_affine(raw, gamma, beta, eps=1e-5):
    """Train-mode BatchNorm from a materialized activation (tiny B-row FCs only)."""
    mean = jnp.mean(raw, axis=0)
    var = jnp.mean(jnp.square(raw - mean), axis=0)
    s = gamma * jax.lax.rsqrt(var + eps)
    t = beta - mean * s
    return s, t


def conv_bn(x, w, b, gamma, beta, *, scale=None, shift=None, pre_relu=False,
            count, packed=False, eps=1e-5):
    """Conv layer (+ fused previous BN affine / ReLU) + this layer's BN batch stats."""
    if packed:
        w = _blockdiag2(w)
        b = jnp.concatenate([b, b])
        if scale is not None:
            scale = jnp.concatenate([scale, scale])
            shift = jnp.concatenate([shift, shift])
    out, stats = pointwise_conv(x, w, b, scale, shift, pre_relu=pre_relu, with_stats=True)
    s, t = bn_affine_from_stats(stats, count, gamma, beta, packed=packed, eps=eps)
    return out, s, t


def init_params(key):
    names = [
        ("t_w1", (3, 64)), ("t_b1", (64,)),
        ("t_w2", (64, 128)), ("t_b2", (128,)),
        ("t_w3", (128, 1024)), ("t_b3", (1024,)),
        ("t_fw1", (1024, 512)), ("t_fb1", (512,)),
        ("t_fw2", (512, 256)), ("t_fb2", (256,)),
        ("t_fw3", (256, 9)), ("t_fb3", (9,)),
        ("w1", (12, 64)), ("b1", (64,)),
        ("w2", (64, 64)), ("b2", (64,)),
        ("w3", (64, 64)), ("b3", (64,)),
        ("w4", (64, 64)), ("b4", (64,)),
        ("w5", (64, 128)), ("b5", (128,)),
        ("w6", (128, 1024)), ("b6", (1024,)),
    ]
    keys = jax.random.split(key, len(names))
    p = {n: 0.1 * jax.random.normal(k, s, jnp.float32) for (n, s), k in zip(names, keys)}
    bn_sizes = {"t_g1": 64, "t_g2": 128, "t_g3": 1024, "t_g4": 512, "t_g5": 256,
                "g1": 64, "g2": 64, "g3": 64, "g4": 64, "g5": 128}
    for n, c in bn_sizes.items():
        p[n] = jnp.ones((c,), jnp.float32)
        p[n.replace("g", "be")] = jnp.zeros((c,), jnp.float32)
    return p


def momentum_transform_forward(params, x, k_nn=20):
    """x: (B, N, 3) channel-last point cloud. Returns (B, 1024) f32."""
    B, N, _ = x.shape
    P = B * N
    pk = (P % 2) == 0        # lane-pack two points per 128-wide row for the 64-ch layers
    x = x.astype(jnp.float32)

    # ------------------------- Tnet (input transform) -------------------------
    h = x.reshape(P, 3)
    h_in = h.reshape(P // 2, 6) if pk else h
    tr1, ts1, tt1 = conv_bn(h_in, params["t_w1"], params["t_b1"],
                            params["t_g1"], params["t_be1"], count=P, packed=pk)
    tr2, ts2, tt2 = conv_bn(tr1, params["t_w2"], params["t_b2"],
                            params["t_g2"], params["t_be2"],
                            scale=ts1, shift=tt1, pre_relu=True, count=P, packed=pk)
    tr2 = tr2.reshape(P, 128)            # free row-major un-pack
    tr3, ts3, tt3 = conv_bn(tr2, params["t_w3"], params["t_b3"],
                            params["t_g3"], params["t_be3"],
                            scale=ts2, shift=tt2, pre_relu=True, count=P, packed=False)
    pooled = max_over_axis1(tr3.reshape(B, N, 1024), ts3, tt3, apply_relu=True)   # (B,1024)

    # Tiny B-row FC head in plain JAX (grid-1 pallas launches are pure overhead).
    f1 = pooled @ params["t_fw1"] + params["t_fb1"]
    fs4, ft4 = bn_affine(f1, params["t_g4"], params["t_be4"])
    f2 = jnp.maximum(f1 * fs4 + ft4, 0.0) @ params["t_fw2"] + params["t_fb2"]
    fs5, ft5 = bn_affine(f2, params["t_g5"], params["t_be5"])
    f3 = jnp.maximum(f2 * fs5 + ft5, 0.0) @ params["t_fw3"] + params["t_fb3"]   # (B, 9)
    matrix3x3 = f3.reshape(B, 3, 3) + jnp.eye(3, dtype=jnp.float32)[None]

    # ------------------------- apply 3x3 transform -------------------------
    xb = jnp.einsum("bnd,bde->bne", x, matrix3x3)                               # (B, N, 3)

    # ------------------------- knn (glue) -------------------------
    # TODO(synk): top-k nearest-neighbor selection has no clean Pallas equivalent; jax.lax.top_k.
    xb16 = xb.astype(jnp.bfloat16)
    xx = jnp.sum(jnp.square(xb), axis=-1).astype(jnp.bfloat16)                  # (B, N)
    inner = jnp.einsum("bnd,bmd->bnm", xb16, xb16,
                       preferred_element_type=jnp.bfloat16)                     # (B, N, N)
    pairwise = 2.0 * inner - xx[:, :, None] - xx[:, None, :]                    # = -||xi-xj||^2
    _, idx = jax.lax.top_k(pairwise, k_nn)                                      # (B, N, k)

    # Second-moment lift: [x, y, z, x^2, y^2, z^2, xy, xz, yz].
    x0, x1, x2 = xb[..., 0], xb[..., 1], xb[..., 2]
    moment = jnp.concatenate(
        [xb, xb * xb, jnp.stack([x0 * x1, x0 * x2, x1 * x2], axis=-1)], axis=-1)  # (B,N,9)

    # --------- layer 1: Conv2d(12->64) + BatchNorm2d + ReLU + max over k ---------
    # Algebraic split: conv1([moment, nbr - pt]) = base[pt] + xw[nbr] with
    #   xw   = pt @ W1[9:12]          (per-point projection of coordinates)
    #   base = moment @ W1[0:9] - xw + b1
    # so neither the (B,N,k,12) feature slab nor the (B*N*k,64) conv1 output is materialized.
    w1, b1 = params["w1"], params["b1"]
    xw = pointwise_conv(xb.reshape(P, 3), w1[9:], jnp.zeros((64,), jnp.float32),
                        with_stats=False, out_dtype=jnp.float32)                # (P, 64)
    mpart = pointwise_conv(moment.reshape(P, 9), w1[:9], b1,
                           with_stats=False, out_dtype=jnp.float32)             # (P, 64)
    base = mpart - xw

    # TODO(synk): this neighbor gather-reduce could move into a Pallas kernel with the knn
    # idx scalar-prefetched (per-batch xw tile resident in VMEM); XLA gather is used for now.
    g = jax.vmap(lambda wv, ii: wv[ii])(xw.reshape(B, N, 64), idx)              # (B, N, k, 64)
    gmax = jnp.max(g, axis=2).reshape(P, 64)
    gmin = jnp.min(g, axis=2).reshape(P, 64)
    gsum = jnp.sum(g, axis=2).reshape(P, 64)
    gsq = jnp.sum(jnp.square(g), axis=2).reshape(P, 64)

    cnt = P * k_nn                                 # BatchNorm2d(64): stats over B*k*N samples
    ssum = k_nn * jnp.sum(base, axis=0) + jnp.sum(gsum, axis=0)
    ssq = (k_nn * jnp.sum(jnp.square(base), axis=0)
           + 2.0 * jnp.sum(base * gsum, axis=0) + jnp.sum(gsq, axis=0))
    mean1 = ssum / cnt
    var1 = jnp.maximum(ssq / cnt - jnp.square(mean1), 0.0)
    sc1 = params["g1"] * jax.lax.rsqrt(var1 + 1e-5)
    sh1 = params["be1"] - mean1 * sc1
    # max_j relu(s*(base+g_j)+t): base is constant over j, so only max_j/min_j of g matter.
    ext = jnp.where(sc1 >= 0.0, gmax, gmin)
    hmax = jnp.maximum(sc1 * (base + ext) + sh1, 0.0).astype(jnp.bfloat16)      # (P, 64)

    # ------------------------- conv2..conv5 (lane-packed 64-ch chain) -------------------------
    h2 = hmax.reshape(P // 2, 128) if pk else hmax
    r2, s2, t2 = conv_bn(h2, params["w2"], params["b2"], params["g2"], params["be2"],
                         count=P, packed=pk)
    r3, s3, t3 = conv_bn(r2, params["w3"], params["b3"], params["g3"], params["be3"],
                         scale=s2, shift=t2, pre_relu=True, count=P, packed=pk)
    r4, s4, t4 = conv_bn(r3, params["w4"], params["b4"], params["g4"], params["be4"],
                         scale=s3, shift=t3, pre_relu=True, count=P, packed=pk)
    r5, s5, t5 = conv_bn(r4, params["w5"], params["b5"], params["g5"], params["be5"],
                         scale=s4, shift=t4, pre_relu=True, count=P, packed=pk)

    # --------- conv6 (128->1024) fused with the global max-over-points pool ---------
    # (the reference applies no bn6/ReLU before this pool)
    out = conv_global_maxpool(r5.reshape(B, N, 128), params["w6"], params["b6"], s5, t5)
    return out                                                                   # (B, 1024)


if __name__ == "__main__":
    key = jax.random.PRNGKey(0)
    pkey, xkey = jax.random.split(key)
    params = init_params(pkey)

    B, N = 2, 64  # PyTorch module input would be (B, 3, N)
    x_nchw = jax.random.normal(xkey, (B, 3, N), jnp.float32)
    x = jnp.transpose(x_nchw, (0, 2, 1))  # -> (B, N, 3) channel-last for the kernels

    fwd = jax.jit(functools.partial(momentum_transform_forward, k_nn=20))
    out = jax.block_until_ready(fwd(params, x))
    assert out.shape == (B, 1024), out.shape
    assert bool(jnp.isfinite(out).all())
    print("KERNEL_OK")
</pallas_src>

<mosaic_0001>
module attributes {stable_mosaic.version = 11 : i64} {
  func.func @_mm_kernel(%arg0: i32, %arg1: memref<64x6xf32, #tpu.memory_space<vmem>>, %arg2: memref<1x6xf32, #tpu.memory_space<vmem>>, %arg3: memref<1x6xf32, #tpu.memory_space<vmem>>, %arg4: memref<6x128xbf16, #tpu.memory_space<vmem>>, %arg5: memref<1x128xf32, #tpu.memory_space<vmem>>, %arg6: memref<64x128xbf16, #tpu.memory_space<vmem>>, %arg7: memref<1x1x256xf32, #tpu.memory_space<vmem>>) attributes {dimension_semantics = [#tpu.dimension_semantics<parallel>], iteration_bounds = array<i64: 1>, scalar_prefetch = 0 : i64, scratch_operands = 0 : i64, tpu.core_type = #tpu.core_type<tc>, window_params = [{transform_indices = @transform_0, window_bounds = array<i64: 64, 6>}, {pipeline_mode = #tpu.pipeline_mode<synchronous>, transform_indices = @transform_1, window_bounds = array<i64: 1, 6>}, {pipeline_mode = #tpu.pipeline_mode<synchronous>, transform_indices = @transform_2, window_bounds = array<i64: 1, 6>}, {pipeline_mode = #tpu.pipeline_mode<synchronous>, transform_indices = @transform_3, window_bounds = array<i64: 6, 128>}, {pipeline_mode = #tpu.pipeline_mode<synchronous>, transform_indices = @transform_4, window_bounds = array<i64: 1, 128>}, {transform_indices = @transform_5, window_bounds = array<i64: 64, 128>}, {transform_indices = @transform_6, window_bounds = array<i64: 1, 1, 256>}]} {
    %c0 = arith.constant 0 : index
    %c0_0 = arith.constant 0 : index
    %0 = vector.load %arg1[%c0, %c0_0] : memref<64x6xf32, #tpu.memory_space<vmem>>, vector<64x6xf32>
    %1 = arith.truncf %0 : vector<64x6xf32> to vector<64x6xbf16>
    %c0_1 = arith.constant 0 : index
    %c0_2 = arith.constant 0 : index
    %2 = vector.load %arg4[%c0_1, %c0_2] : memref<6x128xbf16, #tpu.memory_space<vmem>>, vector<6x128xbf16>
    %cst = arith.constant dense<0.000000e+00> : vector<64x128xf32>
    %3 = tpu.matmul %1, %2, %cst {dimension_numbers = #tpu.dot_dimension_numbers<[1], [0], [0], [1], [0, 0, 1, 1], [], []>} : vector<64x6xbf16>, vector<6x128xbf16>, vector<64x128xf32> -> vector<64x128xf32>
    %c0_3 = arith.constant 0 : index
    %c0_4 = arith.constant 0 : index
    %4 = vector.load %arg5[%c0_3, %c0_4] : memref<1x128xf32, #tpu.memory_space<vmem>>, vector<1x128xf32>
    %5 = vector.broadcast %4 : vector<1x128xf32> to vector<64x128xf32>
    %6 = arith.addf %3, %5 : vector<64x128xf32>
    %7 = arith.truncf %6 : vector<64x128xf32> to vector<64x128xbf16>
    %c0_5 = arith.constant 0 : index
    %c0_6 = arith.constant 0 : index
    %8 = vector.load %arg6[%c0_5, %c0_6] : memref<64x128xbf16, #tpu.memory_space<vmem>>, vector<64x128xbf16>
    tpu.vector_store %arg6[%c0_5, %c0_6], %7 {strides = array<i32>} : memref<64x128xbf16, #tpu.memory_space<vmem>>, vector<64x128xbf16>,
    %cst_7 = arith.constant dense<0.000000e+00> : vector<128xf32>
    %9 = vector.multi_reduction <add>, %6, %cst_7 [0] : vector<64x128xf32> to vector<128xf32>
    %10 = vector.shape_cast %9 : vector<128xf32> to vector<1x128xf32>
    %11 = arith.mulf %6, %6 : vector<64x128xf32>
    %cst_8 = arith.constant dense<0.000000e+00> : vector<128xf32>
    %12 = vector.multi_reduction <add>, %11, %cst_8 [0] : vector<64x128xf32> to vector<128xf32>
    %13 = vector.shape_cast %12 : vector<128xf32> to vector<1x128xf32>
    %14 = tpu.concatenate %10, %13 in 1 : vector<1x128xf32>, vector<1x128xf32> -> vector<1x256xf32>
    %15 = vector.shape_cast %14 : vector<1x256xf32> to vector<1x1x256xf32>
    %c0_9 = arith.constant 0 : index
    %c0_10 = arith.constant 0 : index
    %c0_11 = arith.constant 0 : index
    %16 = vector.load %arg7[%c0_9, %c0_10, %c0_11] : memref<1x1x256xf32, #tpu.memory_space<vmem>>, vector<1x1x256xf32>
    tpu.vector_store %arg7[%c0_9, %c0_10, %c0_11], %15 {strides = array<i32>} : memref<1x1x256xf32, #tpu.memory_space<vmem>>, vector<1x1x256xf32>,
    return
  }
  func.func @transform_0(%arg0: i32) -> (i32, i32) {
    %c0_i32 = arith.constant 0 : i32
    %c0_i32_0 = arith.constant 0 : i32
    return %arg0, %c0_i32 : i32, i32
  }
  func.func @transform_1(%arg0: i32) -> (i32, i32) {
    %c0_i32 = arith.constant 0 : i32
    %c0_i32_0 = arith.constant 0 : i32
    %c0_i32_1 = arith.constant 0 : i32
    return %c0_i32, %c0_i32_0 : i32, i32
  }
  func.func @transform_2(%arg0: i32) -> (i32, i32) {
    %c0_i32 = arith.constant 0 : i32
    %c0_i32_0 = arith.constant 0 : i32
    %c0_i32_1 = arith.constant 0 : i32
    return %c0_i32, %c0_i32_0 : i32, i32
  }
  func.func @transform_3(%arg0: i32) -> (i32, i32) {
    %c0_i32 = arith.constant 0 : i32
    %c0_i32_0 = arith.constant 0 : i32
    %c0_i32_1 = arith.constant 0 : i32
    return %c0_i32, %c0_i32_0 : i32, i32
  }
  func.func @transform_4(%arg0: i32) -> (i32, i32) {
    %c0_i32 = arith.constant 0 : i32
    %c0_i32_0 = arith.constant 0 : i32
    %c0_i32_1 = arith.constant 0 : i32
    return %c0_i32, %c0_i32_0 : i32, i32
  }
  func.func @transform_5(%arg0: i32) -> (i32, i32) {
    %c0_i32 = arith.constant 0 : i32
    %c0_i32_0 = arith.constant 0 : i32
    return %arg0, %c0_i32 : i32, i32
  }
  func.func @transform_6(%arg0: i32) -> (i32, i32, i32) {
    %c0_i32 = arith.constant 0 : i32
    %c0_i32_0 = arith.constant 0 : i32
    %c0_i32_1 = arith.constant 0 : i32
    return %arg0, %c0_i32, %c0_i32_0 : i32, i32, i32
  }
}

module attributes {stable_mosaic.version = 11 : i64} {
  func.func @_mm_kernel(%arg0: i32, %arg1: memref<64x128xbf16, #tpu.memory_space<vmem>>, %arg2: memref<1x128xf32, #tpu.memory_space<vmem>>, %arg3: memref<1x128xf32, #tpu.memory_space<vmem>>, %arg4: memref<128x256xbf16, #tpu.memory_space<vmem>>, %arg5: memref<1x256xf32, #tpu.memory_space<vmem>>, %arg6: memref<64x256xbf16, #tpu.memory_space<vmem>>, %arg7: memref<1x1x512xf32, #tpu.memory_space<vmem>>) attributes {dimension_semantics = [#tpu.dimension_semantics<parallel>], iteration_bounds = array<i64: 1>, scalar_prefetch = 0 : i64, scratch_operands = 0 : i64, tpu.core_type = #tpu.core_type<tc>, window_params = [{transform_indices = @transform_0, window_bounds = array<i64: 64, 128>}, {pipeline_mode = #tpu.pipeline_mode<synchronous>, transform_indices = @transform_1, window_bounds = array<i64: 1, 128>}, {pipeline_mode = #tpu.pipeline_mode<synchronous>, transform_indices = @transform_2, window_bounds = array<i64: 1, 128>}, {pipeline_mode = #tpu.pipeline_mode<synchronous>, transform_indices = @transform_3, window_bounds = array<i64: 128, 256>}, {pipeline_mode = #tpu.pipeline_mode<synchronous>, transform_indices = @transform_4, window_bounds = array<i64: 1, 256>}, {transform_indices = @transform_5, window_bounds = array<i64: 64, 256>}, {transform_indices = @transform_6, window_bounds = array<i64: 1, 1, 512>}]} {
    %c0 = arith.constant 0 : index
    %c0_0 = arith.constant 0 : index
    %0 = vector.load %arg1[%c0, %c0_0] : memref<64x128xbf16, #tpu.memory_space<vmem>>, vector<64x128xbf16>
    %1 = arith.extf %0 : vector<64x128xbf16> to vector<64x128xf32>
    %c0_1 = arith.constant 0 : index
    %c0_2 = arith.constant 0 : index
    %2 = vector.load %arg2[%c0_1, %c0_2] : memref<1x128xf32, #tpu.memory_space<vmem>>, vector<1x128xf32>
    %3 = vector.broadcast %2 : vector<1x128xf32> to vector<64x128xf32>
    %4 = arith.mulf %1, %3 : vector<64x128xf32>
    %c0_3 = arith.constant 0 : index
    %c0_4 = arith.constant 0 : index
    %5 = vector.load %arg3[%c0_3, %c0_4] : memref<1x128xf32, #tpu.memory_space<vmem>>, vector<1x128xf32>
    %6 = vector.broadcast %5 : vector<1x128xf32> to vector<64x128xf32>
    %7 = arith.addf %4, %6 : vector<64x128xf32>
    %cst = arith.constant 0.000000e+00 : f32
    %8 = vector.broadcast %cst : f32 to vector<64x128xf32>
    %9 = arith.maximumf %7, %8 : vector<64x128xf32>
    %10 = arith.truncf %9 : vector<64x128xf32> to vector<64x128xbf16>
    %c0_5 = arith.constant 0 : index
    %c0_6 = arith.constant 0 : index
    %11 = vector.load %arg4[%c0_5, %c0_6] : memref<128x256xbf16, #tpu.memory_space<vmem>>, vector<128x256xbf16>
    %cst_7 = arith.constant dense<0.000000e+00> : vector<64x256xf32>
    %12 = tpu.matmul %10, %11, %cst_7 {dimension_numbers = #tpu.dot_dimension_numbers<[1], [0], [0], [1], [0, 0, 1, 1], [], []>} : vector<64x128xbf16>, vector<128x256xbf16>, vector<64x256xf32> -> vector<64x256xf32>
    %c0_8 = arith.constant 0 : index
    %c0_9 = arith.constant 0 : index
    %13 = vector.load %arg5[%c0_8, %c0_9] : memref<1x256xf32, #tpu.memory_space<vmem>>, vector<1x256xf32>
    %14 = vector.broadcast %13 : vector<1x256xf32> to vector<64x256xf32>
    %15 = arith.addf %12, %14 : vector<64x256xf32>
    %16 = arith.truncf %15 : vector<64x256xf32> to vector<64x256xbf16>
    %c0_10 = arith.constant 0 : index
    %c0_11 = arith.constant 0 : index
    %17 = vector.load %arg6[%c0_10, %c0_11] : memref<64x256xbf16, #tpu.memory_space<vmem>>, vector<64x256xbf16>
    tpu.vector_store %arg6[%c0_10, %c0_11], %16 {strides = array<i32>} : memref<64x256xbf16, #tpu.memory_space<vmem>>, vector<64x256xbf16>,
    %cst_12 = arith.constant dense<0.000000e+00> : vector<256xf32>
    %18 = vector.multi_reduction <add>, %15, %cst_12 [0] : vector<64x256xf32> to vector<256xf32>
    %19 = vector.shape_cast %18 : vector<256xf32> to vector<1x256xf32>
    %20 = arith.mulf %15, %15 : vector<64x256xf32>
    %cst_13 = arith.constant dense<0.000000e+00> : vector<256xf32>
    %21 = vector.multi_reduction <add>, %20, %cst_13 [0] : vector<64x256xf32> to vector<256xf32>
    %22 = vector.shape_cast %21 : vector<256xf32> to vector<1x256xf32>
    %23 = tpu.concatenate %19, %22 in 1 : vector<1x256xf32>, vector<1x256xf32> -> vector<1x512xf32>
    %24 = vector.shape_cast %23 : vector<1x512xf32> to vector<1x1x512xf32>
    %c0_14 = arith.constant 0 : index
    %c0_15 = arith.constant 0 : index
    %c0_16 = arith.constant 0 : index
    %25 = vector.load %arg7[%c0_14, %c0_15, %c0_16] : memref<1x1x512xf32, #tpu.memory_space<vmem>>, vector<1x1x512xf32>
    tpu.vector_store %arg7[%c0_14, %c0_15, %c0_16], %24 {strides = array<i32>} : memref<1x1x512xf32, #tpu.memory_space<vmem>>, vector<1x1x512xf32>,
    return
  }
  func.func @transform_0(%arg0: i32) -> (i32, i32) {
    %c0_i32 = arith.constant 0 : i32
    %c0_i32_0 = arith.constant 0 : i32
    return %arg0, %c0_i32 : i32, i32
  }
  func.func @transform_1(%arg0: i32) -> (i32, i32) {
    %c0_i32 = arith.constant 0 : i32
    %c0_i32_0 = arith.constant 0 : i32
    %c0_i32_1 = arith.constant 0 : i32
    return %c0_i32, %c0_i32_0 : i32, i32
  }
  func.func @transform_2(%arg0: i32) -> (i32, i32) {
    %c0_i32 = arith.constant 0 : i32
    %c0_i32_0 = arith.constant 0 : i32
    %c0_i32_1 = arith.constant 0 : i32
    return %c0_i32, %c0_i32_0 : i32, i32
  }
  func.func @transform_3(%arg0: i32) -> (i32, i32) {
    %c0_i32 = arith.constant 0 : i32
    %c0_i32_0 = arith.constant 0 : i32
    %c0_i32_1 = arith.constant 0 : i32
    return %c0_i32, %c0_i32_0 : i32, i32
  }
  func.func @transform_4(%arg0: i32) -> (i32, i32) {
    %c0_i32 = arith.constant 0 : i32
    %c0_i32_0 = arith.constant 0 : i32
    %c0_i32_1 = arith.constant 0 : i32
    return %c0_i32, %c0_i32_0 : i32, i32
  }
  func.func @transform_5(%arg0: i32) -> (i32, i32) {
    %c0_i32 = arith.constant 0 : i32
    %c0_i32_0 = arith.constant 0 : i32
    return %arg0, %c0_i32 : i32, i32
  }
  func.func @transform_6(%arg0: i32) -> (i32, i32, i32) {
    %c0_i32 = arith.constant 0 : i32
    %c0_i32_0 = arith.constant 0 : i32
    %c0_i32_1 = arith.constant 0 : i32
    return %arg0, %c0_i32, %c0_i32_0 : i32, i32, i32
  }
}

module attributes {stable_mosaic.version = 11 : i64} {
  func.func @_mm_kernel(%arg0: i32, %arg1: memref<128x128xbf16, #tpu.memory_space<vmem>>, %arg2: memref<1x128xf32, #tpu.memory_space<vmem>>, %arg3: memref<1x128xf32, #tpu.memory_space<vmem>>, %arg4: memref<128x1024xbf16, #tpu.memory_space<vmem>>, %arg5: memref<1x1024xf32, #tpu.memory_space<vmem>>, %arg6: memref<128x1024xbf16, #tpu.memory_space<vmem>>, %arg7: memref<1x1x2048xf32, #tpu.memory_space<vmem>>) attributes {dimension_semantics = [#tpu.dimension_semantics<parallel>], iteration_bounds = array<i64: 1>, scalar_prefetch = 0 : i64, scratch_operands = 0 : i64, tpu.core_type = #tpu.core_type<tc>, window_params = [{transform_indices = @transform_0, window_bounds = array<i64: 128, 128>}, {pipeline_mode = #tpu.pipeline_mode<synchronous>, transform_indices = @transform_1, window_bounds = array<i64: 1, 128>}, {pipeline_mode = #tpu.pipeline_mode<synchronous>, transform_indices = @transform_2, window_bounds = array<i64: 1, 128>}, {pipeline_mode = #tpu.pipeline_mode<synchronous>, transform_indices = @transform_3, window_bounds = array<i64: 128, 1024>}, {pipeline_mode = #tpu.pipeline_mode<synchronous>, transform_indices = @transform_4, window_bounds = array<i64: 1, 1024>}, {transform_indices = @transform_5, window_bounds = array<i64: 128, 1024>}, {transform_indices = @transform_6, window_bounds = array<i64: 1, 1, 2048>}]} {
    %c0 = arith.constant 0 : index
    %c0_0 = arith.constant 0 : index
    %0 = vector.load %arg1[%c0, %c0_0] : memref<128x128xbf16, #tpu.memory_space<vmem>>, vector<128x128xbf16>
    %1 = arith.extf %0 : vector<128x128xbf16> to vector<128x128xf32>
    %c0_1 = arith.constant 0 : index
    %c0_2 = arith.constant 0 : index
    %2 = vector.load %arg2[%c0_1, %c0_2] : memref<1x128xf32, #tpu.memory_space<vmem>>, vector<1x128xf32>
    %3 = vector.broadcast %2 : vector<1x128xf32> to vector<128x128xf32>
    %4 = arith.mulf %1, %3 : vector<128x128xf32>
    %c0_3 = arith.constant 0 : index
    %c0_4 = arith.constant 0 : index
    %5 = vector.load %arg3[%c0_3, %c0_4] : memref<1x128xf32, #tpu.memory_space<vmem>>, vector<1x128xf32>
    %6 = vector.broadcast %5 : vector<1x128xf32> to vector<128x128xf32>
    %7 = arith.addf %4, %6 : vector<128x128xf32>
    %cst = arith.constant 0.000000e+00 : f32
    %8 = vector.broadcast %cst : f32 to vector<128x128xf32>
    %9 = arith.maximumf %7, %8 : vector<128x128xf32>
    %10 = arith.truncf %9 : vector<128x128xf32> to vector<128x128xbf16>
    %c0_5 = arith.constant 0 : index
    %c0_6 = arith.constant 0 : index
    %11 = vector.load %arg4[%c0_5, %c0_6] : memref<128x1024xbf16, #tpu.memory_space<vmem>>, vector<128x1024xbf16>
    %cst_7 = arith.constant dense<0.000000e+00> : vector<128x1024xf32>
    %12 = tpu.matmul %10, %11, %cst_7 {dimension_numbers = #tpu.dot_dimension_numbers<[1], [0], [0], [1], [0, 0, 1, 1], [], []>} : vector<128x128xbf16>, vector<128x1024xbf16>, vector<128x1024xf32> -> vector<128x1024xf32>
    %c0_8 = arith.constant 0 : index
    %c0_9 = arith.constant 0 : index
    %13 = vector.load %arg5[%c0_8, %c0_9] : memref<1x1024xf32, #tpu.memory_space<vmem>>, vector<1x1024xf32>
    %14 = vector.broadcast %13 : vector<1x1024xf32> to vector<128x1024xf32>
    %15 = arith.addf %12, %14 : vector<128x1024xf32>
    %16 = arith.truncf %15 : vector<128x1024xf32> to vector<128x1024xbf16>
    %c0_10 = arith.constant 0 : index
    %c0_11 = arith.constant 0 : index
    %17 = vector.load %arg6[%c0_10, %c0_11] : memref<128x1024xbf16, #tpu.memory_space<vmem>>, vector<128x1024xbf16>
    tpu.vector_store %arg6[%c0_10, %c0_11], %16 {strides = array<i32>} : memref<128x1024xbf16, #tpu.memory_space<vmem>>, vector<128x1024xbf16>,
    %cst_12 = arith.constant dense<0.000000e+00> : vector<1024xf32>
    %18 = vector.multi_reduction <add>, %15, %cst_12 [0] : vector<128x1024xf32> to vector<1024xf32>
    %19 = vector.shape_cast %18 : vector<1024xf32> to vector<1x1024xf32>
    %20 = arith.mulf %15, %15 : vector<128x1024xf32>
    %cst_13 = arith.constant dense<0.000000e+00> : vector<1024xf32>
    %21 = vector.multi_reduction <add>, %20, %cst_13 [0] : vector<128x1024xf32> to vector<1024xf32>
    %22 = vector.shape_cast %21 : vector<1024xf32> to vector<1x1024xf32>
    %23 = tpu.concatenate %19, %22 in 1 : vector<1x1024xf32>, vector<1x1024xf32> -> vector<1x2048xf32>
    %24 = vector.shape_cast %23 : vector<1x2048xf32> to vector<1x1x2048xf32>
    %c0_14 = arith.constant 0 : index
    %c0_15 = arith.constant 0 : index
    %c0_16 = arith.constant 0 : index
    %25 = vector.load %arg7[%c0_14, %c0_15, %c0_16] : memref<1x1x2048xf32, #tpu.memory_space<vmem>>, vector<1x1x2048xf32>
    tpu.vector_store %arg7[%c0_14, %c0_15, %c0_16], %24 {strides = array<i32>} : memref<1x1x2048xf32, #tpu.memory_space<vmem>>, vector<1x1x2048xf32>,
    return
  }
  func.func @transform_0(%arg0: i32) -> (i32, i32) {
    %c0_i32 = arith.constant 0 : i32
    %c0_i32_0 = arith.constant 0 : i32
    return %arg0, %c0_i32 : i32, i32
  }
  func.func @transform_1(%arg0: i32) -> (i32, i32) {
    %c0_i32 = arith.constant 0 : i32
    %c0_i32_0 = arith.constant 0 : i32
    %c0_i32_1 = arith.constant 0 : i32
    return %c0_i32, %c0_i32_0 : i32, i32
  }
  func.func @transform_2(%arg0: i32) -> (i32, i32) {
    %c0_i32 = arith.constant 0 : i32
    %c0_i32_0 = arith.constant 0 : i32
    %c0_i32_1 = arith.constant 0 : i32
    return %c0_i32, %c0_i32_0 : i32, i32
  }
  func.func @transform_3(%arg0: i32) -> (i32, i32) {
    %c0_i32 = arith.constant 0 : i32
    %c0_i32_0 = arith.constant 0 : i32
    %c0_i32_1 = arith.constant 0 : i32
    return %c0_i32, %c0_i32_0 : i32, i32
  }
  func.func @transform_4(%arg0: i32) -> (i32, i32) {
    %c0_i32 = arith.constant 0 : i32
    %c0_i32_0 = arith.constant 0 : i32
    %c0_i32_1 = arith.constant 0 : i32
    return %c0_i32, %c0_i32_0 : i32, i32
  }
  func.func @transform_5(%arg0: i32) -> (i32, i32) {
    %c0_i32 = arith.constant 0 : i32
    %c0_i32_0 = arith.constant 0 : i32
    return %arg0, %c0_i32 : i32, i32
  }
  func.func @transform_6(%arg0: i32) -> (i32, i32, i32) {
    %c0_i32 = arith.constant 0 : i32
    %c0_i32_0 = arith.constant 0 : i32
    %c0_i32_1 = arith.constant 0 : i32
    return %arg0, %c0_i32, %c0_i32_0 : i32, i32, i32
  }
}

module attributes {stable_mosaic.version = 11 : i64} {
  func.func @_max_reduce_kernel(%arg0: i32, %arg1: i32, %arg2: i32, %arg3: memref<2x64x512xbf16, #tpu.memory_space<vmem>>, %arg4: memref<1x1x512xf32, #tpu.memory_space<vmem>>, %arg5: memref<1x1x512xf32, #tpu.memory_space<vmem>>, %arg6: memref<2x512xf32, #tpu.memory_space<vmem>>) attributes {dimension_semantics = [#tpu.dimension_semantics<parallel>, #tpu.dimension_semantics<parallel>, #tpu.dimension_semantics<arbitrary>], iteration_bounds = array<i64: 1, 2, 1>, scalar_prefetch = 0 : i64, scratch_operands = 0 : i64, tpu.core_type = #tpu.core_type<tc>, window_params = [{transform_indices = @transform_0, window_bounds = array<i64: 2, 64, 512>}, {transform_indices = @transform_1, window_bounds = array<i64: 1, 1, 512>}, {transform_indices = @transform_2, window_bounds = array<i64: 1, 1, 512>}, {transform_indices = @transform_3, window_bounds = array<i64: 2, 512>}]} {
    %c0_i32 = arith.constant 0 : i32
    %0 = arith.cmpi eq, %arg2, %c0_i32 : i32
    %1 = arith.extui %0 : i1 to i32
    %c0_i32_0 = arith.constant 0 : i32
    %2 = arith.cmpi ne, %1, %c0_i32_0 : i32
    scf.if %2 {
      %cst_14 = arith.constant 0xFF800000 : f32
      %17 = vector.broadcast %cst_14 : f32 to vector<2x512xf32>
      %c0_15 = arith.constant 0 : index
      %c0_16 = arith.constant 0 : index
      %18 = vector.load %arg6[%c0_15, %c0_16] : memref<2x512xf32, #tpu.memory_space<vmem>>, vector<2x512xf32>
      tpu.vector_store %arg6[%c0_15, %c0_16], %17 {strides = array<i32>} : memref<2x512xf32, #tpu.memory_space<vmem>>, vector<2x512xf32>,
    } else {
    }
    %c0 = arith.constant 0 : index
    %c0_1 = arith.constant 0 : index
    %c0_2 = arith.constant 0 : index
    %3 = vector.load %arg3[%c0, %c0_1, %c0_2] : memref<2x64x512xbf16, #tpu.memory_space<vmem>>, vector<2x64x512xbf16>
    %4 = arith.extf %3 : vector<2x64x512xbf16> to vector<2x64x512xf32>
    %c0_3 = arith.constant 0 : index
    %c0_4 = arith.constant 0 : index
    %c0_5 = arith.constant 0 : index
    %5 = vector.load %arg4[%c0_3, %c0_4, %c0_5] : memref<1x1x512xf32, #tpu.memory_space<vmem>>, vector<1x1x512xf32>
    %6 = vector.broadcast %5 : vector<1x1x512xf32> to vector<2x64x512xf32>
    %7 = arith.mulf %4, %6 : vector<2x64x512xf32>
    %c0_6 = arith.constant 0 : index
    %c0_7 = arith.constant 0 : index
    %c0_8 = arith.constant 0 : index
    %8 = vector.load %arg5[%c0_6, %c0_7, %c0_8] : memref<1x1x512xf32, #tpu.memory_space<vmem>>, vector<1x1x512xf32>
    %9 = vector.broadcast %8 : vector<1x1x512xf32> to vector<2x64x512xf32>
    %10 = arith.addf %7, %9 : vector<2x64x512xf32>
    %cst = arith.constant 0.000000e+00 : f32
    %11 = vector.broadcast %cst : f32 to vector<2x64x512xf32>
    %12 = arith.maximumf %10, %11 : vector<2x64x512xf32>
    %c0_9 = arith.constant 0 : index
    %c0_10 = arith.constant 0 : index
    %13 = vector.load %arg6[%c0_9, %c0_10] : memref<2x512xf32, #tpu.memory_space<vmem>>, vector<2x512xf32>
    %cst_11 = arith.constant dense<0xFF800000> : vector<2x512xf32>
    %14 = vector.multi_reduction <maximumf>, %12, %cst_11 [1] : vector<2x64x512xf32> to vector<2x512xf32>
    %15 = arith.maximumf %13, %14 : vector<2x512xf32>
    %c0_12 = arith.constant 0 : index
    %c0_13 = arith.constant 0 : index
    %16 = vector.load %arg6[%c0_12, %c0_13] : memref<2x512xf32, #tpu.memory_space<vmem>>, vector<2x512xf32>
    tpu.vector_store %arg6[%c0_12, %c0_13], %15 {strides = array<i32>} : memref<2x512xf32, #tpu.memory_space<vmem>>, vector<2x512xf32>,
    return
  }
  func.func @transform_0(%arg0: i32, %arg1: i32, %arg2: i32) -> (i32, i32, i32) {
    %c0_i32 = arith.constant 0 : i32
    return %arg0, %arg2, %arg1 : i32, i32, i32
  }
  func.func @transform_1(%arg0: i32, %arg1: i32, %arg2: i32) -> (i32, i32, i32) {
    %c0_i32 = arith.constant 0 : i32
    %c0_i32_0 = arith.constant 0 : i32
    %c0_i32_1 = arith.constant 0 : i32
    return %c0_i32, %c0_i32_0, %arg1 : i32, i32, i32
  }
  func.func @transform_2(%arg0: i32, %arg1: i32, %arg2: i32) -> (i32, i32, i32) {
    %c0_i32 = arith.constant 0 : i32
    %c0_i32_0 = arith.constant 0 : i32
    %c0_i32_1 = arith.constant 0 : i32
    return %c0_i32, %c0_i32_0, %arg1 : i32, i32, i32
  }
  func.func @transform_3(%arg0: i32, %arg1: i32, %arg2: i32) -> (i32, i32) {
    %c0_i32 = arith.constant 0 : i32
    return %arg0, %arg1 : i32, i32
  }
}

module attributes {stable_mosaic.version = 11 : i64} {
  func.func @_mm_kernel(%arg0: i32, %arg1: memref<128x9xf32, #tpu.memory_space<vmem>>, %arg2: memref<1x9xf32, #tpu.memory_space<vmem>>, %arg3: memref<1x9xf32, #tpu.memory_space<vmem>>, %arg4: memref<9x64xbf16, #tpu.memory_space<vmem>>, %arg5: memref<1x64xf32, #tpu.memory_space<vmem>>, %arg6: memref<128x64xf32, #tpu.memory_space<vmem>>) attributes {dimension_semantics = [#tpu.dimension_semantics<parallel>], iteration_bounds = array<i64: 1>, scalar_prefetch = 0 : i64, scratch_operands = 0 : i64, tpu.core_type = #tpu.core_type<tc>, window_params = [{transform_indices = @transform_0, window_bounds = array<i64: 128, 9>}, {pipeline_mode = #tpu.pipeline_mode<synchronous>, transform_indices = @transform_1, window_bounds = array<i64: 1, 9>}, {pipeline_mode = #tpu.pipeline_mode<synchronous>, transform_indices = @transform_2, window_bounds = array<i64: 1, 9>}, {pipeline_mode = #tpu.pipeline_mode<synchronous>, transform_indices = @transform_3, window_bounds = array<i64: 9, 64>}, {pipeline_mode = #tpu.pipeline_mode<synchronous>, transform_indices = @transform_4, window_bounds = array<i64: 1, 64>}, {transform_indices = @transform_5, window_bounds = array<i64: 128, 64>}]} {
    %c0 = arith.constant 0 : index
    %c0_0 = arith.constant 0 : index
    %0 = vector.load %arg1[%c0, %c0_0] : memref<128x9xf32, #tpu.memory_space<vmem>>, vector<128x9xf32>
    %1 = arith.truncf %0 : vector<128x9xf32> to vector<128x9xbf16>
    %c0_1 = arith.constant 0 : index
    %c0_2 = arith.constant 0 : index
    %2 = vector.load %arg4[%c0_1, %c0_2] : memref<9x64xbf16, #tpu.memory_space<vmem>>, vector<9x64xbf16>
    %cst = arith.constant dense<0.000000e+00> : vector<128x64xf32>
    %3 = tpu.matmul %1, %2, %cst {dimension_numbers = #tpu.dot_dimension_numbers<[1], [0], [0], [1], [0, 0, 1, 1], [], []>} : vector<128x9xbf16>, vector<9x64xbf16>, vector<128x64xf32> -> vector<128x64xf32>
    %c0_3 = arith.constant 0 : index
    %c0_4 = arith.constant 0 : index
    %4 = vector.load %arg5[%c0_3, %c0_4] : memref<1x64xf32, #tpu.memory_space<vmem>>, vector<1x64xf32>
    %5 = vector.broadcast %4 : vector<1x64xf32> to vector<128x64xf32>
    %6 = arith.addf %3, %5 : vector<128x64xf32>
    %c0_5 = arith.constant 0 : index
    %c0_6 = arith.constant 0 : index
    %7 = vector.load %arg6[%c0_5, %c0_6] : memref<128x64xf32, #tpu.memory_space<vmem>>, vector<128x64xf32>
    tpu.vector_store %arg6[%c0_5, %c0_6], %6 {strides = array<i32>} : memref<128x64xf32, #tpu.memory_space<vmem>>, vector<128x64xf32>,
    return
  }
  func.func @transform_0(%arg0: i32) -> (i32, i32) {
    %c0_i32 = arith.constant 0 : i32
    %c0_i32_0 = arith.constant 0 : i32
    return %arg0, %c0_i32 : i32, i32
  }
  func.func @transform_1(%arg0: i32) -> (i32, i32) {
    %c0_i32 = arith.constant 0 : i32
    %c0_i32_0 = arith.constant 0 : i32
    %c0_i32_1 = arith.constant 0 : i32
    return %c0_i32, %c0_i32_0 : i32, i32
  }
  func.func @transform_2(%arg0: i32) -> (i32, i32) {
    %c0_i32 = arith.constant 0 : i32
    %c0_i32_0 = arith.constant 0 : i32
    %c0_i32_1 = arith.constant 0 : i32
    return %c0_i32, %c0_i32_0 : i32, i32
  }
  func.func @transform_3(%arg0: i32) -> (i32, i32) {
    %c0_i32 = arith.constant 0 : i32
    %c0_i32_0 = arith.constant 0 : i32
    %c0_i32_1 = arith.constant 0 : i32
    return %c0_i32, %c0_i32_0 : i32, i32
  }
  func.func @transform_4(%arg0: i32) -> (i32, i32) {
    %c0_i32 = arith.constant 0 : i32
    %c0_i32_0 = arith.constant 0 : i32
    %c0_i32_1 = arith.constant 0 : i32
    return %c0_i32, %c0_i32_0 : i32, i32
  }
  func.func @transform_5(%arg0: i32) -> (i32, i32) {
    %c0_i32 = arith.constant 0 : i32
    %c0_i32_0 = arith.constant 0 : i32
    return %arg0, %c0_i32 : i32, i32
  }
}

module attributes {stable_mosaic.version = 11 : i64} {
  func.func @_mm_kernel(%arg0: i32, %arg1: memref<128x3xf32, #tpu.memory_space<vmem>>, %arg2: memref<1x3xf32, #tpu.memory_space<vmem>>, %arg3: memref<1x3xf32, #tpu.memory_space<vmem>>, %arg4: memref<3x64xbf16, #tpu.memory_space<vmem>>, %arg5: memref<1x64xf32, #tpu.memory_space<vmem>>, %arg6: memref<128x64xf32, #tpu.memory_space<vmem>>) attributes {dimension_semantics = [#tpu.dimension_semantics<parallel>], iteration_bounds = array<i64: 1>, scalar_prefetch = 0 : i64, scratch_operands = 0 : i64, tpu.core_type = #tpu.core_type<tc>, window_params = [{transform_indices = @transform_0, window_bounds = array<i64: 128, 3>}, {pipeline_mode = #tpu.pipeline_mode<synchronous>, transform_indices = @transform_1, window_bounds = array<i64: 1, 3>}, {pipeline_mode = #tpu.pipeline_mode<synchronous>, transform_indices = @transform_2, window_bounds = array<i64: 1, 3>}, {pipeline_mode = #tpu.pipeline_mode<synchronous>, transform_indices = @transform_3, window_bounds = array<i64: 3, 64>}, {pipeline_mode = #tpu.pipeline_mode<synchronous>, transform_indices = @transform_4, window_bounds = array<i64: 1, 64>}, {transform_indices = @transform_5, window_bounds = array<i64: 128, 64>}]} {
    %c0 = arith.constant 0 : index
    %c0_0 = arith.constant 0 : index
    %0 = vector.load %arg1[%c0, %c0_0] : memref<128x3xf32, #tpu.memory_space<vmem>>, vector<128x3xf32>
    %1 = arith.truncf %0 : vector<128x3xf32> to vector<128x3xbf16>
    %c0_1 = arith.constant 0 : index
    %c0_2 = arith.constant 0 : index
    %2 = vector.load %arg4[%c0_1, %c0_2] : memref<3x64xbf16, #tpu.memory_space<vmem>>, vector<3x64xbf16>
    %cst = arith.constant dense<0.000000e+00> : vector<128x64xf32>
    %3 = tpu.matmul %1, %2, %cst {dimension_numbers = #tpu.dot_dimension_numbers<[1], [0], [0], [1], [0, 0, 1, 1], [], []>} : vector<128x3xbf16>, vector<3x64xbf16>, vector<128x64xf32> -> vector<128x64xf32>
    %c0_3 = arith.constant 0 : index
    %c0_4 = arith.constant 0 : index
    %4 = vector.load %arg5[%c0_3, %c0_4] : memref<1x64xf32, #tpu.memory_space<vmem>>, vector<1x64xf32>
    %5 = vector.broadcast %4 : vector<1x64xf32> to vector<128x64xf32>
    %6 = arith.addf %3, %5 : vector<128x64xf32>
    %c0_5 = arith.constant 0 : index
    %c0_6 = arith.constant 0 : index
    %7 = vector.load %arg6[%c0_5, %c0_6] : memref<128x64xf32, #tpu.memory_space<vmem>>, vector<128x64xf32>
    tpu.vector_store %arg6[%c0_5, %c0_6], %6 {strides = array<i32>} : memref<128x64xf32, #tpu.memory_space<vmem>>, vector<128x64xf32>,
    return
  }
  func.func @transform_0(%arg0: i32) -> (i32, i32) {
    %c0_i32 = arith.constant 0 : i32
    %c0_i32_0 = arith.constant 0 : i32
    return %arg0, %c0_i32 : i32, i32
  }
  func.func @transform_1(%arg0: i32) -> (i32, i32) {
    %c0_i32 = arith.constant 0 : i32
    %c0_i32_0 = arith.constant 0 : i32
    %c0_i32_1 = arith.constant 0 : i32
    return %c0_i32, %c0_i32_0 : i32, i32
  }
  func.func @transform_2(%arg0: i32) -> (i32, i32) {
    %c0_i32 = arith.constant 0 : i32
    %c0_i32_0 = arith.constant 0 : i32
    %c0_i32_1 = arith.constant 0 : i32
    return %c0_i32, %c0_i32_0 : i32, i32
  }
  func.func @transform_3(%arg0: i32) -> (i32, i32) {
    %c0_i32 = arith.constant 0 : i32
    %c0_i32_0 = arith.constant 0 : i32
    %c0_i32_1 = arith.constant 0 : i32
    return %c0_i32, %c0_i32_0 : i32, i32
  }
  func.func @transform_4(%arg0: i32) -> (i32, i32) {
    %c0_i32 = arith.constant 0 : i32
    %c0_i32_0 = arith.constant 0 : i32
    %c0_i32_1 = arith.constant 0 : i32
    return %c0_i32, %c0_i32_0 : i32, i32
  }
  func.func @transform_5(%arg0: i32) -> (i32, i32) {
    %c0_i32 = arith.constant 0 : i32
    %c0_i32_0 = arith.constant 0 : i32
    return %arg0, %c0_i32 : i32, i32
  }
}

module attributes {stable_mosaic.version = 11 : i64} {
  func.func @_mm_kernel(%arg0: i32, %arg1: memref<64x128xbf16, #tpu.memory_space<vmem>>, %arg2: memref<1x128xf32, #tpu.memory_space<vmem>>, %arg3: memref<1x128xf32, #tpu.memory_space<vmem>>, %arg4: memref<128x128xbf16, #tpu.memory_space<vmem>>, %arg5: memref<1x128xf32, #tpu.memory_space<vmem>>, %arg6: memref<64x128xbf16, #tpu.memory_space<vmem>>, %arg7: memref<1x1x256xf32, #tpu.memory_space<vmem>>) attributes {dimension_semantics = [#tpu.dimension_semantics<parallel>], iteration_bounds = array<i64: 1>, scalar_prefetch = 0 : i64, scratch_operands = 0 : i64, tpu.core_type = #tpu.core_type<tc>, window_params = [{transform_indices = @transform_0, window_bounds = array<i64: 64, 128>}, {pipeline_mode = #tpu.pipeline_mode<synchronous>, transform_indices = @transform_1, window_bounds = array<i64: 1, 128>}, {pipeline_mode = #tpu.pipeline_mode<synchronous>, transform_indices = @transform_2, window_bounds = array<i64: 1, 128>}, {pipeline_mode = #tpu.pipeline_mode<synchronous>, transform_indices = @transform_3, window_bounds = array<i64: 128, 128>}, {pipeline_mode = #tpu.pipeline_mode<synchronous>, transform_indices = @transform_4, window_bounds = array<i64: 1, 128>}, {transform_indices = @transform_5, window_bounds = array<i64: 64, 128>}, {transform_indices = @transform_6, window_bounds = array<i64: 1, 1, 256>}]} {
    %c0 = arith.constant 0 : index
    %c0_0 = arith.constant 0 : index
    %0 = vector.load %arg1[%c0, %c0_0] : memref<64x128xbf16, #tpu.memory_space<vmem>>, vector<64x128xbf16>
    %1 = arith.extf %0 : vector<64x128xbf16> to vector<64x128xf32>
    %2 = arith.truncf %1 : vector<64x128xf32> to vector<64x128xbf16>
    %c0_1 = arith.constant 0 : index
    %c0_2 = arith.constant 0 : index
    %3 = vector.load %arg4[%c0_1, %c0_2] : memref<128x128xbf16, #tpu.memory_space<vmem>>, vector<128x128xbf16>
    %cst = arith.constant dense<0.000000e+00> : vector<64x128xf32>
    %4 = tpu.matmul %2, %3, %cst {dimension_numbers = #tpu.dot_dimension_numbers<[1], [0], [0], [1], [0, 0, 1, 1], [], []>} : vector<64x128xbf16>, vector<128x128xbf16>, vector<64x128xf32> -> vector<64x128xf32>
    %c0_3 = arith.constant 0 : index
    %c0_4 = arith.constant 0 : index
    %5 = vector.load %arg5[%c0_3, %c0_4] : memref<1x128xf32, #tpu.memory_space<vmem>>, vector<1x128xf32>
    %6 = vector.broadcast %5 : vector<1x128xf32> to vector<64x128xf32>
    %7 = arith.addf %4, %6 : vector<64x128xf32>
    %8 = arith.truncf %7 : vector<64x128xf32> to vector<64x128xbf16>
    %c0_5 = arith.constant 0 : index
    %c0_6 = arith.constant 0 : index
    %9 = vector.load %arg6[%c0_5, %c0_6] : memref<64x128xbf16, #tpu.memory_space<vmem>>, vector<64x128xbf16>
    tpu.vector_store %arg6[%c0_5, %c0_6], %8 {strides = array<i32>} : memref<64x128xbf16, #tpu.memory_space<vmem>>, vector<64x128xbf16>,
    %cst_7 = arith.constant dense<0.000000e+00> : vector<128xf32>
    %10 = vector.multi_reduction <add>, %7, %cst_7 [0] : vector<64x128xf32> to vector<128xf32>
    %11 = vector.shape_cast %10 : vector<128xf32> to vector<1x128xf32>
    %12 = arith.mulf %7, %7 : vector<64x128xf32>
    %cst_8 = arith.constant dense<0.000000e+00> : vector<128xf32>
    %13 = vector.multi_reduction <add>, %12, %cst_8 [0] : vector<64x128xf32> to vector<128xf32>
    %14 = vector.shape_cast %13 : vector<128xf32> to vector<1x128xf32>
    %15 = tpu.concatenate %11, %14 in 1 : vector<1x128xf32>, vector<1x128xf32> -> vector<1x256xf32>
    %16 = vector.shape_cast %15 : vector<1x256xf32> to vector<1x1x256xf32>
    %c0_9 = arith.constant 0 : index
    %c0_10 = arith.constant 0 : index
    %c0_11 = arith.constant 0 : index
    %17 = vector.load %arg7[%c0_9, %c0_10, %c0_11] : memref<1x1x256xf32, #tpu.memory_space<vmem>>, vector<1x1x256xf32>
    tpu.vector_store %arg7[%c0_9, %c0_10, %c0_11], %16 {strides = array<i32>} : memref<1x1x256xf32, #tpu.memory_space<vmem>>, vector<1x1x256xf32>,
    return
  }
  func.func @transform_0(%arg0: i32) -> (i32, i32) {
    %c0_i32 = arith.constant 0 : i32
    %c0_i32_0 = arith.constant 0 : i32
    return %arg0, %c0_i32 : i32, i32
  }
  func.func @transform_1(%arg0: i32) -> (i32, i32) {
    %c0_i32 = arith.constant 0 : i32
    %c0_i32_0 = arith.constant 0 : i32
    %c0_i32_1 = arith.constant 0 : i32
    return %c0_i32, %c0_i32_0 : i32, i32
  }
  func.func @transform_2(%arg0: i32) -> (i32, i32) {
    %c0_i32 = arith.constant 0 : i32
    %c0_i32_0 = arith.constant 0 : i32
    %c0_i32_1 = arith.constant 0 : i32
    return %c0_i32, %c0_i32_0 : i32, i32
  }
  func.func @transform_3(%arg0: i32) -> (i32, i32) {
    %c0_i32 = arith.constant 0 : i32
    %c0_i32_0 = arith.constant 0 : i32
    %c0_i32_1 = arith.constant 0 : i32
    return %c0_i32, %c0_i32_0 : i32, i32
  }
  func.func @transform_4(%arg0: i32) -> (i32, i32) {
    %c0_i32 = arith.constant 0 : i32
    %c0_i32_0 = arith.constant 0 : i32
    %c0_i32_1 = arith.constant 0 : i32
    return %c0_i32, %c0_i32_0 : i32, i32
  }
  func.func @transform_5(%arg0: i32) -> (i32, i32) {
    %c0_i32 = arith.constant 0 : i32
    %c0_i32_0 = arith.constant 0 : i32
    return %arg0, %c0_i32 : i32, i32
  }
  func.func @transform_6(%arg0: i32) -> (i32, i32, i32) {
    %c0_i32 = arith.constant 0 : i32
    %c0_i32_0 = arith.constant 0 : i32
    %c0_i32_1 = arith.constant 0 : i32
    return %arg0, %c0_i32, %c0_i32_0 : i32, i32, i32
  }
}

module attributes {stable_mosaic.version = 11 : i64} {
  func.func @_mm_kernel(%arg0: i32, %arg1: memref<64x128xbf16, #tpu.memory_space<vmem>>, %arg2: memref<1x128xf32, #tpu.memory_space<vmem>>, %arg3: memref<1x128xf32, #tpu.memory_space<vmem>>, %arg4: memref<128x128xbf16, #tpu.memory_space<vmem>>, %arg5: memref<1x128xf32, #tpu.memory_space<vmem>>, %arg6: memref<64x128xbf16, #tpu.memory_space<vmem>>, %arg7: memref<1x1x256xf32, #tpu.memory_space<vmem>>) attributes {dimension_semantics = [#tpu.dimension_semantics<parallel>], iteration_bounds = array<i64: 1>, scalar_prefetch = 0 : i64, scratch_operands = 0 : i64, tpu.core_type = #tpu.core_type<tc>, window_params = [{transform_indices = @transform_0, window_bounds = array<i64: 64, 128>}, {pipeline_mode = #tpu.pipeline_mode<synchronous>, transform_indices = @transform_1, window_bounds = array<i64: 1, 128>}, {pipeline_mode = #tpu.pipeline_mode<synchronous>, transform_indices = @transform_2, window_bounds = array<i64: 1, 128>}, {pipeline_mode = #tpu.pipeline_mode<synchronous>, transform_indices = @transform_3, window_bounds = array<i64: 128, 128>}, {pipeline_mode = #tpu.pipeline_mode<synchronous>, transform_indices = @transform_4, window_bounds = array<i64: 1, 128>}, {transform_indices = @transform_5, window_bounds = array<i64: 64, 128>}, {transform_indices = @transform_6, window_bounds = array<i64: 1, 1, 256>}]} {
    %c0 = arith.constant 0 : index
    %c0_0 = arith.constant 0 : index
    %0 = vector.load %arg1[%c0, %c0_0] : memref<64x128xbf16, #tpu.memory_space<vmem>>, vector<64x128xbf16>
    %1 = arith.extf %0 : vector<64x128xbf16> to vector<64x128xf32>
    %c0_1 = arith.constant 0 : index
    %c0_2 = arith.constant 0 : index
    %2 = vector.load %arg2[%c0_1, %c0_2] : memref<1x128xf32, #tpu.memory_space<vmem>>, vector<1x128xf32>
    %3 = vector.broadcast %2 : vector<1x128xf32> to vector<64x128xf32>
    %4 = arith.mulf %1, %3 : vector<64x128xf32>
    %c0_3 = arith.constant 0 : index
    %c0_4 = arith.constant 0 : index
    %5 = vector.load %arg3[%c0_3, %c0_4] : memref<1x128xf32, #tpu.memory_space<vmem>>, vector<1x128xf32>
    %6 = vector.broadcast %5 : vector<1x128xf32> to vector<64x128xf32>
    %7 = arith.addf %4, %6 : vector<64x128xf32>
    %cst = arith.constant 0.000000e+00 : f32
    %8 = vector.broadcast %cst : f32 to vector<64x128xf32>
    %9 = arith.maximumf %7, %8 : vector<64x128xf32>
    %10 = arith.truncf %9 : vector<64x128xf32> to vector<64x128xbf16>
    %c0_5 = arith.constant 0 : index
    %c0_6 = arith.constant 0 : index
    %11 = vector.load %arg4[%c0_5, %c0_6] : memref<128x128xbf16, #tpu.memory_space<vmem>>, vector<128x128xbf16>
    %cst_7 = arith.constant dense<0.000000e+00> : vector<64x128xf32>
    %12 = tpu.matmul %10, %11, %cst_7 {dimension_numbers = #tpu.dot_dimension_numbers<[1], [0], [0], [1], [0, 0, 1, 1], [], []>} : vector<64x128xbf16>, vector<128x128xbf16>, vector<64x128xf32> -> vector<64x128xf32>
    %c0_8 = arith.constant 0 : index
    %c0_9 = arith.constant 0 : index
    %13 = vector.load %arg5[%c0_8, %c0_9] : memref<1x128xf32, #tpu.memory_space<vmem>>, vector<1x128xf32>
    %14 = vector.broadcast %13 : vector<1x128xf32> to vector<64x128xf32>
    %15 = arith.addf %12, %14 : vector<64x128xf32>
    %16 = arith.truncf %15 : vector<64x128xf32> to vector<64x128xbf16>
    %c0_10 = arith.constant 0 : index
    %c0_11 = arith.constant 0 : index
    %17 = vector.load %arg6[%c0_10, %c0_11] : memref<64x128xbf16, #tpu.memory_space<vmem>>, vector<64x128xbf16>
    tpu.vector_store %arg6[%c0_10, %c0_11], %16 {strides = array<i32>} : memref<64x128xbf16, #tpu.memory_space<vmem>>, vector<64x128xbf16>,
    %cst_12 = arith.constant dense<0.000000e+00> : vector<128xf32>
    %18 = vector.multi_reduction <add>, %15, %cst_12 [0] : vector<64x128xf32> to vector<128xf32>
    %19 = vector.shape_cast %18 : vector<128xf32> to vector<1x128xf32>
    %20 = arith.mulf %15, %15 : vector<64x128xf32>
    %cst_13 = arith.constant dense<0.000000e+00> : vector<128xf32>
    %21 = vector.multi_reduction <add>, %20, %cst_13 [0] : vector<64x128xf32> to vector<128xf32>
    %22 = vector.shape_cast %21 : vector<128xf32> to vector<1x128xf32>
    %23 = tpu.concatenate %19, %22 in 1 : vector<1x128xf32>, vector<1x128xf32> -> vector<1x256xf32>
    %24 = vector.shape_cast %23 : vector<1x256xf32> to vector<1x1x256xf32>
    %c0_14 = arith.constant 0 : index
    %c0_15 = arith.constant 0 : index
    %c0_16 = arith.constant 0 : index
    %25 = vector.load %arg7[%c0_14, %c0_15, %c0_16] : memref<1x1x256xf32, #tpu.memory_space<vmem>>, vector<1x1x256xf32>
    tpu.vector_store %arg7[%c0_14, %c0_15, %c0_16], %24 {strides = array<i32>} : memref<1x1x256xf32, #tpu.memory_space<vmem>>, vector<1x1x256xf32>,
    return
  }
  func.func @transform_0(%arg0: i32) -> (i32, i32) {
    %c0_i32 = arith.constant 0 : i32
    %c0_i32_0 = arith.constant 0 : i32
    return %arg0, %c0_i32 : i32, i32
  }
  func.func @transform_1(%arg0: i32) -> (i32, i32) {
    %c0_i32 = arith.constant 0 : i32
    %c0_i32_0 = arith.constant 0 : i32
    %c0_i32_1 = arith.constant 0 : i32
    return %c0_i32, %c0_i32_0 : i32, i32
  }
  func.func @transform_2(%arg0: i32) -> (i32, i32) {
    %c0_i32 = arith.constant 0 : i32
    %c0_i32_0 = arith.constant 0 : i32
    %c0_i32_1 = arith.constant 0 : i32
    return %c0_i32, %c0_i32_0 : i32, i32
  }
  func.func @transform_3(%arg0: i32) -> (i32, i32) {
    %c0_i32 = arith.constant 0 : i32
    %c0_i32_0 = arith.constant 0 : i32
    %c0_i32_1 = arith.constant 0 : i32
    return %c0_i32, %c0_i32_0 : i32, i32
  }
  func.func @transform_4(%arg0: i32) -> (i32, i32) {
    %c0_i32 = arith.constant 0 : i32
    %c0_i32_0 = arith.constant 0 : i32
    %c0_i32_1 = arith.constant 0 : i32
    return %c0_i32, %c0_i32_0 : i32, i32
  }
  func.func @transform_5(%arg0: i32) -> (i32, i32) {
    %c0_i32 = arith.constant 0 : i32
    %c0_i32_0 = arith.constant 0 : i32
    return %arg0, %c0_i32 : i32, i32
  }
  func.func @transform_6(%arg0: i32) -> (i32, i32, i32) {
    %c0_i32 = arith.constant 0 : i32
    %c0_i32_0 = arith.constant 0 : i32
    %c0_i32_1 = arith.constant 0 : i32
    return %arg0, %c0_i32, %c0_i32_0 : i32, i32, i32
  }
}

module attributes {stable_mosaic.version = 11 : i64} {
  func.func @_conv_maxpool_kernel(%arg0: i32, %arg1: i32, %arg2: memref<1x64x128xbf16, #tpu.memory_space<vmem>>, %arg3: memref<1x128xf32, #tpu.memory_space<vmem>>, %arg4: memref<1x128xf32, #tpu.memory_space<vmem>>, %arg5: memref<128x1024xbf16, #tpu.memory_space<vmem>>, %arg6: memref<1x1024xf32, #tpu.memory_space<vmem>>, %arg7: memref<1x1x1024xf32, #tpu.memory_space<vmem>>) attributes {dimension_semantics = [#tpu.dimension_semantics<parallel>, #tpu.dimension_semantics<arbitrary>], iteration_bounds = array<i64: 2, 1>, scalar_prefetch = 0 : i64, scratch_operands = 0 : i64, tpu.core_type = #tpu.core_type<tc>, window_params = [{transform_indices = @transform_0, window_bounds = array<i64: 1, 64, 128>}, {pipeline_mode = #tpu.pipeline_mode<synchronous>, transform_indices = @transform_1, window_bounds = array<i64: 1, 128>}, {pipeline_mode = #tpu.pipeline_mode<synchronous>, transform_indices = @transform_2, window_bounds = array<i64: 1, 128>}, {pipeline_mode = #tpu.pipeline_mode<synchronous>, transform_indices = @transform_3, window_bounds = array<i64: 128, 1024>}, {pipeline_mode = #tpu.pipeline_mode<synchronous>, transform_indices = @transform_4, window_bounds = array<i64: 1, 1024>}, {transform_indices = @transform_5, window_bounds = array<i64: 1, 1, 1024>}]} {
    %c0_i32 = arith.constant 0 : i32
    %0 = arith.cmpi eq, %arg1, %c0_i32 : i32
    %1 = arith.extui %0 : i1 to i32
    %c0_i32_0 = arith.constant 0 : i32
    %2 = arith.cmpi ne, %1, %c0_i32_0 : i32
    scf.if %2 {
      %cst_19 = arith.constant 0xFF800000 : f32
      %28 = vector.broadcast %cst_19 : f32 to vector<1x1024xf32>
      %c0_20 = arith.constant 0 : index
      %c0_21 = arith.constant 0 : index
      %c0_22 = arith.constant 0 : index
      %29 = vector.load %arg7[%c0_20, %c0_21, %c0_22] : memref<1x1x1024xf32, #tpu.memory_space<vmem>>, vector<1x1x1024xf32>
      %30 = vector.shape_cast %29 : vector<1x1x1024xf32> to vector<1x1024xf32>
      %31 = vector.shape_cast %28 : vector<1x1024xf32> to vector<1x1x1024xf32>
      tpu.vector_store %arg7[%c0_20, %c0_21, %c0_22], %31 {strides = array<i32>} : memref<1x1x1024xf32, #tpu.memory_space<vmem>>, vector<1x1x1024xf32>,
    } else {
    }
    %c0 = arith.constant 0 : index
    %c0_1 = arith.constant 0 : index
    %c0_2 = arith.constant 0 : index
    %3 = vector.load %arg2[%c0, %c0_1, %c0_2] : memref<1x64x128xbf16, #tpu.memory_space<vmem>>, vector<1x64x128xbf16>
    %4 = vector.shape_cast %3 : vector<1x64x128xbf16> to vector<64x128xbf16>
    %5 = arith.extf %4 : vector<64x128xbf16> to vector<64x128xf32>
    %c0_3 = arith.constant 0 : index
    %c0_4 = arith.constant 0 : index
    %6 = vector.load %arg3[%c0_3, %c0_4] : memref<1x128xf32, #tpu.memory_space<vmem>>, vector<1x128xf32>
    %7 = vector.broadcast %6 : vector<1x128xf32> to vector<64x128xf32>
    %8 = arith.mulf %5, %7 : vector<64x128xf32>
    %c0_5 = arith.constant 0 : index
    %c0_6 = arith.constant 0 : index
    %9 = vector.load %arg4[%c0_5, %c0_6] : memref<1x128xf32, #tpu.memory_space<vmem>>, vector<1x128xf32>
    %10 = vector.broadcast %9 : vector<1x128xf32> to vector<64x128xf32>
    %11 = arith.addf %8, %10 : vector<64x128xf32>
    %cst = arith.constant 0.000000e+00 : f32
    %12 = vector.broadcast %cst : f32 to vector<64x128xf32>
    %13 = arith.maximumf %11, %12 : vector<64x128xf32>
    %14 = arith.truncf %13 : vector<64x128xf32> to vector<64x128xbf16>
    %c0_7 = arith.constant 0 : index
    %c0_8 = arith.constant 0 : index
    %15 = vector.load %arg5[%c0_7, %c0_8] : memref<128x1024xbf16, #tpu.memory_space<vmem>>, vector<128x1024xbf16>
    %cst_9 = arith.constant dense<0.000000e+00> : vector<64x1024xf32>
    %16 = tpu.matmul %14, %15, %cst_9 {dimension_numbers = #tpu.dot_dimension_numbers<[1], [0], [0], [1], [0, 0, 1, 1], [], []>} : vector<64x128xbf16>, vector<128x1024xbf16>, vector<64x1024xf32> -> vector<64x1024xf32>
    %c0_10 = arith.constant 0 : index
    %c0_11 = arith.constant 0 : index
    %17 = vector.load %arg6[%c0_10, %c0_11] : memref<1x1024xf32, #tpu.memory_space<vmem>>, vector<1x1024xf32>
    %18 = vector.broadcast %17 : vector<1x1024xf32> to vector<64x1024xf32>
    %19 = arith.addf %16, %18 : vector<64x1024xf32>
    %c0_12 = arith.constant 0 : index
    %c0_13 = arith.constant 0 : index
    %c0_14 = arith.constant 0 : index
    %20 = vector.load %arg7[%c0_12, %c0_13, %c0_14] : memref<1x1x1024xf32, #tpu.memory_space<vmem>>, vector<1x1x1024xf32>
    %21 = vector.shape_cast %20 : vector<1x1x1024xf32> to vector<1x1024xf32>
    %cst_15 = arith.constant dense<0xFF800000> : vector<1024xf32>
    %22 = vector.multi_reduction <maximumf>, %19, %cst_15 [0] : vector<64x1024xf32> to vector<1024xf32>
    %23 = vector.shape_cast %22 : vector<1024xf32> to vector<1x1024xf32>
    %24 = arith.maximumf %21, %23 : vector<1x1024xf32>
    %c0_16 = arith.constant 0 : index
    %c0_17 = arith.constant 0 : index
    %c0_18 = arith.constant 0 : index
    %25 = vector.load %arg7[%c0_16, %c0_17, %c0_18] : memref<1x1x1024xf32, #tpu.memory_space<vmem>>, vector<1x1x1024xf32>
    %26 = vector.shape_cast %25 : vector<1x1x1024xf32> to vector<1x1024xf32>
    %27 = vector.shape_cast %24 : vector<1x1024xf32> to vector<1x1x1024xf32>
    tpu.vector_store %arg7[%c0_16, %c0_17, %c0_18], %27 {strides = array<i32>} : memref<1x1x1024xf32, #tpu.memory_space<vmem>>, vector<1x1x1024xf32>,
    return
  }
  func.func @transform_0(%arg0: i32, %arg1: i32) -> (i32, i32, i32) {
    %c0_i32 = arith.constant 0 : i32
    %c0_i32_0 = arith.constant 0 : i32
    return %arg0, %arg1, %c0_i32 : i32, i32, i32
  }
  func.func @transform_1(%arg0: i32, %arg1: i32) -> (i32, i32) {
    %c0_i32 = arith.constant 0 : i32
    %c0_i32_0 = arith.constant 0 : i32
    %c0_i32_1 = arith.constant 0 : i32
    return %c0_i32, %c0_i32_0 : i32, i32
  }
  func.func @transform_2(%arg0: i32, %arg1: i32) -> (i32, i32) {
    %c0_i32 = arith.constant 0 : i32
    %c0_i32_0 = arith.constant 0 : i32
    %c0_i32_1 = arith.constant 0 : i32
    return %c0_i32, %c0_i32_0 : i32, i32
  }
  func.func @transform_3(%arg0: i32, %arg1: i32) -> (i32, i32) {
    %c0_i32 = arith.constant 0 : i32
    %c0_i32_0 = arith.constant 0 : i32
    %c0_i32_1 = arith.constant 0 : i32
    return %c0_i32, %c0_i32_0 : i32, i32
  }
  func.func @transform_4(%arg0: i32, %arg1: i32) -> (i32, i32) {
    %c0_i32 = arith.constant 0 : i32
    %c0_i32_0 = arith.constant 0 : i32
    %c0_i32_1 = arith.constant 0 : i32
    return %c0_i32, %c0_i32_0 : i32, i32
  }
  func.func @transform_5(%arg0: i32, %arg1: i32) -> (i32, i32, i32) {
    %c0_i32 = arith.constant 0 : i32
    %c0_i32_0 = arith.constant 0 : i32
    %c0_i32_1 = arith.constant 0 : i32
    return %arg0, %c0_i32, %c0_i32_0 : i32, i32, i32
  }
}

</mosaic_0001>

<bundles_post_ra>
// kernel: momentum_transform_forward.11
= control target key start
LH: loop header
LB: loop body
LE: loop exit
PB: predicated region body
PF: predicated region fallthrough
CT: control target
= control target key end

     0   :  { %vm56_vm0 = vcmask 1042432   ;;  %vm43_vm1 = vcmask 48128   ;;  %v294_v62 = vmov 1966171168   ;;  %s379_s1 = inlined_call_operand.vmem [shape: f32[1,6], index: 1, kind: input, shape index: {}]   ;;  %s380_s2 = inlined_call_operand.vmem [shape: f32[1,6], index: 2, kind: input, shape index: {}]   ;;  %s381_s3 = inlined_call_operand.vmem [shape: bf16[6,128], index: 3, kind: input, shape index: {}]   ;;  %s382_s0 = inlined_call_operand.vmem [shape: f32[64,6], index: 0, kind: input, shape index: {}]   ;;  %s383_s4 = inlined_call_operand.vmem [shape: f32[1,128], index: 4, kind: input, shape index: {}]   ;;  %s384_s5 = inlined_call_operand.vmem [shape: bf16[64,128], index: 5, kind: output, shape index: {0}]   ;;  %s385_s6 = inlined_call_operand.vmem [shape: f32[1,1,256], index: 6, kind: output, shape index: {1}]  }
   0x1   :  { %v35_v0 = vld [vmem:[%s381_s3] sm:$0x7]  ;;  %v24_v2 = vld [vmem:[%s382_s0 + $0x8] sm:$0xff]  ;;  %v25_v5 = vld [vmem:[%s382_s0 + $0x10] sm:$0xff]  ;;  %v203_v63 = vunpack.c.l.s4 %v294_v62 }
   0x2   :  { %v23_v1 = vld [vmem:[%s382_s0] sm:$0xff]  ;;  %291 = vmatprep.subr.msk.bf16.mxu0 %vm56_vm0, %v35_v0  ;;  %v58_v3 = vsel %vm56_vm0, %v35_v0, 0  ;;  %292 = vmatprep.subr.msk.bf16.mxu1 %vm56_vm0, %v35_v0  ;;  %v26_v6 = vld [vmem:[%s382_s0 + $0x18] sm:$0xff]  ;;  %v28_v9 = vld [vmem:[%s382_s0 + $0x28] sm:$0xff]  ;;  %v205_v0 = vlaneseq }
   0x3   :  { %v31_v4 = vpack.c.bf16 %v24_v2, %v23_v1  ;;  %v27_v7 = vld [vmem:[%s382_s0 + $0x20] sm:$0xff]  ;;  %280 = vmatpush3.bf16.msra.mxu0 %v58_v3  ;;  %290 = vmatpush3.bf16.msra.mxu1 %v58_v3  ;;  %v32_v8 = vpack.c.bf16 %v26_v6, %v25_v5  ;;  %v29_v10 = vld [vmem:[%s382_s0 + $0x30] sm:$0xff]  ;;  %v30_v11 = vld [vmem:[%s382_s0 + $0x38] sm:$0xff]  ;;  %v204_v5 = vunpack.c.0.s8 %v203_v63 }
   0x4   :  { %v33_v12 = vpack.c.bf16 %v28_v9, %v27_v7  ;;  %v34_v13 = vpack.c.bf16 %v30_v11, %v29_v10  ;;  %v230_v16 = vld [vmem:[%s383_s4] ss:$0 sm:$0xff]  ;;  %v206_v6 = vshrl.u32 %v205_v0, 7  ;;  %vm219_vm2 = vcmp.lt.s32.totalorder %v205_v0, 256 }
   0x5   :  { %281 = vmatprep.mubr.msk.bf16.mxu0 %vm43_vm1, %v31_v4 }
   0x6   :  { %282 = vmatmul.mubr.msk.bf16.vlgmr.msra.gmra.mxu0 %vm43_vm1, %v32_v8  ;;  %285 = vmatprep.mubr.msk.bf16.mxu1 %vm43_vm1, %v33_v12  ;;  %v207_v10 = vsub.s32 %v204_v5, %v206_v6 }
   0x7   :  { %286 = vmatmul.mubr.msk.bf16.vlgmr.msra.gmra.mxu1 %vm43_vm1, %v34_v13 }
  0xc6   :  { %v283_v14 = vpop.f32.mrf.mxu0 }
  0xc7   :  { %v287_v15 = vpop.f32.mrf.mxu1  ;;  %v103_v21 = vadd.f32 %v283_v14, %v230_v16 }
  0xc8   :  { %v94_v17 = vpop.f32.mrf.mxu0  ;;  %v119_v19 = vadd.f32 %v287_v15, %v230_v16 }
  0xc9   :  { %v110_v18 = vpop.f32.mrf.mxu1  ;;  %v95_v22 = vadd.f32 %v230_v16, %v94_v17  ;;  %v180_v38 = vmul.f32 %v103_v21, %v103_v21 }
  0xca   :  { %v284_v20 = vpop.f32.mrf.mxu0  ;;  %v111_v25 = vadd.f32 %v230_v16, %v110_v18  ;;  %v184_v50 = vmul.f32 %v119_v19, %v119_v19 }
  0xcb   :  { %v106_v23 = vadd.f32 %v284_v20, %v230_v16  ;;  %v288_v24 = vpop.f32.mrf.mxu1  ;;  %v178_v33 = vmul.f32 %v95_v22, %v95_v22 }
  0xcc   :  { %v97_v26 = vpop.f32.mrf.mxu0  ;;  %v122_v27 = vadd.f32 %v288_v24, %v230_v16  ;;  %v182_v44 = vmul.f32 %v111_v25, %v111_v25 }
  0xcd   :  { %v259_v28 = vpack.c.bf16 %v106_v23, %v103_v21  ;;  %v98_v29 = vadd.f32 %v230_v16, %v97_v26  ;;  %v113_v30 = vpop.f32.mrf.mxu1  ;;  %v181_v41 = vmul.f32 %v106_v23, %v106_v23 }
  0xce   :  { %v269_v31 = vpack.c.bf16 %v122_v27, %v119_v19  ;;  %v114_v32 = vadd.f32 %v230_v16, %v113_v30  ;;  %v185_v53 = vmul.f32 %v122_v27, %v122_v27 }
  0xcf   :  { %271 = vst [vmem:[%s384_s5 + $0x8] sm:$0xff] %v259_v28   ;;  %v254_v34 = vpack.c.bf16 %v98_v29, %v95_v22  ;;  %v165_v35 = vadd.f32 %v98_v29, %v95_v22  ;;  %v179_v36 = vmul.f32 %v98_v29, %v98_v29 }
  0xd0   :  { %273 = vst [vmem:[%s384_s5 + $0x18] sm:$0xff] %v269_v31   ;;  %v264_v37 = vpack.c.bf16 %v114_v32, %v111_v25  ;;  %v183_v48 = vmul.f32 %v114_v32, %v114_v32 }
  0xd1   :  { %255 = vst [vmem:[%s384_s5] sm:$0xff] %v254_v34   ;;  %v166_v39 = vadd.f32 %v165_v35, %v103_v21  ;;  %v186_v40 = vadd.f32 %v179_v36, %v178_v33 }
  0xd2   :  { %272 = vst [vmem:[%s384_s5 + $0x10] sm:$0xff] %v264_v37  }
  0xd3   :  { %v187_v42 = vadd.f32 %v186_v40, %v180_v38  ;;  %v167_v43 = vadd.f32 %v166_v39, %v106_v23 }
  0xd5   :  { %v168_v45 = vadd.f32 %v167_v43, %v111_v25  ;;  %v188_v46 = vadd.f32 %v187_v42, %v181_v41 }
  0xd7   :  { %v169_v47 = vadd.f32 %v168_v45, %v114_v32  ;;  %v189_v49 = vadd.f32 %v188_v46, %v182_v44 }
  0xd9   :  { %v170_v51 = vadd.f32 %v169_v47, %v119_v19  ;;  %v190_v52 = vadd.f32 %v189_v49, %v183_v48 }
  0xdb   :  { %v171_v54 = vadd.f32 %v170_v51, %v122_v27  ;;  %v191_v55 = vadd.f32 %v190_v52, %v184_v50 }
  0xdd   :  { %v172_v56 = vrot.slane %v171_v54, 4  ;;  %v192_v57 = vadd.f32 %v191_v55, %v185_v53 }
  0xdf   :  { %v173_v58 = vadd.f32 %v172_v56, %v171_v54  ;;  %v193_v59 = vrot.slane %v192_v57, 4 }
  0xe1   :  { %v174_v60 = vrot.slane %v173_v58, 2  ;;  %v194_v61 = vadd.f32 %v193_v59, %v192_v57 }
  0xe3   :  { %v175_v1 = vadd.f32 %v174_v60, %v173_v58  ;;  %v195_v2 = vrot.slane %v194_v61, 2 }
  0xe5   :  { %v176_v3 = vrot.slane %v175_v1, 1  ;;  %v196_v4 = vadd.f32 %v195_v2, %v194_v61 }
  0xe7   :  { %v197_v7 = vrot.slane %v196_v4, 1  ;;  %v177_v8 = vadd.f32 %v176_v3, %v175_v1 }
  0xe9   :  { %v198_v9 = vadd.f32 %v197_v7, %v196_v4 }
  0xeb   :  { %v201_v11 = vcombine.low %v177_v8, %v198_v9 }
  0xed   :  { %v208_v12 = vrot.slane %v201_v11, %v207_v10 }
  0xef   :  { %v215_v13 = vrot.slane %v208_v12, %v207_v10 }
  0xf1   :  { %221 = vst.msk [vmem:[%s385_s6] sm:$0x3] %vm219_vm2, %v215_v13 }

// kernel: momentum_transform_forward.12
= control target key start
LH: loop header
LB: loop body
LE: loop exit
PB: predicated region body
PF: predicated region fallthrough
CT: control target
= control target key end

     0   :  { %v523_v1 = vmov 0   ;;  %v99_v59 = vlaneseq  ;;  %s673_s3 = inlined_call_operand.vmem [shape: bf16[128,256], index: 3, kind: input, shape index: {}]   ;;  %s674_s0 = inlined_call_operand.vmem [shape: bf16[64,128], index: 0, kind: input, shape index: {}]   ;;  %s675_s1 = inlined_call_operand.vmem [shape: f32[1,128], index: 1, kind: input, shape index: {}]   ;;  %s676_s2 = inlined_call_operand.vmem [shape: f32[1,128], index: 2, kind: input, shape index: {}]   ;;  %s677_s4 = inlined_call_operand.vmem [shape: f32[1,256], index: 4, kind: input, shape index: {}]   ;;  %s678_s5 = inlined_call_operand.vmem [shape: bf16[64,256], index: 5, kind: output, shape index: {0}]   ;;  %s679_s6 = inlined_call_operand.vmem [shape: f32[1,1,512], index: 6, kind: output, shape index: {1}]  }
   0x1   :  { %v499_v0 = vld [vmem:[%s673_s3 + $0x74] ss:$8 sps:$4 sm:$0xff]   ;;  %221 = vmatprep.mubr.bf16.mxu0 %v523_v1  ;;  %241 = vmatprep.mubr.bf16.mxu1 %v523_v1  ;;  %v501_v2 = vld [vmem:[%s673_s3 + $0x70] ss:$8 sps:$4 sm:$0xff]   ;;  %v502_v3 = vld [vmem:[%s673_s3 + $0x64] ss:$8 sps:$4 sm:$0xff]  }
   0x2   :  { %189 = vmatprep.subr.bf16.mxu0 %v499_v0  ;;  %481 = vmatprep.subr.bf16.mxu1 %v499_v0  ;;  %v504_v4 = vld [vmem:[%s673_s3 + $0x60] ss:$8 sps:$4 sm:$0xff]   ;;  %v505_v5 = vld [vmem:[%s673_s3 + $0x54] ss:$8 sps:$4 sm:$0xff]   ;;  %v507_v6 = vld [vmem:[%s673_s3 + $0x50] ss:$8 sps:$4 sm:$0xff]  }
   0x3   :  { %190 = vmatpush1.bf16.msra.mxu0 %v501_v2  ;;  %489 = vmatpush1.bf16.msra.mxu1 %v501_v2  ;;  %v508_v7 = vld [vmem:[%s673_s3 + $0x44] ss:$8 sps:$4 sm:$0xff]   ;;  %v510_v9 = vld [vmem:[%s673_s3 + $0x40] ss:$8 sps:$4 sm:$0xff]   ;;  %v479_v10 = vld [vmem:[%s674_s0 + $0x10] sm:$0xff]   ;;  %v631_v60 = vshrl.u32 %v99_v59, 7 }
   0x4   :  { %191 = vmatprep.subr.bf16.mxu0 %v502_v3  ;;  %482 = vmatprep.subr.bf16.mxu1 %v502_v3  ;;  %v463_v8 = vld [vmem:[%s674_s0] sm:$0xff]   ;;  %v511_v11 = vld [vmem:[%s673_s3 + $0x34] ss:$8 sps:$4 sm:$0xff]   ;;  %v472_v15 = vunpack.c.l.bf16 %v479_v10  ;;  %v473_v16 = vunpack.c.h.bf16 %v479_v10  ;;  %v513_v17 = vld [vmem:[%s673_s3 + $0x30] ss:$8 sps:$4 sm:$0xff]   ;;  %vm417_vm0 = vcmp.lt.s32.totalorder %v99_v59, 512 }
   0x5   :  { %v464_v12 = vunpack.c.l.bf16 %v463_v8  ;;  %v465_v13 = vunpack.c.h.bf16 %v463_v8  ;;  %v428_v14 = vld [vmem:[%s675_s1] ss:$0 sm:$0xff]  ;;  %v514_v18 = vld [vmem:[%s673_s3 + $0x24] ss:$8 sps:$4 sm:$0xff]   ;;  %v480_v26 = vld [vmem:[%s674_s0 + $0x18] sm:$0xff]   ;;  %v101_v61 = vsub.s32 0, %v631_v60 }
   0x6   :  { %v429_v21 = vld [vmem:[%s676_s2] ss:$0 sm:$0xff]  ;;  %v50_v22 = vmul.f32 %v472_v15, %v428_v14  ;;  %v51_v23 = vmul.f32 %v473_v16, %v428_v14  ;;  %v478_v24 = vld [vmem:[%s674_s0 + $0x8] sm:$0xff]   ;;  %v517_v27 = vld [vmem:[%s673_s3 + $0x14] ss:$8 sps:$4 sm:$0xff]   ;;  %v476_v34 = vunpack.c.l.bf16 %v480_v26  ;;  %v477_v35 = vunpack.c.h.bf16 %v480_v26 }
   0x7   :  { %192 = vmatpush1.bf16.msra.mxu0 %v504_v4  ;;  %490 = vmatpush1.bf16.msra.mxu1 %v504_v4  ;;  %v46_v19 = vmul.f32 %v464_v12, %v428_v14  ;;  %v47_v20 = vmul.f32 %v465_v13, %v428_v14  ;;  %v516_v25 = vld [vmem:[%s673_s3 + $0x20] ss:$8 sps:$4 sm:$0xff]   ;;  %v468_v30 = vunpack.c.l.bf16 %v478_v24  ;;  %v469_v31 = vunpack.c.h.bf16 %v478_v24  ;;  %v519_v36 = vld [vmem:[%s673_s3 + $0x10] ss:$8 sps:$4 sm:$0xff]   ;;  %v520_v37 = vld [vmem:[%s673_s3 + $0x4] ss:$8 sps:$4 sm:$0xff]  }
   0x8   :  { %193 = vmatprep.subr.bf16.mxu0 %v505_v5  ;;  %483 = vmatprep.subr.bf16.mxu1 %v505_v5  ;;  %v65_v32 = vadd.f32 %v429_v21, %v50_v22  ;;  %v66_v33 = vadd.f32 %v429_v21, %v51_v23  ;;  %v52_v44 = vmul.f32 %v476_v34, %v428_v14  ;;  %v522_v46 = vld [vmem:[%s673_s3] ss:$8 sps:$4 sm:$0xff]   ;;  %v105_v62 = vsub.s32 1, %v631_v60 }
   0x9   :  { %v61_v28 = vadd.f32 %v429_v21, %v46_v19  ;;  %v62_v29 = vadd.f32 %v429_v21, %v47_v20  ;;  %v48_v40 = vmul.f32 %v468_v30, %v428_v14  ;;  %v49_v41 = vmul.f32 %v469_v31, %v428_v14  ;;  %v97_v63 = vld [vmem:[%s677_s4] sm:$0x3] }
   0xa   :  { %v73_v42 = vmax.f32 %v65_v32, 0.0  ;;  %v74_v43 = vmax.f32 %v66_v33, 0.0  ;;  %v53_v45 = vmul.f32 %v477_v35, %v428_v14  ;;  %v67_v51 = vadd.f32 %v429_v21, %v52_v44 }
   0xb   :  { %194 = vmatpush1.bf16.msra.mxu0 %v507_v6  ;;  %491 = vmatpush1.bf16.msra.mxu1 %v507_v6  ;;  %v69_v38 = vmax.f32 %v61_v28, 0.0  ;;  %v70_v39 = vmax.f32 %v62_v29, 0.0  ;;  %v63_v47 = vadd.f32 %v429_v21, %v48_v40  ;;  %v64_v48 = vadd.f32 %v429_v21, %v49_v41 }
   0xc   :  { %195 = vmatprep.subr.bf16.mxu0 %v508_v7  ;;  %484 = vmatprep.subr.bf16.mxu1 %v508_v7  ;;  %v79_v50 = vpack.c.bf16 %v74_v43, %v73_v42  ;;  %v68_v52 = vadd.f32 %v429_v21, %v53_v45  ;;  %v75_v55 = vmax.f32 %v67_v51, 0.0  ;;  %v102_v0 = vrot.slane %v97_v63, %v101_v61 }
   0xd   :  { %v77_v49 = vpack.c.bf16 %v70_v39, %v69_v38  ;;  %v71_v53 = vmax.f32 %v63_v47, 0.0  ;;  %v72_v54 = vmax.f32 %v64_v48, 0.0  ;;  %v106_v2 = vrot.slane %v97_v63, %v105_v62 }
   0xe   :  { %v76_v56 = vmax.f32 %v68_v52, 0.0 }
   0xf   :  { %196 = vmatpush1.bf16.msra.mxu0 %v510_v9  ;;  %492 = vmatpush1.bf16.msra.mxu1 %v510_v9  ;;  %v78_v57 = vpack.c.bf16 %v72_v54, %v71_v53 }
  0x10   :  { %197 = vmatprep.subr.bf16.mxu0 %v511_v11  ;;  %485 = vmatprep.subr.bf16.mxu1 %v511_v11  ;;  %v80_v58 = vpack.c.bf16 %v76_v56, %v75_v55 }
  0x13   :  { %198 = vmatpush1.bf16.msra.mxu0 %v513_v17  ;;  %493 = vmatpush1.bf16.msra.mxu1 %v513_v17 }
  0x14   :  { %199 = vmatprep.subr.bf16.mxu0 %v514_v18  ;;  %486 = vmatprep.subr.bf16.mxu1 %v514_v18 }
  0x17   :  { %200 = vmatpush1.bf16.msra.mxu0 %v516_v25  ;;  %494 = vmatpush1.bf16.msra.mxu1 %v516_v25 }
  0x18   :  { %201 = vmatprep.subr.bf16.mxu0 %v517_v27  ;;  %487 = vmatprep.subr.bf16.mxu1 %v517_v27 }
  0x1b   :  { %202 = vmatpush1.bf16.msra.mxu0 %v519_v36  ;;  %495 = vmatpush1.bf16.msra.mxu1 %v519_v36 }
  0x1c   :  { %203 = vmatprep.subr.bf16.mxu0 %v520_v37  ;;  %488 = vmatprep.subr.bf16.mxu1 %v520_v37 }
  0x1f   :  { %204 = vmatpush1.bf16.msra.mxu0 %v522_v46  ;;  %496 = vmatpush1.bf16.msra.mxu1 %v522_v46 }
  0x22   :  { %222 = vmatmul.mubr.bf16.vlgmr.msra.gmra.mxu0 %v77_v49  ;;  %242 = vmatmul.mubr.bf16.vlgmr.msra.gmra.mxu1 %v79_v50 }
  0x23   :  { %231 = vmatprep.mubr.bf16.mxu0 %v523_v1  ;;  %251 = vmatprep.mubr.bf16.mxu1 %v523_v1 }
  0x2a   :  { %232 = vmatmul.mubr.bf16.gmra.mxu0 %v78_v57  ;;  %252 = vmatmul.mubr.bf16.gmra.mxu1 %v80_v58 }
  0xe2   :  { %v223_v3 = vpop.f32.mrf.mxu0  ;;  %v243_v1 = vpop.f32.mrf.mxu1 }
  0xe3   :  { %v244_v4 = vadd.f32 %v243_v1, %v102_v0  ;;  %v224_v7 = vadd.f32 %v223_v3, %v102_v0 }
  0xe4   :  { %v225_v5 = vpop.f32.mrf.mxu0  ;;  %v245_v6 = vpop.f32.mrf.mxu1 }
  0xe5   :  { %v226_v8 = vadd.f32 %v225_v5, %v106_v2  ;;  %v638_v9 = vadd.f32 %v245_v6, %v106_v2  ;;  %v344_v29 = vmul.f32 %v224_v7, %v224_v7  ;;  %v352_v53 = vmul.f32 %v244_v4, %v244_v4 }
  0xe6   :  { %v227_v10 = vpop.f32.mrf.mxu0  ;;  %v247_v11 = vpop.f32.mrf.mxu1 }
  0xe7   :  { %v454_v12 = vpack.c.bf16 %v226_v8, %v224_v7  ;;  %v228_v13 = vadd.f32 %v227_v10, %v102_v0  ;;  %v458_v14 = vpack.c.bf16 %v638_v9, %v244_v4  ;;  %v248_v16 = vadd.f32 %v247_v11, %v102_v0 }
  0xe8   :  { %v229_v15 = vpop.f32.mrf.mxu0  ;;  %v249_v17 = vpop.f32.mrf.mxu1  ;;  %v345_v33 = vmul.f32 %v226_v8, %v226_v8 }
  0xe9   :  { %310 = vst [vmem:[%s678_s5] sm:$0xff] %v454_v12  ;;  %314 = vst [vmem:[%s678_s5 + $0x20] sm:$0xff] %v458_v14  ;;  %v230_v18 = vadd.f32 %v229_v15, %v106_v2  ;;  %v250_v19 = vadd.f32 %v249_v17, %v106_v2  ;;  %v346_v22 = vmul.f32 %v228_v13, %v228_v13 }
  0xea   :  { %v233_v20 = vpop.f32.mrf.mxu0  ;;  %v253_v21 = vpop.f32.mrf.mxu1  ;;  %v318_v30 = vadd.f32 %v228_v13, %v224_v7  ;;  %v354_v3 = vmul.f32 %v248_v16, %v248_v16  ;;  %v353_v7 = vmul.f32 %v638_v9, %v638_v9 }
  0xeb   :  { %v455_v23 = vpack.c.bf16 %v230_v18, %v228_v13  ;;  %v234_v24 = vadd.f32 %v233_v20, %v102_v0  ;;  %v459_v25 = vpack.c.bf16 %v250_v19, %v248_v16  ;;  %v254_v27 = vadd.f32 %v253_v21, %v102_v0 }
  0xec   :  { %v235_v26 = vpop.f32.mrf.mxu0  ;;  %v255_v28 = vpop.f32.mrf.mxu1  ;;  %v331_v34 = vadd.f32 %v230_v18, %v226_v8  ;;  %v347_v35 = vmul.f32 %v230_v18, %v230_v18  ;;  %v360_v39 = vadd.f32 %v346_v22, %v344_v29  ;;  %v355_v12 = vmul.f32 %v250_v19, %v250_v19 }
  0xed   :  { %311 = vst [vmem:[%s678_s5 + $0x8] sm:$0xff] %v455_v23  ;;  %v236_v31 = vadd.f32 %v235_v26, %v106_v2  ;;  %v256_v32 = vadd.f32 %v255_v28, %v106_v2  ;;  %v348_v36 = vmul.f32 %v234_v24, %v234_v24  ;;  %315 = vst [vmem:[%s678_s5 + $0x28] sm:$0xff] %v459_v25 }
  0xee   :  { %v237_v37 = vpop.f32.mrf.mxu0  ;;  %v257_v38 = vpop.f32.mrf.mxu1  ;;  %v319_v40 = vadd.f32 %v318_v30, %v234_v24  ;;  %v373_v54 = vadd.f32 %v347_v35, %v345_v33 }
  0xef   :  { %v456_v41 = vpack.c.bf16 %v236_v31, %v234_v24  ;;  %v238_v42 = vadd.f32 %v237_v37, %v102_v0  ;;  %v332_v43 = vadd.f32 %v331_v34, %v236_v31  ;;  %v349_v44 = vmul.f32 %v236_v31, %v236_v31 }
  0xf0   :  { %v460_v45 = vpack.c.bf16 %v256_v32, %v254_v27  ;;  %v239_v46 = vpop.f32.mrf.mxu0  ;;  %v258_v47 = vadd.f32 %v257_v38, %v102_v0  ;;  %v259_v48 = vpop.f32.mrf.mxu1  ;;  %v361_v49 = vadd.f32 %v360_v39, %v348_v36  ;;  %v357_v20 = vmul.f32 %v256_v32, %v256_v32 }
  0xf1   :  { %312 = vst [vmem:[%s678_s5 + $0x10] sm:$0xff] %v456_v41  ;;  %v320_v50 = vadd.f32 %v319_v40, %v238_v42  ;;  %v350_v51 = vmul.f32 %v238_v42, %v238_v42  ;;  %v240_v52 = vadd.f32 %v239_v46, %v106_v2  ;;  %v260_v55 = vadd.f32 %v259_v48, %v106_v2 }
  0xf2   :  { %316 = vst [vmem:[%s678_s5 + $0x30] sm:$0xff] %v460_v45  ;;  %v374_v62 = vadd.f32 %v373_v54, %v349_v44  ;;  %v358_v15 = vmul.f32 %v258_v47, %v258_v47  ;;  %v524_v37 = vmov 1966171168  }
  0xf3   :  { %v321_v56 = vadd.f32 %v320_v50, %v244_v4  ;;  %v362_v57 = vadd.f32 %v361_v49, %v350_v51  ;;  %v457_v58 = vpack.c.bf16 %v240_v52, %v238_v42  ;;  %v333_v61 = vadd.f32 %v332_v43, %v240_v52 }
  0xf4   :  { %v351_v63 = vmul.f32 %v240_v52, %v240_v52  ;;  %v461_v0 = vpack.c.bf16 %v260_v55, %v258_v47  ;;  %v356_v4 = vmul.f32 %v254_v27, %v254_v27  ;;  %v359_v23 = vmul.f32 %v260_v55, %v260_v55 }
  0xf5   :  { %v363_v1 = vadd.f32 %v362_v57, %v352_v53  ;;  %313 = vst [vmem:[%s678_s5 + $0x18] sm:$0xff] %v457_v58  ;;  %v334_v5 = vadd.f32 %v333_v61, %v638_v9  ;;  %v322_v6 = vadd.f32 %v321_v56, %v248_v16 }
  0xf6   :  { %v375_v2 = vadd.f32 %v374_v62, %v351_v63  ;;  %317 = vst [vmem:[%s678_s5 + $0x38] sm:$0xff] %v461_v0 }
  0xf7   :  { %v323_v8 = vadd.f32 %v322_v6, %v254_v27  ;;  %v364_v10 = vadd.f32 %v363_v1, %v354_v3  ;;  %v335_v11 = vadd.f32 %v334_v5, %v250_v19 }
  0xf8   :  { %v376_v13 = vadd.f32 %v375_v2, %v353_v7 }
  0xf9   :  { %v324_v14 = vadd.f32 %v323_v8, %v258_v47  ;;  %v365_v17 = vadd.f32 %v364_v10, %v356_v4  ;;  %v336_v18 = vadd.f32 %v335_v11, %v256_v32  ;;  %v393_v32 = vunpack.c.l.s4 %v524_v37 }
  0xfa   :  { %v377_v16 = vadd.f32 %v376_v13, %v355_v12 }
  0xfb   :  { %v325_v21 = vrot.slane %v324_v14, 4  ;;  %v366_v22 = vadd.f32 %v365_v17, %v358_v15  ;;  %v337_v9 = vadd.f32 %v336_v18, %v260_v55  ;;  %v394_v45 = vunpack.c.0.s8 %v393_v32 }
  0xfc   :  { %v378_v24 = vadd.f32 %v377_v16, %v357_v20 }
  0xfd   :  { %v326_v25 = vadd.f32 %v325_v21, %v324_v14  ;;  %v367_v26 = vrot.slane %v366_v22, 4  ;;  %v338_v28 = vrot.slane %v337_v9, 4  ;;  %v397_v52 = vsub.s32 %v394_v45, %v631_v60 }
  0xfe   :  { %v379_v29 = vadd.f32 %v378_v24, %v359_v23 }
  0xff   :  { %v327_v27 = vrot.slane %v326_v25, 2  ;;  %v368_v30 = vadd.f32 %v367_v26, %v366_v22  ;;  %v339_v31 = vadd.f32 %v338_v28, %v337_v9 }
 0x100   :  { %v380_v19 = vrot.slane %v379_v29, 4 }
 0x101   :  { %v328_v33 = vadd.f32 %v327_v27, %v326_v25  ;;  %v369_v34 = vrot.slane %v368_v30, 2  ;;  %v340_v35 = vrot.slane %v339_v31, 2 }
 0x102   :  { %v381_v36 = vadd.f32 %v380_v19, %v379_v29 }
 0x103   :  { %v370_v38 = vadd.f32 %v369_v34, %v368_v30  ;;  %v341_v39 = vadd.f32 %v340_v35, %v339_v31  ;;  %v329_v40 = vrot.slane %v328_v33, 1 }
 0x104   :  { %v382_v41 = vrot.slane %v381_v36, 2 }
 0x105   :  { %v342_v42 = vrot.slane %v341_v39, 1  ;;  %v371_v43 = vrot.slane %v370_v38, 1  ;;  %v330_v47 = vadd.f32 %v329_v40, %v328_v33 }
 0x106   :  { %v383_v44 = vadd.f32 %v382_v41, %v381_v36 }
 0x107   :  { %v343_v46 = vadd.f32 %v342_v42, %v341_v39  ;;  %v372_v49 = vadd.f32 %v371_v43, %v370_v38 }
 0x108   :  { %v384_v48 = vrot.slane %v383_v44, 1 }
 0x109   :  { %v390_v51 = vcombine.low %v330_v47, %v343_v46 }
 0x10a   :  { %v385_v50 = vadd.f32 %v384_v48, %v383_v44 }
 0x10b   :  { %v398_v54 = vrot.slane %v390_v51, %v397_v52 }
 0x10c   :  { %v391_v53 = vcombine.low %v372_v49, %v385_v50 }
 0x10e   :  { %v405_v55 = vrot.slane %v391_v53, %v397_v52 }
 0x110   :  { %v406_v56 = vcombine.low %v398_v54, %v405_v55 }
 0x112   :  { %v413_v57 = vrot.slane %v406_v56, %v397_v52 }
 0x114   :  { %419 = vst.msk [vmem:[%s679_s6] sm:$0xf] %vm417_vm0, %v413_v57 }

// kernel: momentum_transform_forward.14
= control target key start
LH: loop header
LB: loop body
LE: loop exit
PB: predicated region body
PF: predicated region fallthrough
CT: control target
= control target key end

     0   :  { %s1066_s12 = smov 0   ;;  %s1068_s13 = smov 0   ;;  %s2112_s0 = inlined_call_operand.vmem [shape: bf16[2,64,1024], index: 0, kind: input, shape index: {}]   ;;  %s2113_s1 = inlined_call_operand.vmem [shape: f32[1,1,1024], index: 1, kind: input, shape index: {}]   ;;  %s2114_s2 = inlined_call_operand.vmem [shape: f32[1,1,1024], index: 2, kind: input, shape index: {}]   ;;  %s2115_s3 = inlined_call_operand.vmem [shape: f32[2,1024], index: 3, kind: output, shape index: {}]  }
   0x1   :  { %s1070_s14 = smov 0   ;;  %s1072_s15 = smov 0  }
   0x2   :  { %s1074_s16 = smov 0  }
   0x3 LB: > { %s28_s17 = sadd.s32 1, %s1039_s15  ;;  %p50_p1 = scmp.ne.s32.totalorder %s1031_s13, %s1027_s12  ;;  %s1043_s16 = sphi %s1074_s16, %s13_s16   ;;  %s1039_s15 = sphi %s1072_s15, %s2298_s15   ;;  %s1035_s14 = sphi %s1070_s14, %s2297_s14   ;;  %s1031_s13 = sphi %s1068_s13, %s2296_s13   ;;  %s1027_s12 = sphi %s1066_s12, %s2295_s12  }
   0x4   : > { %p30_p0 = scmp.ge.s32.totalorder %s28_s17, 2  ;;  %p51_p2 = scmp.eq.s32.totalorder %s1043_s16, 0 }
   0x5   : > { %s43_s19 = sadd.s32 1, %s1031_s13  ;;  %p950_p5 = scmp.ge.s32.totalorder %s1043_s16, 2 }
   0x6   : > { %s2300_s17 = smov (%p30_p0, %s28_s17), 0  ;;  %p52_p3 = por %p51_p2, %p50_p1 }
   0x7   : > { %s39_s18 = ssub.s32 %s1039_s15, %s2300_s17  ;;  %156 = sbr.rel (%p950_p5) target bundleno = 32 (0x20), region = 16 }
   0x8   : > { %p41_p4 = scmp.eq.s32.totalorder %s39_s18, 0 }
   0xa   : > { %s1101_s20 = scalar_select %p41_p4, %s1031_s13, %s43_s19  }
   0xc   : > { %159 = sbr.rel (!%p52_p3) target bundleno = 32 (0x20), region = 20  ;;  %s161_s21 = sand.u32 (%p52_p3), 1, %s1031_s13  }
   0xd   : > { %s962_s22 = sshll.u32 (%p52_p3), %s1039_s15, 4  ;;  %s951_s23 = sshll.u32 (%p52_p3), %s161_s21, 8 }
   0xe   : > { %s1109_s26 = scalar_lea.vmem (%p52_p3), %s2112_s0, %s962_s22  ;;  %s1114_s27 = scalar_lea.vmem (%p52_p3), [#allocation2], %s951_s23 }
   0xf   : > { %v185_v0 = vld [vmem:[%s1109_s26] sm:$0xff] (%p52_p3)  ;;  %v187_v1 = vld [vmem:[%s1109_s26 + $0x8] sm:$0xff] (%p52_p3) }
  0x10   : > { %v189_v2 = vld [vmem:[%s1109_s26 + $0x20] sm:$0xff] (%p52_p3)  ;;  %186 = vst [vmem:[%s1114_s27] sm:$0xff] (%p52_p3), %v185_v0  ;;  %188 = vst [vmem:[%s1114_s27 + $0x8] sm:$0xff] (%p52_p3), %v187_v1  ;;  %v191_v3 = vld [vmem:[%s1109_s26 + $0x28] sm:$0xff] (%p52_p3) }
  0x11   : > { %190 = vst [vmem:[%s1114_s27 + $0x10] sm:$0xff] %v189_v2  ;;  %v193_v4 = vld [vmem:[%s1109_s26 + $0x40] sm:$0xff]  ;;  %v195_v5 = vld [vmem:[%s1109_s26 + $0x48] sm:$0xff]  ;;  %192 = vst [vmem:[%s1114_s27 + $0x18] sm:$0xff] %v191_v3 }
  0x12   : > { %194 = vst [vmem:[%s1114_s27 + $0x20] sm:$0xff] %v193_v4  ;;  %196 = vst [vmem:[%s1114_s27 + $0x28] sm:$0xff] %v195_v5  ;;  %v197_v6 = vld [vmem:[%s1109_s26 + $0x60] sm:$0xff]  ;;  %v199_v7 = vld [vmem:[%s1109_s26 + $0x68] sm:$0xff] }
  0x13   : > { %v201_v8 = vld [vmem:[%s1109_s26 + $0x80] sm:$0xff]  ;;  %198 = vst [vmem:[%s1114_s27 + $0x30] sm:$0xff] %v197_v6  ;;  %200 = vst [vmem:[%s1114_s27 + $0x38] sm:$0xff] %v199_v7  ;;  %v203_v9 = vld [vmem:[%s1109_s26 + $0x88] sm:$0xff] }
  0x14   : > { %202 = vst [vmem:[%s1114_s27 + $0x40] sm:$0xff] %v201_v8  ;;  %v205_v10 = vld [vmem:[%s1109_s26 + $0xa0] sm:$0xff]  ;;  %v207_v11 = vld [vmem:[%s1109_s26 + $0xa8] sm:$0xff]  ;;  %204 = vst [vmem:[%s1114_s27 + $0x48] sm:$0xff] %v203_v9 }
  0x15   : > { %206 = vst [vmem:[%s1114_s27 + $0x50] sm:$0xff] %v205_v10  ;;  %208 = vst [vmem:[%s1114_s27 + $0x58] sm:$0xff] %v207_v11  ;;  %v209_v12 = vld [vmem:[%s1109_s26 + $0xc0] sm:$0xff]  ;;  %v211_v13 = vld [vmem:[%s1109_s26 + $0xc8] sm:$0xff] }
  0x16   : > { %v213_v14 = vld [vmem:[%s1109_s26 + $0xe0] sm:$0xff]  ;;  %210 = vst [vmem:[%s1114_s27 + $0x60] sm:$0xff] %v209_v12  ;;  %212 = vst [vmem:[%s1114_s27 + $0x68] sm:$0xff] %v211_v13  ;;  %v215_v15 = vld [vmem:[%s1109_s26 + $0xe8] sm:$0xff] }
  0x17   : > { %214 = vst [vmem:[%s1114_s27 + $0x70] sm:$0xff] %v213_v14  ;;  %v217_v16 = vld [vmem:[%s1109_s26 + $0x100] sm:$0xff]  ;;  %v219_v17 = vld [vmem:[%s1109_s26 + $0x108] sm:$0xff]  ;;  %216 = vst [vmem:[%s1114_s27 + $0x78] sm:$0xff] %v215_v15 }
  0x18   : > { %218 = vst [vmem:[%s1114_s27 + $0x80] sm:$0xff] %v217_v16  ;;  %220 = vst [vmem:[%s1114_s27 + $0x88] sm:$0xff] %v219_v17  ;;  %v221_v18 = vld [vmem:[%s1109_s26 + $0x120] sm:$0xff]  ;;  %v223_v19 = vld [vmem:[%s1109_s26 + $0x128] sm:$0xff] }
  0x19   : > { %v225_v20 = vld [vmem:[%s1109_s26 + $0x140] sm:$0xff]  ;;  %222 = vst [vmem:[%s1114_s27 + $0x90] sm:$0xff] %v221_v18  ;;  %224 = vst [vmem:[%s1114_s27 + $0x98] sm:$0xff] %v223_v19  ;;  %v227_v21 = vld [vmem:[%s1109_s26 + $0x148] sm:$0xff] }
  0x1a   : > { %226 = vst [vmem:[%s1114_s27 + $0xa0] sm:$0xff] %v225_v20  ;;  %v229_v22 = vld [vmem:[%s1109_s26 + $0x160] sm:$0xff]  ;;  %v231_v23 = vld [vmem:[%s1109_s26 + $0x168] sm:$0xff]  ;;  %228 = vst [vmem:[%s1114_s27 + $0xa8] sm:$0xff] %v227_v21 }
  0x1b   : > { %230 = vst [vmem:[%s1114_s27 + $0xb0] sm:$0xff] %v229_v22  ;;  %232 = vst [vmem:[%s1114_s27 + $0xb8] sm:$0xff] %v231_v23  ;;  %v233_v24 = vld [vmem:[%s1109_s26 + $0x180] sm:$0xff]  ;;  %v235_v25 = vld [vmem:[%s1109_s26 + $0x188] sm:$0xff] }
  0x1c   : > { %v237_v26 = vld [vmem:[%s1109_s26 + $0x1a0] sm:$0xff]  ;;  %234 = vst [vmem:[%s1114_s27 + $0xc0] sm:$0xff] %v233_v24  ;;  %236 = vst [vmem:[%s1114_s27 + $0xc8] sm:$0xff] %v235_v25  ;;  %v239_v27 = vld [vmem:[%s1109_s26 + $0x1a8] sm:$0xff] }
  0x1d   : > { %238 = vst [vmem:[%s1114_s27 + $0xd0] sm:$0xff] %v237_v26  ;;  %v241_v28 = vld [vmem:[%s1109_s26 + $0x1c0] sm:$0xff]  ;;  %v243_v29 = vld [vmem:[%s1109_s26 + $0x1c8] sm:$0xff]  ;;  %240 = vst [vmem:[%s1114_s27 + $0xd8] sm:$0xff] %v239_v27 }
  0x1e   : > { %242 = vst [vmem:[%s1114_s27 + $0xe0] sm:$0xff] %v241_v28  ;;  %244 = vst [vmem:[%s1114_s27 + $0xe8] sm:$0xff] %v243_v29  ;;  %v245_v30 = vld [vmem:[%s1109_s26 + $0x1e0] sm:$0xff]  ;;  %v247_v31 = vld [vmem:[%s1109_s26 + $0x1e8] sm:$0xff] }
  0x1f   : > { %246 = vst [vmem:[%s1114_s27 + $0xf0] sm:$0xff] %v245_v30  ;;  %248 = vst [vmem:[%s1114_s27 + $0xf8] sm:$0xff] %v247_v31 }
  0x20 PF: > { %p954_p6 = scmp.ge.s32.totalorder %s1043_s16, 1  ;;  %p269_p7 = scmp.lt.s32.totalorder %s1043_s16, 3 }
  0x22   : > { %p270_p8 = pnand %p954_p6, %p269_p7 }
  0x24   : > { %273 = sbr.rel (%p270_p8) target bundleno = 162 (0xa2), region = 51 }
  0x29   : > { %s276_s28 = sand.u32 1, %s1027_s12   ;;  %v437_v32 = vlaneseq  ;;  %v1045_v33 = vmov 1983009808   ;;  %s956_s4 = sshll.u32 %s1035_s14, 2  ;;  %vm823_vm0 = vcmask 1041409   ;;  %vm825_vm1 = vcmask 1043459  }
  0x2a   : > { %s955_s29 = sshll.u32 %s276_s28, 8  ;;  %v1180_v34 = vunpack.c.l.s4 %v1045_v33  ;;  %p1242_p9 = scmp.lt.s32.totalorder %s956_s4, 7  ;;  %vm827_vm2 = vcmask 1045509   ;;  %vm829_vm3 = vcmask 1047559  }
  0x2b   : > { %s1182_s30 = scalar_lea.vmem [#allocation2], %s955_s29  ;;  %v1203_v42 = vshrl.u32 %v437_v32, 7 }
  0x2c   : > { %v1185_v35 = vld [vmem:[%s1182_s30] sm:$0xff]  ;;  %v1188_v36 = vld [vmem:[%s1182_s30 + $0x8] sm:$0xff]  ;;  %v1191_v37 = vld [vmem:[%s1182_s30 + $0x10] sm:$0xff]  ;;  %v788_v43 = vunpack.c.0.s8 %v1180_v34  ;;  %s2302_s4 = smov (!%p1242_p9, %s956_s4), 7 }
  0x2d   : > { %v1194_v38 = vld [vmem:[%s1182_s30 + $0x18] sm:$0xff]  ;;  %v1197_v39 = vld [vmem:[%s1182_s30 + $0x20] sm:$0xff]  ;;  %v1200_v40 = vld [vmem:[%s1182_s30 + $0x28] sm:$0xff]  ;;  %v371_v41 = vunpack.c.l.bf16 %v1185_v35  ;;  %v372_v47 = vunpack.c.h.bf16 %v1185_v35  ;;  %v373_v48 = vunpack.c.l.bf16 %v1188_v36  ;;  %v374_v49 = vunpack.c.h.bf16 %v1188_v36  ;;  %s317_s8 = scalar_lea.vmem %s2113_s1, %s2302_s4  ;;  %s322_s11 = scalar_lea.vmem %s2114_s2, %s2302_s4 }
  0x2e   : > { %v1208_v44 = vld [vmem:[%s1182_s30 + $0x30] sm:$0xff]  ;;  %v1211_v45 = vld [vmem:[%s1182_s30 + $0x38] sm:$0xff]  ;;  %v1214_v46 = vld [vmem:[%s1182_s30 + $0x40] sm:$0xff]  ;;  %v375_v50 = vunpack.c.l.bf16 %v1191_v37  ;;  %v376_v53 = vunpack.c.h.bf16 %v1191_v37  ;;  %v377_v54 = vunpack.c.l.bf16 %v1194_v38  ;;  %v378_v55 = vunpack.c.h.bf16 %v1194_v38  ;;  %s959_s12 = sshll.u32 %s2302_s4, 1 }
  0x2f   : > { %v1221_v51 = vld [vmem:[%s1182_s30 + $0x48] sm:$0xff]  ;;  %v1224_v52 = vld [vmem:[%s1182_s30 + $0x50] sm:$0xff]  ;;  %v379_v56 = vunpack.c.l.bf16 %v1197_v39  ;;  %v1231_v57 = vld [vmem:[%s1182_s30 + $0x58] sm:$0xff]  ;;  %v380_v59 = vunpack.c.h.bf16 %v1197_v39  ;;  %v381_v60 = vunpack.c.l.bf16 %v1200_v40  ;;  %v382_v61 = vunpack.c.h.bf16 %v1200_v40  ;;  %s332_s19 = scalar_lea.vmem %s2115_s3, %s959_s12 }
  0x30   : > { %v1234_v58 = vld [vmem:[%s1182_s30 + $0x60] sm:$0xff]  ;;  %v383_v62 = vunpack.c.l.bf16 %v1208_v44  ;;  %v1247_v63 = vld [vmem:[%s1182_s30 + $0x68] sm:$0xff]  ;;  %v1250_v0 = vld [vmem:[%s1182_s30 + $0x70] sm:$0xff]  ;;  %v384_v1 = vunpack.c.h.bf16 %v1208_v44  ;;  %v439_v14 = vsub.s32 0, %v1203_v42  ;;  %v443_v8 = vsub.s32 1, %v1203_v42 }
  0x31   : > { %v1257_v5 = vld [vmem:[%s1182_s30 + $0x78] sm:$0xff]  ;;  %v1260_v6 = vld [vmem:[%s1182_s30 + $0x80] sm:$0xff]  ;;  %v1267_v11 = vld [vmem:[%s1182_s30 + $0x88] sm:$0xff]  ;;  %v447_v16 = vsub.s32 2, %v1203_v42  ;;  %v451_v33 = vsub.s32 3, %v1203_v42  ;;  %v1375_v15 = vsub.s32 %v788_v43, %v1203_v42  ;;  %v2135_v40 = vunpack.c.h.bf16 %v1211_v45 }
  0x32   : > { %v1270_v12 = vld [vmem:[%s1182_s30 + $0x90] sm:$0xff]  ;;  %v1277_v17 = vld [vmem:[%s1182_s30 + $0x98] sm:$0xff]  ;;  %v1280_v18 = vld [vmem:[%s1182_s30 + $0xa0] sm:$0xff]  ;;  %v2137_v44 = vunpack.c.h.bf16 %v1214_v46 }
  0x33   : > { %v1293_v23 = vld [vmem:[%s1182_s30 + $0xa8] sm:$0xff]  ;;  %v1296_v24 = vld [vmem:[%s1182_s30 + $0xb0] sm:$0xff]  ;;  %v1303_v29 = vld [vmem:[%s1182_s30 + $0xb8] sm:$0xff]  ;;  %2133 = vst [vmem:[#allocation3_spill] sm:$0xff] %v1375_v15  ;;  %v2156_v15 = vunpack.c.l.bf16 %v1267_v11 }
  0x34   : > { %v1306_v30 = vld [vmem:[%s1182_s30 + $0xc0] sm:$0xff]  ;;  %v1313_v25 = vld [vmem:[%s1182_s30 + $0xc8] sm:$0xff]  ;;  %v1316_v27 = vld [vmem:[%s1182_s30 + $0xd0] sm:$0xff] }
  0x35   : > { %v1323_v32 = vld [vmem:[%s1182_s30 + $0xd8] sm:$0xff]  ;;  %v1326_v20 = vld [vmem:[%s1182_s30 + $0xe0] sm:$0xff]  ;;  %v1337_v31 = vld [vmem:[%s1182_s30 + $0xe8] sm:$0xff] }
  0x36   : > { %v1340_v21 = vld [vmem:[%s1182_s30 + $0xf0] sm:$0xff]  ;;  %v1355_v13 = vld [vmem:[%s1182_s30 + $0xf8] sm:$0xff]  ;;  %v435_v9 = vld [vmem:[%s317_s8] sm:$0xf] }
  0x37   : > { %v521_v26 = vld [vmem:[%s322_s11] sm:$0xf]  ;;  %v1377_v19 = vrot.slane %v435_v9, %v439_v14  ;;  %v1379_v7 = vrot.slane %v435_v9, %v443_v8  ;;  %v1381_v4 = vrot.slane %v435_v9, %v447_v16  ;;  %v1383_v3 = vrot.slane %v435_v9, %v451_v33 }
  0x38   : > { %v1385_v2 = vrot.slane %v521_v26, %v439_v14  ;;  %v1387_v22 = vrot.slane %v521_v26, %v443_v8  ;;  %v1389_v10 = vrot.slane %v521_v26, %v447_v16  ;;  %v1391_v28 = vrot.slane %v521_v26, %v451_v33 }
  0x39   : > { %v1396_v34 = vmul.f32 %v1377_v19, %v371_v41  ;;  %v1401_v42 = vmul.f32 %v1379_v7, %v372_v47  ;;  %v1406_v43 = vmul.f32 %v1381_v4, %v373_v48  ;;  %v1411_v8 = vmul.f32 %v1383_v3, %v374_v49 }
  0x3a   : > { %v1416_v41 = vmul.f32 %v1377_v19, %v375_v50  ;;  %v1421_v35 = vmul.f32 %v1379_v7, %v376_v53  ;;  %v1426_v47 = vmul.f32 %v1381_v4, %v377_v54  ;;  %v1431_v36 = vmul.f32 %v1383_v3, %v378_v55 }
  0x3b   : > { %v1436_v48 = vmul.f32 %v1377_v19, %v379_v56  ;;  %v1441_v37 = vmul.f32 %v1379_v7, %v380_v59  ;;  %v1446_v49 = vmul.f32 %v1381_v4, %v381_v60  ;;  %v1451_v38 = vmul.f32 %v1383_v3, %v382_v61 }
  0x3c   : > { %v1456_v50 = vmul.f32 %v1377_v19, %v383_v62  ;;  %v1461_v39 = vmul.f32 %v1379_v7, %v384_v1  ;;  %v2134_v53 = vunpack.c.l.bf16 %v1211_v45  ;;  %v1471_v55 = vmul.f32 %v1383_v3, %v2135_v40 }
  0x3d   : > { %v2136_v56 = vunpack.c.l.bf16 %v1214_v46  ;;  %v1481_v60 = vmul.f32 %v1379_v7, %v2137_v44  ;;  %v2138_v61 = vunpack.c.l.bf16 %v1221_v51  ;;  %v2139_v45 = vunpack.c.h.bf16 %v1221_v51 }
  0x3e   : > { %v1466_v54 = vmul.f32 %v1381_v4, %v2134_v53  ;;  %v2140_v9 = vunpack.c.l.bf16 %v1224_v52  ;;  %v2141_v46 = vunpack.c.h.bf16 %v1224_v52  ;;  %v2142_v26 = vunpack.c.l.bf16 %v1231_v57 }
  0x3f   : > { %v1476_v59 = vmul.f32 %v1377_v19, %v2136_v56  ;;  %v1486_v62 = vmul.f32 %v1381_v4, %v2138_v61  ;;  %v1491_v1 = vmul.f32 %v1383_v3, %v2139_v45  ;;  %v2143_v51 = vunpack.c.h.bf16 %v1231_v57 }
  0x40   : > { %v1496_v14 = vmul.f32 %v1377_v19, %v2140_v9  ;;  %v1501_v16 = vmul.f32 %v1379_v7, %v2141_v46  ;;  %v1506_v33 = vmul.f32 %v1381_v4, %v2142_v26  ;;  %v2144_v40 = vunpack.c.l.bf16 %v1234_v58 }
  0x41   : > { %v1511_v53 = vmul.f32 %v1383_v3, %v2143_v51  ;;  %v2145_v52 = vunpack.c.h.bf16 %v1234_v58  ;;  %v2146_v61 = vunpack.c.l.bf16 %v1247_v63  ;;  %v2147_v57 = vunpack.c.h.bf16 %v1247_v63 }
  0x42   : > { %v1516_v56 = vmul.f32 %v1377_v19, %v2144_v40  ;;  %v2148_v46 = vunpack.c.l.bf16 %v1250_v0  ;;  %v2149_v58 = vunpack.c.h.bf16 %v1250_v0  ;;  %v2150_v40 = vunpack.c.l.bf16 %v1257_v5 }
  0x43   : > { %v1521_v44 = vmul.f32 %v1379_v7, %v2145_v52  ;;  %v1526_v45 = vmul.f32 %v1381_v4, %v2146_v61  ;;  %v1531_v9 = vmul.f32 %v1383_v3, %v2147_v57  ;;  %v2151_v63 = vunpack.c.h.bf16 %v1257_v5 }
  0x44   : > { %v1536_v26 = vmul.f32 %v1377_v19, %v2148_v46  ;;  %v1541_v51 = vmul.f32 %v1379_v7, %v2149_v58  ;;  %v1546_v52 = vmul.f32 %v1381_v4, %v2150_v40  ;;  %v2153_v57 = vunpack.c.l.bf16 %v1260_v6 }
  0x45   : > { %v1551_v61 = vmul.f32 %v1383_v3, %v2151_v63  ;;  %v2154_v0 = vunpack.c.h.bf16 %v1260_v6  ;;  %v1566_v40 = vmul.f32 %v1381_v4, %v2156_v15  ;;  %v2157_v5 = vunpack.c.h.bf16 %v1267_v11 }
  0x46   : > { %v1556_v46 = vmul.f32 %v1377_v19, %v2153_v57  ;;  %v2160_v6 = vunpack.c.h.bf16 %v1270_v12  ;;  %v2163_v11 = vunpack.c.h.bf16 %v1277_v17 }
  0x47   : > { %2152 = vst [vmem:[#allocation4_spill] sm:$0xff] %v1551_v61  ;;  %v1561_v58 = vmul.f32 %v1379_v7, %v2154_v0  ;;  %v1571_v63 = vmul.f32 %v1383_v3, %v2157_v5  ;;  %v2159_v61 = vunpack.c.l.bf16 %v1270_v12  ;;  %v2166_v12 = vunpack.c.h.bf16 %v1280_v18 }
  0x48   : > { %v1581_v0 = vmul.f32 %v1379_v7, %v2160_v6  ;;  %v1591_v5 = vmul.f32 %v1383_v3, %v2163_v11 }
  0x49   : > { %2155 = vst [vmem:[#allocation5_spill] sm:$0xff] %v1561_v58  ;;  %2158 = vst [vmem:[#allocation6_spill] sm:$0xff] %v1571_v63  ;;  %v1576_v57 = vmul.f32 %v1377_v19, %v2159_v61  ;;  %v2162_v58 = vunpack.c.l.bf16 %v1277_v17  ;;  %v2165_v63 = vunpack.c.l.bf16 %v1280_v18  ;;  %v1601_v6 = vmul.f32 %v1379_v7, %v2166_v12 }
  0x4a   : > { %2161 = vst [vmem:[#allocation7_spill] sm:$0xff] %v1581_v0  ;;  %2164 = vst [vmem:[#allocation8_spill] sm:$0xff] %v1591_v5  ;;  %v2168_v0 = vunpack.c.l.bf16 %v1293_v23  ;;  %v2169_v17 = vunpack.c.h.bf16 %v1293_v23  ;;  %v2171_v5 = vunpack.c.l.bf16 %v1296_v24  ;;  %v2172_v18 = vunpack.c.h.bf16 %v1296_v24 }
  0x4b   : > { %v1586_v15 = vmul.f32 %v1381_v4, %v2162_v58  ;;  %v1596_v61 = vmul.f32 %v1377_v19, %v2165_v63  ;;  %2167 = vst [vmem:[#allocation9_spill] sm:$0xff] %v1601_v6  ;;  %v2174_v6 = vunpack.c.l.bf16 %v1303_v29  ;;  %v2175_v23 = vunpack.c.h.bf16 %v1303_v29 }
  0x4c   : > { %v1606_v58 = vmul.f32 %v1381_v4, %v2168_v0  ;;  %v1611_v11 = vmul.f32 %v1383_v3, %v2169_v17  ;;  %v1616_v63 = vmul.f32 %v1377_v19, %v2171_v5  ;;  %v1621_v12 = vmul.f32 %v1379_v7, %v2172_v18 }
  0x4d   : > { %v1626_v0 = vmul.f32 %v1381_v4, %v2174_v6  ;;  %v1631_v17 = vmul.f32 %v1383_v3, %v2175_v23  ;;  %v2178_v24 = vunpack.c.h.bf16 %v1306_v30  ;;  %v2181_v29 = vunpack.c.h.bf16 %v1313_v25 }
  0x4e   : > { %2170 = vst [vmem:[#allocation10_spill] sm:$0xff] %v1611_v11  ;;  %2173 = vst [vmem:[#allocation11_spill] sm:$0xff] %v1621_v12  ;;  %v2177_v11 = vunpack.c.l.bf16 %v1306_v30  ;;  %v2180_v12 = vunpack.c.l.bf16 %v1313_v25  ;;  %v2184_v30 = vunpack.c.h.bf16 %v1316_v27  ;;  %v2187_v25 = vunpack.c.h.bf16 %v1323_v32 }
  0x4f   : > { %2176 = vst [vmem:[#allocation12_spill] sm:$0xff] %v1631_v17  ;;  %v1641_v18 = vmul.f32 %v1379_v7, %v2178_v24  ;;  %v1651_v23 = vmul.f32 %v1383_v3, %v2181_v29  ;;  %v2183_v17 = vunpack.c.l.bf16 %v1316_v27  ;;  %v2190_v27 = vunpack.c.h.bf16 %v1326_v20 }
  0x50   : > { %v1636_v5 = vmul.f32 %v1377_v19, %v2177_v11  ;;  %v1646_v6 = vmul.f32 %v1381_v4, %v2180_v12  ;;  %v1661_v24 = vmul.f32 %v1379_v7, %v2184_v30  ;;  %v1671_v29 = vmul.f32 %v1383_v3, %v2187_v25 }
  0x51   : > { %2179 = vst [vmem:[#allocation13_spill] sm:$0xff] %v1641_v18  ;;  %2182 = vst [vmem:[#allocation14_spill] sm:$0xff] %v1651_v23  ;;  %v1656_v11 = vmul.f32 %v1377_v19, %v2183_v17  ;;  %v2186_v18 = vunpack.c.l.bf16 %v1323_v32  ;;  %v2189_v23 = vunpack.c.l.bf16 %v1326_v20  ;;  %v1681_v30 = vmul.f32 %v1379_v7, %v2190_v27 }
  0x52   : > { %2185 = vst [vmem:[#allocation15_spill] sm:$0xff] %v1661_v24  ;;  %2188 = vst [vmem:[#allocation16_spill] sm:$0xff] %v1671_v29  ;;  %v2192_v24 = vunpack.c.l.bf16 %v1337_v31  ;;  %v2193_v32 = vunpack.c.h.bf16 %v1337_v31  ;;  %v2195_v29 = vunpack.c.l.bf16 %v1340_v21  ;;  %v2196_v20 = vunpack.c.h.bf16 %v1340_v21 }
  0x53   : > { %v1666_v12 = vmul.f32 %v1381_v4, %v2186_v18  ;;  %v1676_v17 = vmul.f32 %v1377_v19, %v2189_v23  ;;  %2191 = vst [vmem:[#allocation17_spill] sm:$0xff] %v1681_v30  ;;  %v2197_v30 = vunpack.c.l.bf16 %v1355_v13  ;;  %v2198_v31 = vunpack.c.h.bf16 %v1355_v13 }
  0x54   : > { %v1686_v18 = vmul.f32 %v1381_v4, %v2192_v24  ;;  %v1691_v25 = vmul.f32 %v1383_v3, %v2193_v32  ;;  %v1696_v23 = vmul.f32 %v1377_v19, %v2195_v29  ;;  %v1701_v27 = vmul.f32 %v1379_v7, %v2196_v20  ;;  %v2216_v29 = vld [vmem:[#allocation6_spill] sm:$0xff]  ;;  %v2217_v20 = vld [vmem:[#allocation7_spill] sm:$0xff] }
  0x55   : > { %v1706_v24 = vmul.f32 %v1381_v4, %v2197_v30  ;;  %v1711_v32 = vmul.f32 %v1383_v3, %v2198_v31  ;;  %v1719_v19 = vadd.f32 %v1387_v22, %v1401_v42  ;;  %v1723_v7 = vadd.f32 %v1389_v10, %v1406_v43 }
  0x56   : > { %2194 = vst [vmem:[#allocation18_spill] sm:$0xff] %v1691_v25  ;;  %v1715_v25 = vadd.f32 %v1385_v2, %v1396_v34  ;;  %v1727_v4 = vadd.f32 %v1391_v28, %v1411_v8  ;;  %v1731_v3 = vadd.f32 %v1385_v2, %v1416_v41  ;;  %v1735_v13 = vadd.f32 %v1387_v22, %v1421_v35 }
  0x57   : > { %v1739_v21 = vadd.f32 %v1389_v10, %v1426_v47  ;;  %v1743_v34 = vadd.f32 %v1391_v28, %v1431_v36  ;;  %v1747_v42 = vadd.f32 %v1385_v2, %v1436_v48  ;;  %v1751_v43 = vadd.f32 %v1387_v22, %v1441_v37 }
  0x58   : > { %v1755_v8 = vadd.f32 %v1389_v10, %v1446_v49  ;;  %v1759_v41 = vadd.f32 %v1391_v28, %v1451_v38  ;;  %v1763_v35 = vadd.f32 %v1385_v2, %v1456_v50  ;;  %v1767_v47 = vadd.f32 %v1387_v22, %v1461_v39 }
  0x59   : > { %v1771_v36 = vadd.f32 %v1389_v10, %v1466_v54  ;;  %v1775_v48 = vadd.f32 %v1391_v28, %v1471_v55  ;;  %v1779_v37 = vadd.f32 %v1385_v2, %v1476_v59  ;;  %v1783_v49 = vadd.f32 %v1387_v22, %v1481_v60 }
  0x5a   : > { %v1787_v38 = vadd.f32 %v1389_v10, %v1486_v62  ;;  %v1791_v50 = vadd.f32 %v1391_v28, %v1491_v1  ;;  %v1795_v39 = vadd.f32 %v1385_v2, %v1496_v14  ;;  %v1799_v54 = vadd.f32 %v1387_v22, %v1501_v16 }
  0x5b   : > { %2199 = vst [vmem:[#allocation19_spill] sm:$0xff] %v1783_v49  ;;  %v1803_v55 = vadd.f32 %v1389_v10, %v1506_v33  ;;  %v1807_v59 = vadd.f32 %v1391_v28, %v1511_v53  ;;  %v1811_v60 = vadd.f32 %v1385_v2, %v1516_v56  ;;  %v1815_v62 = vadd.f32 %v1387_v22, %v1521_v44  ;;  %v2213_v56 = vld [vmem:[#allocation4_spill] sm:$0xff] }
  0x5c   : > { %2200 = vst [vmem:[#allocation20_spill] sm:$0xff] %v1787_v38  ;;  %2201 = vst [vmem:[#allocation21_spill] sm:$0xff] %v1791_v50  ;;  %v1819_v1 = vadd.f32 %v1389_v10, %v1526_v45  ;;  %v1823_v14 = vadd.f32 %v1391_v28, %v1531_v9  ;;  %v1827_v16 = vadd.f32 %v1385_v2, %v1536_v26  ;;  %v2215_v9 = vld [vmem:[#allocation5_spill] sm:$0xff] }
  0x5d   : > { %2202 = vst [vmem:[#allocation22_spill] sm:$0xff] %v1795_v39  ;;  %2203 = vst [vmem:[#allocation23_spill] sm:$0xff] %v1799_v54  ;;  %v1831_v33 = vadd.f32 %v1387_v22, %v1541_v51  ;;  %v1835_v53 = vadd.f32 %v1389_v10, %v1546_v52  ;;  %v1839_v44 = vadd.f32 %v1391_v28, %v2213_v56  ;;  %v2219_v56 = vld [vmem:[#allocation8_spill] sm:$0xff] }
  0x5e   : > { %2204 = vst [vmem:[#allocation24_spill] sm:$0xff] %v1803_v55  ;;  %2205 = vst [vmem:[#allocation25_spill] sm:$0xff] %v1807_v59  ;;  %v1843_v45 = vadd.f32 %v1385_v2, %v1556_v46  ;;  %v1847_v26 = vadd.f32 %v1387_v22, %v2215_v9  ;;  %v1851_v51 = vadd.f32 %v1389_v10, %v1566_v40 }
  0x5f   : > { %2206 = vst [vmem:[#allocation26_spill] sm:$0xff] %v1811_v60  ;;  %2207 = vst [vmem:[#allocation27_spill] sm:$0xff] %v1815_v62  ;;  %v1855_v52 = vadd.f32 %v1391_v28, %v2216_v29  ;;  %v1859_v30 = vadd.f32 %v1385_v2, %v1576_v57  ;;  %v1863_v46 = vadd.f32 %v1387_v22, %v2217_v20  ;;  %v2221_v29 = vld [vmem:[#allocation9_spill] sm:$0xff] }
  0x60   : > { %2208 = vst [vmem:[#allocation28_spill] sm:$0xff] %v1819_v1  ;;  %2209 = vst [vmem:[#allocation29_spill] sm:$0xff] %v1823_v14  ;;  %v1867_v31 = vadd.f32 %v1389_v10, %v1586_v15  ;;  %v1871_v40 = vadd.f32 %v1391_v28, %v2219_v56  ;;  %v1875_v9 = vadd.f32 %v1385_v2, %v1596_v61 }
  0x61   : > { %2210 = vst [vmem:[#allocation30_spill] sm:$0xff] %v1827_v16  ;;  %2211 = vst [vmem:[#allocation31_spill] sm:$0xff] %v1831_v33  ;;  %v1879_v57 = vadd.f32 %v1387_v22, %v2221_v29  ;;  %v1883_v20 = vadd.f32 %v1389_v10, %v1606_v58  ;;  %v1891_v56 = vadd.f32 %v1385_v2, %v1616_v63 }
  0x62   : > { %2212 = vst [vmem:[#allocation32_spill] sm:$0xff] %v1835_v53  ;;  %2214 = vst [vmem:[#allocation4_spill] sm:$0xff] %v1839_v44  ;;  %v1899_v29 = vadd.f32 %v1389_v10, %v1626_v0 }
  0x63   : > { %2218 = vst [vmem:[#allocation5_spill] sm:$0xff] %v1863_v46  ;;  %2220 = vst [vmem:[#allocation6_spill] sm:$0xff] %v1871_v40  ;;  %v2223_v46 = vld [vmem:[#allocation10_spill] sm:$0xff]  ;;  %v2225_v40 = vld [vmem:[#allocation11_spill] sm:$0xff] }
  0x64   : > { %2222 = vst [vmem:[#allocation7_spill] sm:$0xff] %v1879_v57  ;;  %v1887_v15 = vadd.f32 %v1391_v28, %v2223_v46  ;;  %v1895_v61 = vadd.f32 %v1387_v22, %v2225_v40  ;;  %v2227_v57 = vld [vmem:[#allocation12_spill] sm:$0xff]  ;;  %v1907_v46 = vadd.f32 %v1385_v2, %v1636_v5  ;;  %v1915_v40 = vadd.f32 %v1389_v10, %v1646_v6 }
  0x65   : > { %v1903_v58 = vadd.f32 %v1391_v28, %v2227_v57  ;;  %v1923_v57 = vadd.f32 %v1385_v2, %v1656_v11 }
  0x66   : > { %2224 = vst [vmem:[#allocation8_spill] sm:$0xff] %v1887_v15  ;;  %2226 = vst [vmem:[#allocation9_spill] sm:$0xff] %v1895_v61  ;;  %v2229_v15 = vld [vmem:[#allocation13_spill] sm:$0xff]  ;;  %v2231_v61 = vld [vmem:[#allocation14_spill] sm:$0xff] }
  0x67   : > { %2228 = vst [vmem:[#allocation10_spill] sm:$0xff] %v1903_v58  ;;  %v1911_v63 = vadd.f32 %v1387_v22, %v2229_v15  ;;  %v1919_v0 = vadd.f32 %v1391_v28, %v2231_v61  ;;  %v2233_v58 = vld [vmem:[#allocation15_spill] sm:$0xff]  ;;  %v1931_v15 = vadd.f32 %v1389_v10, %v1666_v12  ;;  %v1939_v61 = vadd.f32 %v1385_v2, %v1676_v17 }
  0x68   : > { %v1927_v5 = vadd.f32 %v1387_v22, %v2233_v58  ;;  %v1947_v58 = vadd.f32 %v1389_v10, %v1686_v18  ;;  %v1959_v17 = vadd.f32 %v1387_v22, %v1701_v27  ;;  %v1967_v18 = vadd.f32 %v1391_v28, %v1711_v32 }
  0x69   : > { %2230 = vst [vmem:[#allocation11_spill] sm:$0xff] %v1911_v63  ;;  %2232 = vst [vmem:[#allocation12_spill] sm:$0xff] %v1919_v0  ;;  %v2235_v63 = vld [vmem:[#allocation16_spill] sm:$0xff]  ;;  %v2236_v0 = vld [vmem:[#allocation17_spill] sm:$0xff]  ;;  %v613_v27 = vmax.f32 %v1739_v21, 0.0  ;;  %v643_v21 = vmax.f32 %v1859_v30, 0.0 }
  0x6a   : > { %2234 = vst [vmem:[#allocation13_spill] sm:$0xff] %v1927_v5  ;;  %v1935_v6 = vadd.f32 %v1391_v28, %v2235_v63  ;;  %v1943_v11 = vadd.f32 %v1387_v22, %v2236_v0  ;;  %2237 = vst [vmem:[#allocation14_spill] sm:$0xff] %v1947_v58  ;;  %v2238_v5 = vld [vmem:[#allocation18_spill] sm:$0xff]  ;;  %v1955_v63 = vadd.f32 %v1385_v2, %v1696_v23  ;;  %v611_v23 = vmax.f32 %v1731_v3, 0.0  ;;  %v2240_v58 = vld [vmem:[#allocation5_spill] sm:$0xff] }
  0x6b   : > { %v1951_v12 = vadd.f32 %v1391_v28, %v2238_v5  ;;  %v1963_v0 = vadd.f32 %v1389_v10, %v1706_v24  ;;  %v612_v22 = vmax.f32 %v1735_v13, 0.0  ;;  %v614_v10 = vmax.f32 %v1743_v34, 0.0  ;;  %v2241_v16 = vld [vmem:[#allocation6_spill] sm:$0xff]  ;;  %v2242_v53 = vld [vmem:[#allocation7_spill] sm:$0xff] }
  0x6c   : > { %v640_v2 = vmax.f32 %v1847_v26, 0.0  ;;  %v641_v3 = vmax.f32 %v1851_v51, 0.0  ;;  %v642_v13 = vmax.f32 %v1855_v52, 0.0  ;;  %v644_v34 = vmax.f32 %v2240_v58, 0.0 }
  0x6d   : > { %2239 = vst [vmem:[#allocation15_spill] sm:$0xff] %v1951_v12  ;;  %v639_v12 = vmax.f32 %v1843_v45, 0.0  ;;  %v645_v24 = vmax.f32 %v1867_v31, 0.0  ;;  %v646_v28 = vmax.f32 %v2241_v16, 0.0  ;;  %v647_v32 = vmax.f32 %v1875_v9, 0.0  ;;  %v2243_v44 = vld [vmem:[#allocation8_spill] sm:$0xff] }
  0x6e   : > { %v648_v5 = vmax.f32 %v2242_v53, 0.0  ;;  %v649_v45 = vmax.f32 %v1883_v20, 0.0  ;;  %v650_v26 = vmax.f32 %v2243_v44, 0.0  ;;  %v651_v51 = vmax.f32 %v1891_v56, 0.0  ;;  %v2244_v33 = vld [vmem:[#allocation9_spill] sm:$0xff]  ;;  %v2245_v14 = vld [vmem:[#allocation10_spill] sm:$0xff] }
  0x6f   : > { %v652_v52 = vmax.f32 %v2244_v33, 0.0  ;;  %v653_v30 = vmax.f32 %v1899_v29, 0.0  ;;  %v654_v58 = vmax.f32 %v2245_v14, 0.0  ;;  %v655_v31 = vmax.f32 %v1907_v46, 0.0 }
  0x70   : > { %v2246_v1 = vld [vmem:[#allocation11_spill] sm:$0xff]  ;;  %v657_v9 = vmax.f32 %v1915_v40, 0.0  ;;  %v2247_v62 = vld [vmem:[#allocation12_spill] sm:$0xff]  ;;  %v659_v20 = vmax.f32 %v1923_v57, 0.0  ;;  %v661_v56 = vmax.f32 %v1931_v15, 0.0  ;;  %v662_v33 = vmax.f32 %v1935_v6, 0.0 }
  0x71   : > { %v656_v16 = vmax.f32 %v2246_v1, 0.0  ;;  %v658_v53 = vmax.f32 %v2247_v62, 0.0  ;;  %v2248_v60 = vld [vmem:[#allocation13_spill] sm:$0xff]  ;;  %v663_v29 = vmax.f32 %v1939_v61, 0.0  ;;  %v664_v14 = vmax.f32 %v1943_v11, 0.0  ;;  %v2249_v59 = vld [vmem:[#allocation14_spill] sm:$0xff] }
  0x72   : > { %v660_v44 = vmax.f32 %v2248_v60, 0.0  ;;  %v665_v46 = vmax.f32 %v2249_v59, 0.0  ;;  %v667_v40 = vmax.f32 %v1955_v63, 0.0  ;;  %v668_v62 = vmax.f32 %v1959_v17, 0.0 }
  0x73   : > { %v669_v57 = vmax.f32 %v1963_v0, 0.0  ;;  %v670_v60 = vmax.f32 %v1967_v18, 0.0  ;;  %v2251_v15 = vmax.f32 %v1715_v25, 0.0  ;;  %v2252_v6 = vmax.f32 %v1719_v19, 0.0 }
  0x74   : > { %v2250_v55 = vld [vmem:[#allocation15_spill] sm:$0xff]  ;;  %v2253_v11 = vmax.f32 %v1723_v7, 0.0  ;;  %v2254_v59 = vmax.f32 %v1727_v4, 0.0  ;;  %v724_v50 = vmax.f32 %v639_v12, %v643_v21  ;;  %v737_v63 = vmax.f32 %v640_v2, %v644_v34  ;;  %v2268_v34 = vld [vmem:[#allocation21_spill] sm:$0xff] }
  0x75   : > { %v666_v1 = vmax.f32 %v2250_v55, 0.0  ;;  %v672_v54 = vmax.f32 %v2251_v15, %v611_v23  ;;  %v685_v61 = vmax.f32 %v2252_v6, %v612_v22  ;;  %v750_v38 = vmax.f32 %v641_v3, %v645_v24 }
  0x76   : > { %v698_v39 = vmax.f32 %v2253_v11, %v613_v27  ;;  %v711_v55 = vmax.f32 %v2254_v59, %v614_v10  ;;  %v763_v17 = vmax.f32 %v642_v13, %v646_v28  ;;  %v2255_v0 = vmax.f32 %v1747_v42, 0.0  ;;  %v2274_v59 = vld [vmem:[#allocation24_spill] sm:$0xff] }
  0x77   : > { %v2256_v18 = vmax.f32 %v1751_v43, 0.0  ;;  %v2257_v23 = vmax.f32 %v1755_v8, 0.0  ;;  %v2258_v22 = vmax.f32 %v1759_v41, 0.0  ;;  %v725_v27 = vmax.f32 %v724_v50, %v647_v32 }
  0x78   : > { %v673_v49 = vmax.f32 %v672_v54, %v2255_v0  ;;  %v738_v15 = vmax.f32 %v737_v63, %v648_v5  ;;  %v751_v4 = vmax.f32 %v750_v38, %v649_v45  ;;  %v764_v10 = vmax.f32 %v763_v17, %v650_v26  ;;  %v2264_v5 = vld [vmem:[#allocation19_spill] sm:$0xff]  ;;  %v2276_v17 = vld [vmem:[#allocation25_spill] sm:$0xff] }
  0x79   : > { %v686_v25 = vmax.f32 %v685_v61, %v2256_v18  ;;  %v699_v19 = vmax.f32 %v698_v39, %v2257_v23  ;;  %v712_v7 = vmax.f32 %v711_v55, %v2258_v22  ;;  %v2259_v12 = vmax.f32 %v1763_v35, 0.0 }
  0x7a   : > { %v2260_v24 = vmax.f32 %v1767_v47, 0.0  ;;  %v2261_v54 = vmax.f32 %v1771_v36, 0.0  ;;  %v2262_v28 = vmax.f32 %v1775_v48, 0.0  ;;  %v726_v39 = vmax.f32 %v725_v27, %v651_v51  ;;  %v2270_v51 = vld [vmem:[#allocation22_spill] sm:$0xff] }
  0x7b   : > { %v674_v2 = vmax.f32 %v673_v49, %v2259_v12  ;;  %v739_v3 = vmax.f32 %v738_v15, %v652_v52  ;;  %v752_v41 = vmax.f32 %v751_v4, %v653_v30  ;;  %v765_v13 = vmax.f32 %v764_v10, %v654_v58  ;;  %v2266_v49 = vld [vmem:[#allocation20_spill] sm:$0xff]  ;;  %v2272_v58 = vld [vmem:[#allocation23_spill] sm:$0xff]  ;;  %v2284_v12 = vld [vmem:[#allocation29_spill] sm:$0xff] }
  0x7c   : > { %v687_v42 = vmax.f32 %v686_v25, %v2260_v24  ;;  %v700_v43 = vmax.f32 %v699_v19, %v2261_v54  ;;  %v713_v8 = vmax.f32 %v712_v7, %v2262_v28  ;;  %v2263_v50 = vmax.f32 %v1779_v37, 0.0  ;;  %v2282_v15 = vld [vmem:[#allocation28_spill] sm:$0xff] }
  0x7d   : > { %v2265_v32 = vmax.f32 %v2264_v5, 0.0  ;;  %v2267_v21 = vmax.f32 %v2266_v49, 0.0  ;;  %v2269_v45 = vmax.f32 %v2268_v34, 0.0  ;;  %v727_v26 = vmax.f32 %v726_v39, %v655_v31  ;;  %v2278_v31 = vld [vmem:[#allocation26_spill] sm:$0xff] }
  0x7e   : > { %v675_v38 = vmax.f32 %v674_v2, %v2263_v50  ;;  %v740_v6 = vmax.f32 %v739_v3, %v656_v16  ;;  %v753_v48 = vmax.f32 %v752_v41, %v657_v9  ;;  %v766_v61 = vmax.f32 %v765_v13, %v658_v53  ;;  %v2280_v53 = vld [vmem:[#allocation27_spill] sm:$0xff]  ;;  %v2290_v3 = vld [vmem:[#allocation32_spill] sm:$0xff] }
  0x7f   : > { %v688_v35 = vmax.f32 %v687_v42, %v2265_v32  ;;  %v701_v47 = vmax.f32 %v700_v43, %v2267_v21  ;;  %v714_v36 = vmax.f32 %v713_v8, %v2269_v45  ;;  %v2271_v52 = vmax.f32 %v2270_v51, 0.0  ;;  %v2292_v50 = vld [vmem:[#allocation4_spill] sm:$0xff] }
  0x80   : > { %v2273_v11 = vmax.f32 %v2272_v58, 0.0  ;;  %v2275_v55 = vmax.f32 %v2274_v59, 0.0  ;;  %v2277_v0 = vmax.f32 %v2276_v17, 0.0  ;;  %v728_v25 = vmax.f32 %v727_v26, %v659_v20  ;;  %v2286_v20 = vld [vmem:[#allocation30_spill] sm:$0xff] }
  0x81   : > { %v676_v30 = vmax.f32 %v675_v38, %v2271_v52  ;;  %v741_v23 = vmax.f32 %v740_v6, %v660_v44  ;;  %v754_v19 = vmax.f32 %v753_v48, %v661_v56  ;;  %v767_v22 = vmax.f32 %v766_v61, %v662_v33  ;;  %v2288_v33 = vld [vmem:[#allocation31_spill] sm:$0xff] }
  0x82   : > { %v689_v37 = vmax.f32 %v688_v35, %v2273_v11  ;;  %v702_v63 = vmax.f32 %v701_v47, %v2275_v55  ;;  %v715_v18 = vmax.f32 %v714_v36, %v2277_v0  ;;  %v2279_v16 = vmax.f32 %v2278_v31, 0.0 }
  0x83   : > { %v2281_v7 = vmax.f32 %v2280_v53, 0.0  ;;  %v2283_v4 = vmax.f32 %v2282_v15, 0.0  ;;  %v2285_v2 = vmax.f32 %v2284_v12, 0.0  ;;  %v729_v42 = vmax.f32 %v728_v25, %v663_v29 }
  0x84   : > { %v677_v9 = vmax.f32 %v676_v30, %v2279_v16  ;;  %v742_v54 = vmax.f32 %v741_v23, %v664_v14  ;;  %v755_v43 = vmax.f32 %v754_v19, %v665_v46  ;;  %v768_v28 = vmax.f32 %v767_v22, %v666_v1 }
  0x85   : > { %v690_v27 = vmax.f32 %v689_v37, %v2281_v7  ;;  %v703_v10 = vmax.f32 %v702_v63, %v2283_v4  ;;  %v716_v24 = vmax.f32 %v715_v18, %v2285_v2  ;;  %v2287_v44 = vmax.f32 %v2286_v20, 0.0 }
  0x86   : > { %v2289_v8 = vmax.f32 %v2288_v33, 0.0  ;;  %v2291_v41 = vmax.f32 %v2290_v3, 0.0  ;;  %v2293_v38 = vmax.f32 %v2292_v50, 0.0  ;;  %v730_v32 = vmax.f32 %v729_v42, %v667_v40 }
  0x87   : > { %v678_v56 = vmax.f32 %v677_v9, %v2287_v44  ;;  %v743_v35 = vmax.f32 %v742_v54, %v668_v62  ;;  %v756_v49 = vmax.f32 %v755_v43, %v669_v57  ;;  %v769_v21 = vmax.f32 %v768_v28, %v670_v60 }
  0x88   : > { %v691_v39 = vmax.f32 %v690_v27, %v2289_v8  ;;  %v704_v13 = vmax.f32 %v703_v10, %v2291_v41  ;;  %v717_v5 = vmax.f32 %v716_v24, %v2293_v38  ;;  %v731_v47 = vrot.slane %v730_v32, 4  ;;  %v2294_v8 = vld [vmem:[#allocation3_spill] sm:$0xff] }
  0x89   : > { %v679_v29 = vrot.slane %v678_v56, 4  ;;  %v744_v34 = vrot.slane %v743_v35, 4  ;;  %v757_v45 = vrot.slane %v756_v49, 4  ;;  %v770_v36 = vrot.slane %v769_v21, 4 }
  0x8a   : > { %v692_v14 = vrot.slane %v691_v39, 4  ;;  %v705_v46 = vrot.slane %v704_v13, 4  ;;  %v718_v1 = vrot.slane %v717_v5, 4  ;;  %v732_v51 = vmax.f32 %v730_v32, %v731_v47 }
  0x8b   : > { %v680_v26 = vmax.f32 %v678_v56, %v679_v29  ;;  %v745_v52 = vmax.f32 %v743_v35, %v744_v34  ;;  %v758_v30 = vmax.f32 %v756_v49, %v757_v45  ;;  %v771_v58 = vmax.f32 %v769_v21, %v770_v36 }
  0x8c   : > { %v693_v6 = vmax.f32 %v691_v39, %v692_v14  ;;  %v706_v48 = vmax.f32 %v704_v13, %v705_v46  ;;  %v719_v61 = vmax.f32 %v717_v5, %v718_v1  ;;  %v733_v11 = vrot.slane %v732_v51, 2 }
  0x8d   : > { %v681_v40 = vrot.slane %v680_v26, 2  ;;  %v746_v37 = vrot.slane %v745_v52, 2  ;;  %v759_v59 = vrot.slane %v758_v30, 2  ;;  %v772_v55 = vrot.slane %v771_v58, 2 }
  0x8e   : > { %v694_v62 = vrot.slane %v693_v6, 2  ;;  %v707_v57 = vrot.slane %v706_v48, 2  ;;  %v720_v60 = vrot.slane %v719_v61, 2  ;;  %v734_v25 = vmax.f32 %v732_v51, %v733_v11 }
  0x8f   : > { %v682_v63 = vmax.f32 %v680_v26, %v681_v40  ;;  %v747_v23 = vmax.f32 %v745_v52, %v746_v37  ;;  %v760_v19 = vmax.f32 %v758_v30, %v759_v59  ;;  %v773_v22 = vmax.f32 %v771_v58, %v772_v55 }
  0x90   : > { %v695_v17 = vmax.f32 %v693_v6, %v694_v62  ;;  %v708_v0 = vmax.f32 %v706_v48, %v707_v57  ;;  %v721_v18 = vmax.f32 %v719_v61, %v720_v60  ;;  %v735_v7 = vrot.slane %v734_v25, 1 }
  0x91   : > { %v683_v31 = vrot.slane %v682_v63, 1  ;;  %v748_v27 = vrot.slane %v747_v23, 1  ;;  %v761_v15 = vrot.slane %v760_v19, 1  ;;  %v774_v4 = vrot.slane %v773_v22, 1 }
  0x92   : > { %v696_v16 = vrot.slane %v695_v17, 1  ;;  %v709_v9 = vrot.slane %v708_v0, 1  ;;  %v722_v53 = vrot.slane %v721_v18, 1  ;;  %v736_v42 = vmax.f32 %v734_v25, %v735_v7 }
  0x93   : > { %v684_v10 = vmax.f32 %v682_v63, %v683_v31  ;;  %v749_v54 = vmax.f32 %v747_v23, %v748_v27  ;;  %v762_v43 = vmax.f32 %v760_v19, %v761_v15  ;;  %v775_v28 = vmax.f32 %v773_v22, %v774_v4 }
  0x94   : > { %v697_v12 = vmax.f32 %v695_v17, %v696_v16  ;;  %v710_v2 = vmax.f32 %v708_v0, %v709_v9  ;;  %v723_v24 = vmax.f32 %v721_v18, %v722_v53 }
  0x95   : > { %v801_v56 = vcombine.low %v736_v42, %v749_v54  ;;  %v802_v33 = vcombine.low %v762_v43, %v775_v28 }
  0x96   : > { %v784_v20 = vcombine.low %v684_v10, %v697_v12  ;;  %v785_v44 = vcombine.low %v710_v2, %v723_v24 }
  0x97   : > { %v809_v41 = vrot.slane %v801_v56, %v2294_v8  ;;  %v816_v13 = vrot.slane %v802_v33, %v2294_v8 }
  0x98   : > { %v792_v39 = vrot.slane %v784_v20, %v2294_v8  ;;  %v799_v3 = vrot.slane %v785_v44, %v2294_v8 }
  0x99   : > { %v817_v38 = vcombine.low %v809_v41, %v816_v13 }
  0x9a   : > { %v800_v50 = vcombine.low %v792_v39, %v799_v3 }
  0x9b   : > { %v822_v5 = vrot.slane %v817_v38, 7 }
  0x9d   : > { %v824_v32 = vsel %vm823_vm0, %v822_v5, %v800_v50 }
  0x9e   : > { %v826_v35 = vsel %vm825_vm1, %v822_v5, %v824_v32 }
  0x9f   : > { %v828_v49 = vsel %vm827_vm2, %v822_v5, %v826_v35 }
  0xa0   : > { %v830_v21 = vsel %vm829_vm3, %v822_v5, %v828_v49 }
  0xa1   : > { %833 = vst [vmem:[%s332_s19] sm:$0xff] %v830_v21 }
  0xa2 PF: > { %s13_s16 = sadd.s32 1, %s1043_s16   ;;  %s2295_s12 = smov %s1031_s13 }
  0xa3   : > { %p10_p10 = scmp.ge.s32.totalorder %s13_s16, 4   ;;  %s2296_s13 = smov %s1101_s20 }
  0xa4   : > { %s2297_s14 = smov %s1039_s15  ;;  %s2298_s15 = smov %s2300_s17 }
  0xa5   :  { %12 = sbr.rel (!%p10_p10) target bundleno = 3 (0x3), region = 100 }

// kernel: momentum_transform_forward.13
= control target key start
LH: loop header
LB: loop body
LE: loop exit
PB: predicated region body
PF: predicated region fallthrough
CT: control target
= control target key end

     0   :  { %12 = vsyncpa [#allocation3], 0  ;;  %s2312_s21 = smov [#allocation2]   ;;  %s3222_s0 = inlined_call_operand.vmem [shape: bf16[128,128], index: 0, kind: input, shape index: {}]   ;;  %s3223_s1 = inlined_call_operand.vmem [shape: f32[1,128], index: 1, kind: input, shape index: {}]   ;;  %s3224_s2 = inlined_call_operand.vmem [shape: f32[1,128], index: 2, kind: input, shape index: {}]   ;;  %s3225_s3 = inlined_call_operand.vmem [shape: bf16[128,1024], index: 3, kind: input, shape index: {}]   ;;  %s3226_s4 = inlined_call_operand.hbm [shape: f32[1,1024], index: 4, kind: input, shape index: {}]   ;;  %s3227_s5 = inlined_call_operand.vmem [shape: bf16[128,1024], index: 5, kind: output, shape index: {0}]   ;;  %s3228_s6 = inlined_call_operand.vmem [shape: f32[1,1,2048], index: 6, kind: output, shape index: {1}]  }
   0x1   :  { %s27_s22 = sshll.u32 %s2312_s21, 4  ;;  %s28_s22 = int_to_ptr.vmem [resolvable:$true] %s27_s22 }
   0x2   :  { %s2298_s23 = scalar_lea.vmem %s28_s22, 128  ;;  %p2303_p1 = scmp.lt.s32.totalorder %s28_s22, %s28_s22 }
   0x3   :  { %p2299_p0 = scmp.ne.s32.totalorder %s28_s22, %s2298_s23  ;;  %p2304_p2 = scmp.lt.s32.totalorder %s2298_s23, %s2298_s23 }
   0x5   :  { %p2305_p3 = por %p2304_p2, %p2303_p1 }
   0x7   :  { %p2306_p4 = pnand %p2305_p3, %p2299_p0 }
   0x9   :  { %2309 = shalt.err (!%p2306_p4)
}
   0xa   :  { %30 = dma.hbm_to_vmem [thread:$0]  %s3226_s4, 128, %s28_s22, [#allocation3]  }
   0xb   :  { %2310 = dma.done.wait [#allocation3], 128  }
   0xc   :  { %2311 = vsyncadd [#allocation3], 4294967168  ;;  %v2313_v0 = vmov 0   ;;  %v193_v1 = vld [vmem:[%s3225_s3 + $0x1c0] sm:$0xff]  ;;  %v194_v3 = vld [vmem:[%s3225_s3 + $0x1c8] sm:$0xff] }
   0xd   :  { %595 = vmatprep.mubr.bf16.mxu0 %v2313_v0  ;;  %708 = vmatprep.mubr.bf16.mxu1 %v2313_v0  ;;  %v197_v2 = vld [vmem:[%s3225_s3 + $0x1e0] sm:$0xff]  ;;  %v198_v5 = vld [vmem:[%s3225_s3 + $0x1e8] sm:$0xff] }
   0xe   :  { %v2113_v4 = vcombine.high %v193_v1, %v197_v2  ;;  %v2112_v6 = vcombine.low %v193_v1, %v197_v2  ;;  %v185_v7 = vld [vmem:[%s3225_s3 + $0x180] sm:$0xff]  ;;  %v2115_v9 = vcombine.high %v194_v3, %v198_v5  ;;  %v2114_v10 = vcombine.low %v194_v3, %v198_v5  ;;  %v186_v12 = vld [vmem:[%s3225_s3 + $0x188] sm:$0xff] }
   0xf   :  { %v189_v8 = vld [vmem:[%s3225_s3 + $0x1a0] sm:$0xff]  ;;  %v190_v13 = vld [vmem:[%s3225_s3 + $0x1a8] sm:$0xff] }
  0x10   :  { %v2105_v11 = vcombine.high %v185_v7, %v189_v8  ;;  %v177_v14 = vld [vmem:[%s3225_s3 + $0x140] sm:$0xff]  ;;  %563 = vmatprep.subr.bf16.mxu0 %v2113_v4  ;;  %v2107_v15 = vcombine.high %v186_v12, %v190_v13  ;;  %v178_v17 = vld [vmem:[%s3225_s3 + $0x148] sm:$0xff]  ;;  %676 = vmatprep.subr.bf16.mxu1 %v2115_v9  ;;  %v2104_v19 = vcombine.low %v185_v7, %v189_v8 }
  0x11   :  { %v181_v16 = vld [vmem:[%s3225_s3 + $0x160] sm:$0xff]  ;;  %v182_v18 = vld [vmem:[%s3225_s3 + $0x168] sm:$0xff]  ;;  %564 = vmatpush1.bf16.msra.mxu0 %v2112_v6  ;;  %677 = vmatpush1.bf16.msra.mxu1 %v2114_v10  ;;  %v2106_v20 = vcombine.low %v186_v12, %v190_v13  ;;  %v195_v12 = vld [vmem:[%s3225_s3 + $0x1d0] sm:$0xff] }
  0x12   :  { %565 = vmatprep.subr.bf16.mxu0 %v2105_v11  ;;  %v2097_v21 = vcombine.high %v177_v14, %v181_v16  ;;  %678 = vmatprep.subr.bf16.mxu1 %v2107_v15  ;;  %v2099_v22 = vcombine.high %v178_v17, %v182_v18  ;;  %v169_v23 = vld [vmem:[%s3225_s3 + $0x100] sm:$0xff]  ;;  %v170_v25 = vld [vmem:[%s3225_s3 + $0x108] sm:$0xff]  ;;  %v2096_v27 = vcombine.low %v177_v14, %v181_v16  ;;  %v199_v13 = vld [vmem:[%s3225_s3 + $0x1f0] sm:$0xff] }
  0x13   :  { %v173_v24 = vld [vmem:[%s3225_s3 + $0x120] sm:$0xff]  ;;  %v174_v26 = vld [vmem:[%s3225_s3 + $0x128] sm:$0xff]  ;;  %v2098_v28 = vcombine.low %v178_v17, %v182_v18  ;;  %v196_v16 = vld [vmem:[%s3225_s3 + $0x1d8] sm:$0xff] }
  0x14   :  { %v2089_v29 = vcombine.high %v169_v23, %v173_v24  ;;  %v2091_v30 = vcombine.high %v170_v25, %v174_v26  ;;  %v161_v31 = vld [vmem:[%s3225_s3 + $0xc0] sm:$0xff]  ;;  %v162_v33 = vld [vmem:[%s3225_s3 + $0xc8] sm:$0xff]  ;;  %v2088_v35 = vcombine.low %v169_v23, %v173_v24  ;;  %v2090_v37 = vcombine.low %v170_v25, %v174_v26  ;;  %v200_v17 = vld [vmem:[%s3225_s3 + $0x1f8] sm:$0xff] }
  0x15   :  { %566 = vmatpush1.bf16.msra.mxu0 %v2104_v19  ;;  %679 = vmatpush1.bf16.msra.mxu1 %v2106_v20  ;;  %v165_v32 = vld [vmem:[%s3225_s3 + $0xe0] sm:$0xff]  ;;  %v166_v34 = vld [vmem:[%s3225_s3 + $0xe8] sm:$0xff]  ;;  %v2281_v20 = vld [vmem:[%s3222_s0 + $0x10] sm:$0xff]   ;;  %v2117_v23 = vcombine.high %v195_v12, %v199_v13  ;;  %v2119_v24 = vcombine.high %v196_v16, %v200_v17 }
  0x16   :  { %567 = vmatprep.subr.bf16.mxu0 %v2097_v21  ;;  %680 = vmatprep.subr.bf16.mxu1 %v2099_v22  ;;  %v2249_v36 = vld [vmem:[%s3222_s0] sm:$0xff]   ;;  %v2081_v38 = vcombine.high %v161_v31, %v165_v32  ;;  %v2083_v39 = vcombine.high %v162_v33, %v166_v34  ;;  %v154_v42 = vld [vmem:[%s3225_s3 + $0x88] sm:$0xff]  ;;  %v2080_v46 = vcombine.low %v161_v31, %v165_v32  ;;  %v187_v25 = vld [vmem:[%s3225_s3 + $0x190] sm:$0xff]  ;;  %v2258_v26 = vunpack.c.l.bf16 %v2281_v20 }
  0x17   :  { %v153_v40 = vld [vmem:[%s3225_s3 + $0x80] sm:$0xff]  ;;  %v158_v43 = vld [vmem:[%s3225_s3 + $0xa8] sm:$0xff]  ;;  %v2250_v44 = vunpack.c.l.bf16 %v2249_v36  ;;  %v2251_v45 = vunpack.c.h.bf16 %v2249_v36  ;;  %v2082_v48 = vcombine.low %v162_v33, %v166_v34  ;;  %v188_v31 = vld [vmem:[%s3225_s3 + $0x198] sm:$0xff]  ;;  %v2259_v33 = vunpack.c.h.bf16 %v2281_v20 }
  0x18   :  { %v157_v41 = vld [vmem:[%s3225_s3 + $0xa0] sm:$0xff]  ;;  %v2075_v50 = vcombine.high %v154_v42, %v158_v43  ;;  %v146_v53 = vld [vmem:[%s3225_s3 + $0x48] sm:$0xff]  ;;  %v2074_v60 = vcombine.low %v154_v42, %v158_v43  ;;  %v192_v32 = vld [vmem:[%s3225_s3 + $0x1b8] sm:$0xff]  ;;  %v2116_v34 = vcombine.low %v195_v12, %v199_v13 }
  0x19   :  { %568 = vmatpush1.bf16.msra.mxu0 %v2096_v27  ;;  %681 = vmatpush1.bf16.msra.mxu1 %v2098_v28  ;;  %v2433_v47 = vld [vmem:[%s3223_s1] ss:$0 sm:$0xff]  ;;  %v2073_v49 = vcombine.high %v153_v40, %v157_v41  ;;  %v150_v54 = vld [vmem:[%s3225_s3 + $0x68] sm:$0xff]  ;;  %v2072_v57 = vcombine.low %v153_v40, %v157_v41 }
  0x1a   :  { %569 = vmatprep.subr.bf16.mxu0 %v2089_v29  ;;  %682 = vmatprep.subr.bf16.mxu1 %v2091_v30  ;;  %v145_v51 = vld [vmem:[%s3225_s3 + $0x40] sm:$0xff]  ;;  %v74_v55 = vmul.f32 %v2250_v44, %v2433_v47  ;;  %v75_v56 = vmul.f32 %v2251_v45, %v2433_v47  ;;  %v2280_v59 = vld [vmem:[%s3222_s0 + $0x8] sm:$0xff]   ;;  %v2067_v62 = vcombine.high %v146_v53, %v150_v54  ;;  %v191_v30 = vld [vmem:[%s3225_s3 + $0x1b0] sm:$0xff] }
  0x1b   :  { %v149_v52 = vld [vmem:[%s3225_s3 + $0x60] sm:$0xff]  ;;  %v138_v2 = vld [vmem:[%s3225_s3 + $0x8] sm:$0xff]  ;;  %v2254_v6 = vunpack.c.l.bf16 %v2280_v59  ;;  %v2255_v7 = vunpack.c.h.bf16 %v2280_v59  ;;  %v2066_v9 = vcombine.low %v146_v53, %v150_v54  ;;  %v2109_v36 = vcombine.high %v187_v25, %v191_v30  ;;  %v180_v44 = vld [vmem:[%s3225_s3 + $0x158] sm:$0xff] }
  0x1c   :  { %v2452_v58 = vld [vmem:[%s3224_s2] ss:$0 sm:$0xff]  ;;  %v2065_v61 = vcombine.high %v145_v51, %v149_v52  ;;  %v142_v3 = vld [vmem:[%s3225_s3 + $0x28] sm:$0xff]  ;;  %v2064_v8 = vcombine.low %v145_v51, %v149_v52  ;;  %v78_v42 = vmul.f32 %v2258_v26, %v2433_v47  ;;  %v79_v43 = vmul.f32 %v2259_v33, %v2433_v47  ;;  %v184_v45 = vld [vmem:[%s3225_s3 + $0x178] sm:$0xff] }
  0x1d   :  { %570 = vmatpush1.bf16.msra.mxu0 %v2088_v35  ;;  %683 = vmatpush1.bf16.msra.mxu1 %v2090_v37  ;;  %v137_v63 = vld [vmem:[%s3225_s3] sm:$0xff]  ;;  %v97_v4 = vadd.f32 %v2452_v58, %v74_v55  ;;  %v98_v5 = vadd.f32 %v2452_v58, %v75_v56  ;;  %v2059_v11 = vcombine.high %v138_v2, %v142_v3  ;;  %v175_v59 = vld [vmem:[%s3225_s3 + $0x130] sm:$0xff]  ;;  %v2284_v33 = vld [vmem:[%s3222_s0 + $0x28] sm:$0xff]  }
  0x1e   :  { %571 = vmatprep.subr.bf16.mxu0 %v2081_v38  ;;  %684 = vmatprep.subr.bf16.mxu1 %v2083_v39  ;;  %v141_v1 = vld [vmem:[%s3225_s3 + $0x20] sm:$0xff]  ;;  %v76_v18 = vmul.f32 %v2254_v6, %v2433_v47  ;;  %v77_v19 = vmul.f32 %v2255_v7, %v2433_v47  ;;  %v2058_v22 = vcombine.low %v138_v2, %v142_v3  ;;  %v179_v38 = vld [vmem:[%s3225_s3 + $0x150] sm:$0xff] }
  0x1f   :  { %v2057_v10 = vcombine.high %v137_v63, %v141_v1  ;;  %v113_v14 = vmax.f32 %v97_v4, 0.0  ;;  %v114_v15 = vmax.f32 %v98_v5, 0.0  ;;  %v2056_v21 = vcombine.low %v137_v63, %v141_v1  ;;  %v183_v39 = vld [vmem:[%s3225_s3 + $0x170] sm:$0xff]  ;;  %v2283_v7 = vld [vmem:[%s3222_s0 + $0x20] sm:$0xff]  }
  0x20   :  { %v99_v28 = vadd.f32 %v2452_v58, %v76_v18  ;;  %v100_v29 = vadd.f32 %v2452_v58, %v77_v19  ;;  %v2118_v35 = vcombine.low %v196_v16, %v200_v17  ;;  %v2111_v37 = vcombine.high %v188_v31, %v192_v32 }
  0x21   :  { %572 = vmatpush1.bf16.msra.mxu0 %v2080_v46  ;;  %685 = vmatpush1.bf16.msra.mxu1 %v2082_v48  ;;  %v2491_v27 = vpack.c.bf16 %v114_v15, %v113_v14  ;;  %v2282_v46 = vld [vmem:[%s3222_s0 + $0x18] sm:$0xff]   ;;  %v2108_v48 = vcombine.low %v187_v25, %v191_v30  ;;  %v2103_v51 = vcombine.high %v180_v44, %v184_v45  ;;  %v2266_v15 = vunpack.c.l.bf16 %v2283_v7 }
  0x22   :  { %573 = vmatprep.subr.bf16.mxu0 %v2073_v49  ;;  %686 = vmatprep.subr.bf16.mxu1 %v2075_v50  ;;  %v115_v40 = vmax.f32 %v99_v28, 0.0  ;;  %v116_v41 = vmax.f32 %v100_v29, 0.0  ;;  %v2110_v49 = vcombine.low %v188_v31, %v192_v32  ;;  %v2101_v50 = vcombine.high %v179_v38, %v183_v39 }
  0x23   :  { %v2262_v52 = vunpack.c.l.bf16 %v2282_v46  ;;  %v101_v54 = vadd.f32 %v2452_v58, %v78_v42  ;;  %v102_v55 = vadd.f32 %v2452_v58, %v79_v43  ;;  %v2263_v56 = vunpack.c.h.bf16 %v2282_v46 }
  0x24   :  { %v2525_v53 = vpack.c.bf16 %v116_v41, %v115_v40  ;;  %v2102_v63 = vcombine.low %v180_v44, %v184_v45  ;;  %v2267_v19 = vunpack.c.h.bf16 %v2283_v7  ;;  %v82_v31 = vmul.f32 %v2266_v15, %v2433_v47 }
  0x25   :  { %574 = vmatpush1.bf16.msra.mxu0 %v2072_v57  ;;  %687 = vmatpush1.bf16.msra.mxu1 %v2074_v60  ;;  %v171_v57 = vld [vmem:[%s3225_s3 + $0x110] sm:$0xff]  ;;  %v172_v60 = vld [vmem:[%s3225_s3 + $0x118] sm:$0xff]  ;;  %v80_v1 = vmul.f32 %v2262_v52, %v2433_v47  ;;  %v117_v3 = vmax.f32 %v101_v54, 0.0  ;;  %v118_v4 = vmax.f32 %v102_v55, 0.0  ;;  %v81_v5 = vmul.f32 %v2263_v56, %v2433_v47 }
  0x26   :  { %575 = vmatprep.subr.bf16.mxu0 %v2065_v61  ;;  %688 = vmatprep.subr.bf16.mxu1 %v2067_v62  ;;  %v176_v61 = vld [vmem:[%s3225_s3 + $0x138] sm:$0xff]  ;;  %v2100_v62 = vcombine.low %v179_v38, %v183_v39  ;;  %v2093_v2 = vcombine.high %v171_v57, %v175_v59  ;;  %v2092_v12 = vcombine.low %v171_v57, %v175_v59  ;;  %v2270_v40 = vunpack.c.l.bf16 %v2284_v33 }
  0x27   :  { %v2095_v6 = vcombine.high %v172_v60, %v176_v61  ;;  %v103_v13 = vadd.f32 %v2452_v58, %v80_v1  ;;  %v2094_v14 = vcombine.low %v172_v60, %v176_v61  ;;  %v2563_v17 = vpack.c.bf16 %v118_v4, %v117_v3  ;;  %v152_v38 = vld [vmem:[%s3225_s3 + $0x78] sm:$0xff] }
  0x28   :  { %v104_v18 = vadd.f32 %v2452_v58, %v81_v5  ;;  %v83_v32 = vmul.f32 %v2267_v19, %v2433_v47  ;;  %v2271_v41 = vunpack.c.h.bf16 %v2284_v33  ;;  %v105_v45 = vadd.f32 %v2452_v58, %v82_v31  ;;  %v144_v52 = vld [vmem:[%s3225_s3 + $0x38] sm:$0xff] }
  0x29   :  { %576 = vmatpush1.bf16.msra.mxu0 %v2064_v8  ;;  %689 = vmatpush1.bf16.msra.mxu1 %v2066_v9  ;;  %v163_v8 = vld [vmem:[%s3225_s3 + $0xd0] sm:$0xff]  ;;  %v119_v26 = vmax.f32 %v103_v13, 0.0  ;;  %v84_v55 = vmul.f32 %v2270_v40, %v2433_v47 }
  0x2a   :  { %577 = vmatprep.subr.bf16.mxu0 %v2057_v10  ;;  %690 = vmatprep.subr.bf16.mxu1 %v2059_v11  ;;  %v167_v9 = vld [vmem:[%s3225_s3 + $0xf0] sm:$0xff]  ;;  %v164_v10 = vld [vmem:[%s3225_s3 + $0xd8] sm:$0xff]  ;;  %v120_v30 = vmax.f32 %v104_v18, 0.0  ;;  %v106_v46 = vadd.f32 %v2452_v58, %v83_v32  ;;  %v121_v59 = vmax.f32 %v105_v45, 0.0  ;;  %v85_v61 = vmul.f32 %v2271_v41, %v2433_v47 }
  0x2b   :  { %v168_v11 = vld [vmem:[%s3225_s3 + $0xf8] sm:$0xff]  ;;  %v2085_v16 = vcombine.high %v163_v8, %v167_v9  ;;  %v2084_v25 = vcombine.low %v163_v8, %v167_v9  ;;  %v107_v5 = vadd.f32 %v2452_v58, %v84_v55 }
  0x2c   :  { %v2087_v20 = vcombine.high %v164_v10, %v168_v11  ;;  %v2086_v28 = vcombine.low %v164_v10, %v168_v11  ;;  %v2599_v44 = vpack.c.bf16 %v120_v30, %v119_v26  ;;  %v122_v60 = vmax.f32 %v106_v46, 0.0 }
  0x2d   :  { %578 = vmatpush1.bf16.msra.mxu0 %v2056_v21  ;;  %691 = vmatpush1.bf16.msra.mxu1 %v2058_v22  ;;  %v155_v21 = vld [vmem:[%s3225_s3 + $0x90] sm:$0xff]  ;;  %v123_v9 = vmax.f32 %v107_v5, 0.0 }
  0x2e   :  { %789 = vmatprep.subr.bf16.mxu0 %v2117_v23  ;;  %902 = vmatprep.subr.bf16.mxu1 %v2119_v24  ;;  %v159_v22 = vld [vmem:[%s3225_s3 + $0xb0] sm:$0xff]  ;;  %v156_v23 = vld [vmem:[%s3225_s3 + $0x98] sm:$0xff]  ;;  %v133_v4 = vpack.c.bf16 %v122_v60, %v121_v59 }
  0x2f   :  { %v160_v24 = vld [vmem:[%s3225_s3 + $0xb8] sm:$0xff]  ;;  %v2077_v29 = vcombine.high %v155_v21, %v159_v22  ;;  %v2076_v39 = vcombine.low %v155_v21, %v159_v22 }
  0x30   :  { %596 = vmatmul.mubr.bf16.vlgmr.msra.gmra.mxu0 %v2491_v27  ;;  %709 = vmatmul.mubr.bf16.vlgmr.msra.gmra.mxu1 %v2491_v27  ;;  %v2078_v42 = vcombine.low %v156_v23, %v160_v24 }
  0x31   :  { %790 = vmatpush1.bf16.msra.mxu0 %v2116_v34  ;;  %903 = vmatpush1.bf16.msra.mxu1 %v2118_v35  ;;  %v2079_v34 = vcombine.high %v156_v23, %v160_v24  ;;  %v147_v35 = vld [vmem:[%s3225_s3 + $0x50] sm:$0xff] }
  0x32   :  { %605 = vmatprep.mubr.bf16.mxu0 %v2313_v0  ;;  %718 = vmatprep.mubr.bf16.mxu1 %v2313_v0 }
  0x33   :  { %791 = vmatprep.subr.bf16.mxu0 %v2109_v36  ;;  %904 = vmatprep.subr.bf16.mxu1 %v2111_v37  ;;  %v151_v36 = vld [vmem:[%s3225_s3 + $0x70] sm:$0xff]  ;;  %v148_v37 = vld [vmem:[%s3225_s3 + $0x58] sm:$0xff] }
  0x34   :  { %v2069_v43 = vcombine.high %v147_v35, %v151_v36  ;;  %v2068_v54 = vcombine.low %v147_v35, %v151_v36  ;;  %v2070_v56 = vcombine.low %v148_v37, %v152_v38 }
  0x35   :  { %792 = vmatpush1.bf16.msra.mxu0 %v2108_v48  ;;  %905 = vmatpush1.bf16.msra.mxu1 %v2110_v49  ;;  %v2071_v48 = vcombine.high %v148_v37, %v152_v38  ;;  %v139_v49 = vld [vmem:[%s3225_s3 + $0x10] sm:$0xff] }
  0x36   :  { %793 = vmatprep.subr.bf16.mxu0 %v2101_v50  ;;  %906 = vmatprep.subr.bf16.mxu1 %v2103_v51  ;;  %v143_v50 = vld [vmem:[%s3225_s3 + $0x30] sm:$0xff]  ;;  %v140_v51 = vld [vmem:[%s3225_s3 + $0x18] sm:$0xff] }
  0x37   :  { %v2061_v57 = vcombine.high %v139_v49, %v143_v50  ;;  %v2060_v1 = vcombine.low %v139_v49, %v143_v50  ;;  %v2062_v3 = vcombine.low %v140_v51, %v144_v52 }
  0x38   :  { %606 = vmatmul.mubr.bf16.gmra.mxu0 %v2525_v53  ;;  %719 = vmatmul.mubr.bf16.gmra.mxu1 %v2525_v53 }
  0x39   :  { %615 = vmatprep.mubr.bf16.mxu0 %v2313_v0  ;;  %728 = vmatprep.mubr.bf16.mxu1 %v2313_v0 }
  0x3a   :  { %794 = vmatpush1.bf16.msra.mxu0 %v2100_v62  ;;  %907 = vmatpush1.bf16.msra.mxu1 %v2102_v63  ;;  %v2285_v62 = vld [vmem:[%s3222_s0 + $0x30] sm:$0xff]   ;;  %v2063_v63 = vcombine.high %v140_v51, %v144_v52 }
  0x3b   :  { %795 = vmatprep.subr.bf16.mxu0 %v2093_v2  ;;  %908 = vmatprep.subr.bf16.mxu1 %v2095_v6  ;;  %v2274_v2 = vunpack.c.l.bf16 %v2285_v62  ;;  %v108_v6 = vadd.f32 %v2452_v58, %v85_v61  ;;  %v2275_v7 = vunpack.c.h.bf16 %v2285_v62 }
  0x3d   :  { %v86_v8 = vmul.f32 %v2274_v2, %v2433_v47  ;;  %v124_v10 = vmax.f32 %v108_v6, 0.0  ;;  %v87_v11 = vmul.f32 %v2275_v7, %v2433_v47 }
  0x3e   :  { %796 = vmatpush1.bf16.msra.mxu0 %v2092_v12  ;;  %909 = vmatpush1.bf16.msra.mxu1 %v2094_v14  ;;  %v2286_v12 = vld [vmem:[%s3222_s0 + $0x38] sm:$0xff]  }
  0x3f   :  { %797 = vmatprep.subr.bf16.mxu0 %v2085_v16  ;;  %910 = vmatprep.subr.bf16.mxu1 %v2087_v20  ;;  %v109_v13 = vadd.f32 %v2452_v58, %v86_v8  ;;  %v134_v14 = vpack.c.bf16 %v124_v10, %v123_v9  ;;  %v110_v15 = vadd.f32 %v2452_v58, %v87_v11  ;;  %v2278_v16 = vunpack.c.l.bf16 %v2286_v12 }
  0x40   :  { %616 = vmatmul.mubr.bf16.gmra.mxu0 %v2563_v17  ;;  %729 = vmatmul.mubr.bf16.gmra.mxu1 %v2563_v17  ;;  %v2279_v18 = vunpack.c.h.bf16 %v2286_v12 }
  0x41   :  { %625 = vmatprep.mubr.bf16.mxu0 %v2313_v0  ;;  %738 = vmatprep.mubr.bf16.mxu1 %v2313_v0  ;;  %v125_v19 = vmax.f32 %v109_v13, 0.0  ;;  %v126_v20 = vmax.f32 %v110_v15, 0.0  ;;  %v88_v21 = vmul.f32 %v2278_v16, %v2433_v47 }
  0x42   :  { %798 = vmatpush1.bf16.msra.mxu0 %v2084_v25  ;;  %911 = vmatpush1.bf16.msra.mxu1 %v2086_v28  ;;  %v89_v22 = vmul.f32 %v2279_v18, %v2433_v47  ;;  %v203_v47 = vlaneseq }
  0x43   :  { %799 = vmatprep.subr.bf16.mxu0 %v2077_v29  ;;  %912 = vmatprep.subr.bf16.mxu1 %v2079_v34  ;;  %v135_v23 = vpack.c.bf16 %v126_v20, %v125_v19  ;;  %v111_v24 = vadd.f32 %v2452_v58, %v88_v21 }
  0x44   :  { %v112_v25 = vadd.f32 %v2452_v58, %v89_v22  ;;  %v2667_v58 = vshrl.u32 %v203_v47, 7 }
  0x45   :  { %v127_v26 = vmax.f32 %v111_v24, 0.0 }
  0x46   :  { %800 = vmatpush1.bf16.msra.mxu0 %v2076_v39  ;;  %913 = vmatpush1.bf16.msra.mxu1 %v2078_v42  ;;  %v128_v28 = vmax.f32 %v112_v25, 0.0  ;;  %v209_v30 = vsub.s32 1, %v2667_v58  ;;  %v217_v31 = vsub.s32 3, %v2667_v58  ;;  %v221_v36 = vsub.s32 4, %v2667_v58 }
  0x47   :  { %801 = vmatprep.subr.bf16.mxu0 %v2069_v43  ;;  %914 = vmatprep.subr.bf16.mxu1 %v2071_v48  ;;  %v229_v37 = vsub.s32 6, %v2667_v58  ;;  %v225_v52 = vsub.s32 5, %v2667_v58 }
  0x48   :  { %626 = vmatmul.mubr.bf16.gmra.mxu0 %v2599_v44  ;;  %739 = vmatmul.mubr.bf16.gmra.mxu1 %v2599_v44  ;;  %v136_v29 = vpack.c.bf16 %v128_v28, %v127_v26  ;;  %v2314_v28 = vmov 1966171168  }
  0x49   :  { %635 = vmatprep.mubr.bf16.mxu0 %v2313_v0  ;;  %748 = vmatprep.mubr.bf16.mxu1 %v2313_v0 }
  0x4a   :  { %802 = vmatpush1.bf16.msra.mxu0 %v2068_v54  ;;  %915 = vmatpush1.bf16.msra.mxu1 %v2070_v56  ;;  %v233_v54 = vsub.s32 7, %v2667_v58 }
  0x4b   :  { %803 = vmatprep.subr.bf16.mxu0 %v2061_v57  ;;  %916 = vmatprep.subr.bf16.mxu1 %v2063_v63 }
  0x4e   :  { %804 = vmatpush1.bf16.msra.mxu0 %v2060_v1  ;;  %917 = vmatpush1.bf16.msra.mxu1 %v2062_v3 }
  0x50   :  { %636 = vmatmul.mubr.bf16.gmra.mxu0 %v133_v4  ;;  %749 = vmatmul.mubr.bf16.gmra.mxu1 %v133_v4 }
  0x51   :  { %645 = vmatprep.mubr.bf16.mxu0 %v2313_v0  ;;  %758 = vmatprep.mubr.bf16.mxu1 %v2313_v0 }
  0x58   :  { %646 = vmatmul.mubr.bf16.gmra.mxu0 %v134_v14  ;;  %759 = vmatmul.mubr.bf16.gmra.mxu1 %v134_v14 }
  0x59   :  { %655 = vmatprep.mubr.bf16.mxu0 %v2313_v0  ;;  %768 = vmatprep.mubr.bf16.mxu1 %v2313_v0 }
  0x60   :  { %656 = vmatmul.mubr.bf16.gmra.mxu0 %v135_v23  ;;  %769 = vmatmul.mubr.bf16.gmra.mxu1 %v135_v23 }
  0x61   :  { %665 = vmatprep.mubr.bf16.mxu0 %v2313_v0  ;;  %778 = vmatprep.mubr.bf16.mxu1 %v2313_v0 }
  0x68   :  { %666 = vmatmul.mubr.bf16.gmra.mxu0 %v136_v29  ;;  %779 = vmatmul.mubr.bf16.gmra.mxu1 %v136_v29 }
  0x69   :  { %821 = vmatprep.mubr.bf16.mxu0 %v2313_v0  ;;  %934 = vmatprep.mubr.bf16.mxu1 %v2313_v0 }
  0x70   :  { %822 = vmatmul.mubr.bf16.vlgmr.msra.gmra.mxu0 %v2491_v27  ;;  %935 = vmatmul.mubr.bf16.vlgmr.msra.gmra.mxu1 %v2491_v27  ;;  %v205_v27 = vsub.s32 0, %v2667_v58 }
  0x71   :  { %831 = vmatprep.mubr.bf16.mxu0 %v2313_v0  ;;  %944 = vmatprep.mubr.bf16.mxu1 %v2313_v0 }
  0x78   :  { %832 = vmatmul.mubr.bf16.gmra.mxu0 %v2525_v53  ;;  %945 = vmatmul.mubr.bf16.gmra.mxu1 %v2525_v53  ;;  %v213_v53 = vsub.s32 2, %v2667_v58 }
  0x79   :  { %841 = vmatprep.mubr.bf16.mxu0 %v2313_v0  ;;  %954 = vmatprep.mubr.bf16.mxu1 %v2313_v0 }
  0x80   :  { %842 = vmatmul.mubr.bf16.gmra.mxu0 %v2563_v17  ;;  %955 = vmatmul.mubr.bf16.gmra.mxu1 %v2563_v17  ;;  %v2671_v17 = vld [vmem:[#allocation2] sm:$0xff] }
  0x81   :  { %851 = vmatprep.mubr.bf16.mxu0 %v2313_v0  ;;  %964 = vmatprep.mubr.bf16.mxu1 %v2313_v0  ;;  %v2676_v32 = vrot.slane %v2671_v17, %v205_v27  ;;  %v2682_v33 = vrot.slane %v2671_v17, %v209_v30  ;;  %v2685_v35 = vrot.slane %v2671_v17, %v217_v31 }
  0x82   :  { %v2694_v46 = vrot.slane %v2671_v17, %v221_v36  ;;  %v2697_v48 = vrot.slane %v2671_v17, %v229_v37  ;;  %v2724_v47 = vrot.slane %v2671_v17, %v225_v52 }
  0x88   :  { %852 = vmatmul.mubr.bf16.gmra.mxu0 %v2599_v44  ;;  %965 = vmatmul.mubr.bf16.gmra.mxu1 %v2599_v44 }
  0x89   :  { %861 = vmatprep.mubr.bf16.mxu0 %v2313_v0  ;;  %974 = vmatprep.mubr.bf16.mxu1 %v2313_v0 }
  0x90   :  { %862 = vmatmul.mubr.bf16.gmra.mxu0 %v133_v4  ;;  %975 = vmatmul.mubr.bf16.gmra.mxu1 %v133_v4 }
  0x91   :  { %871 = vmatprep.mubr.bf16.mxu0 %v2313_v0  ;;  %984 = vmatprep.mubr.bf16.mxu1 %v2313_v0 }
  0x98   :  { %872 = vmatmul.mubr.bf16.gmra.mxu0 %v134_v14  ;;  %985 = vmatmul.mubr.bf16.gmra.mxu1 %v134_v14 }
  0x99   :  { %881 = vmatprep.mubr.bf16.mxu0 %v2313_v0  ;;  %994 = vmatprep.mubr.bf16.mxu1 %v2313_v0 }
  0xa0   :  { %882 = vmatmul.mubr.bf16.gmra.mxu0 %v135_v23  ;;  %995 = vmatmul.mubr.bf16.gmra.mxu1 %v135_v23 }
  0xa1   :  { %891 = vmatprep.mubr.bf16.mxu0 %v2313_v0  ;;  %1004 = vmatprep.mubr.bf16.mxu1 %v2313_v0  ;;  %v2679_v0 = vrot.slane %v2671_v17, %v213_v53 }
  0xa8   :  { %892 = vmatmul.mubr.bf16.gmra.mxu0 %v136_v29  ;;  %1005 = vmatmul.mubr.bf16.gmra.mxu1 %v136_v29  ;;  %v2721_v29 = vunpack.c.l.s4 %v2314_v28 }
  0xf0   :  { %v597_v34 = vpop.f32.mrf.mxu0  ;;  %v710_v38 = vpop.f32.mrf.mxu1 }
  0xf1   :  { %v598_v39 = vadd.f32 %v597_v34, %v2676_v32  ;;  %v711_v40 = vadd.f32 %v710_v38, %v2679_v0 }
  0xf2   :  { %v599_v41 = vpop.f32.mrf.mxu0  ;;  %v712_v43 = vpop.f32.mrf.mxu1 }
  0xf3   :  { %v600_v42 = vadd.f32 %v599_v41, %v2682_v33  ;;  %v713_v44 = vadd.f32 %v712_v43, %v2685_v35  ;;  %v1631_v55 = vmul.f32 %v598_v39, %v598_v39  ;;  %v1633_v56 = vmul.f32 %v711_v40, %v711_v40 }
  0xf4   :  { %v601_v45 = vpop.f32.mrf.mxu0  ;;  %v714_v51 = vpop.f32.mrf.mxu1 }
  0xf5   :  { %v2184_v49 = vpack.c.bf16 %v600_v42, %v598_v39  ;;  %v602_v50 = vadd.f32 %v601_v45, %v2676_v32  ;;  %v2185_v57 = vpack.c.bf16 %v713_v44, %v711_v40  ;;  %v715_v59 = vadd.f32 %v714_v51, %v2679_v0 }
  0xf6   :  { %v603_v60 = vpop.f32.mrf.mxu0  ;;  %v1632_v61 = vmul.f32 %v600_v42, %v600_v42  ;;  %v716_v2 = vpop.f32.mrf.mxu1  ;;  %v1634_v3 = vmul.f32 %v713_v44, %v713_v44 }
  0xf7   :  { %1399 = vst [vmem:[%s3227_s5] sm:$0xff] %v2184_v49  ;;  %v1463_v62 = vadd.f32 %v602_v50, %v598_v39  ;;  %v1639_v63 = vmul.f32 %v602_v50, %v602_v50  ;;  %v604_v1 = vadd.f32 %v603_v60, %v2682_v33  ;;  %1400 = vst [vmem:[%s3227_s5 + $0x8] sm:$0xff] %v2185_v57 }
  0xf8   :  { %v1505_v4 = vadd.f32 %v715_v59, %v711_v40  ;;  %v1641_v5 = vmul.f32 %v715_v59, %v715_v59  ;;  %v717_v6 = vadd.f32 %v716_v2, %v2685_v35  ;;  %v607_v7 = vpop.f32.mrf.mxu0  ;;  %v720_v12 = vpop.f32.mrf.mxu1 }
  0xf9   :  { %v1759_v8 = vadd.f32 %v1639_v63, %v1631_v55  ;;  %v2188_v9 = vpack.c.bf16 %v604_v1, %v602_v50  ;;  %v1484_v10 = vadd.f32 %v604_v1, %v600_v42  ;;  %v1640_v11 = vmul.f32 %v604_v1, %v604_v1 }
  0xfa   :  { %v1801_v13 = vadd.f32 %v1641_v5, %v1633_v56  ;;  %v2189_v14 = vpack.c.bf16 %v717_v6, %v715_v59  ;;  %v1526_v15 = vadd.f32 %v717_v6, %v713_v44  ;;  %v1642_v16 = vmul.f32 %v717_v6, %v717_v6  ;;  %v609_v18 = vpop.f32.mrf.mxu0  ;;  %v722_v23 = vpop.f32.mrf.mxu1 }
  0xfb   :  { %1403 = vst [vmem:[%s3227_s5 + $0x20] sm:$0xff] %v2188_v9  ;;  %v1780_v19 = vadd.f32 %v1640_v11, %v1632_v61  ;;  %v608_v20 = vadd.f32 %v607_v7, %v2676_v32  ;;  %v721_v21 = vadd.f32 %v720_v12, %v2679_v0  ;;  %v610_v22 = vadd.f32 %v609_v18, %v2682_v33 }
  0xfc   :  { %1404 = vst [vmem:[%s3227_s5 + $0x28] sm:$0xff] %v2189_v14  ;;  %v1822_v24 = vadd.f32 %v1642_v16, %v1634_v3  ;;  %v723_v25 = vadd.f32 %v722_v23, %v2685_v35  ;;  %v611_v26 = vpop.f32.mrf.mxu0  ;;  %v724_v34 = vpop.f32.mrf.mxu1  ;;  %v2740_v61 = vrot.slane %v2671_v17, %v233_v54 }
  0xfd   :  { %v1464_v27 = vadd.f32 %v1463_v62, %v608_v20  ;;  %v1647_v53 = vmul.f32 %v608_v20, %v608_v20  ;;  %v1506_v30 = vadd.f32 %v1505_v4, %v721_v21  ;;  %v1649_v31 = vmul.f32 %v721_v21, %v721_v21 }
  0xfe   :  { %v2192_v36 = vpack.c.bf16 %v610_v22, %v608_v20  ;;  %v1485_v37 = vadd.f32 %v1484_v10, %v610_v22  ;;  %v1648_v38 = vmul.f32 %v610_v22, %v610_v22  ;;  %v2193_v39 = vpack.c.bf16 %v723_v25, %v721_v21  ;;  %v613_v40 = vpop.f32.mrf.mxu0  ;;  %v726_v45 = vpop.f32.mrf.mxu1 }
  0xff   :  { %v1760_v41 = vadd.f32 %v1759_v8, %v1647_v53  ;;  %v1802_v42 = vadd.f32 %v1801_v13, %v1649_v31  ;;  %v1527_v43 = vadd.f32 %v1526_v15, %v723_v25  ;;  %v1650_v44 = vmul.f32 %v723_v25, %v723_v25 }
 0x100   :  { %1407 = vst [vmem:[%s3227_s5 + $0x40] sm:$0xff] %v2192_v36  ;;  %v1781_v49 = vadd.f32 %v1780_v19, %v1648_v38  ;;  %1408 = vst [vmem:[%s3227_s5 + $0x48] sm:$0xff] %v2193_v39  ;;  %v612_v50 = vadd.f32 %v611_v26, %v2676_v32  ;;  %v725_v51 = vadd.f32 %v724_v34, %v2679_v0  ;;  %v617_v55 = vpop.f32.mrf.mxu0  ;;  %v730_v60 = vpop.f32.mrf.mxu1 }
 0x101   :  { %v614_v52 = vadd.f32 %v613_v40, %v2682_v33  ;;  %v1823_v56 = vadd.f32 %v1822_v24, %v1650_v44  ;;  %v727_v57 = vadd.f32 %v726_v45, %v2685_v35  ;;  %v618_v59 = vadd.f32 %v617_v55, %v2676_v32 }
 0x102   :  { %v1465_v62 = vadd.f32 %v1464_v27, %v612_v50  ;;  %v1655_v63 = vmul.f32 %v612_v50, %v612_v50  ;;  %v1507_v1 = vadd.f32 %v1506_v30, %v725_v51  ;;  %v1657_v2 = vmul.f32 %v725_v51, %v725_v51  ;;  %v619_v3 = vpop.f32.mrf.mxu0  ;;  %v732_v8 = vpop.f32.mrf.mxu1 }
 0x103   :  { %v2196_v4 = vpack.c.bf16 %v614_v52, %v612_v50  ;;  %v1486_v5 = vadd.f32 %v1485_v37, %v614_v52  ;;  %v1656_v6 = vmul.f32 %v614_v52, %v614_v52  ;;  %v2197_v7 = vpack.c.bf16 %v727_v57, %v725_v51 }
 0x104   :  { %v1761_v9 = vadd.f32 %v1760_v41, %v1655_v63  ;;  %v1803_v10 = vadd.f32 %v1802_v42, %v1657_v2  ;;  %v1528_v11 = vadd.f32 %v1527_v43, %v727_v57  ;;  %v1658_v12 = vmul.f32 %v727_v57, %v727_v57  ;;  %v621_v13 = vpop.f32.mrf.mxu0  ;;  %v734_v16 = vpop.f32.mrf.mxu1 }
 0x105   :  { %1411 = vst [vmem:[%s3227_s5 + $0x60] sm:$0xff] %v2196_v4  ;;  %v1782_v17 = vadd.f32 %v1781_v49, %v1656_v6  ;;  %1412 = vst [vmem:[%s3227_s5 + $0x68] sm:$0xff] %v2197_v7  ;;  %v1466_v54 = vadd.f32 %v1465_v62, %v618_v59  ;;  %v1663_v14 = vmul.f32 %v618_v59, %v618_v59 }
 0x106   :  { %v731_v15 = vadd.f32 %v730_v60, %v2679_v0  ;;  %v1824_v18 = vadd.f32 %v1823_v56, %v1658_v12  ;;  %v620_v19 = vadd.f32 %v619_v3, %v2682_v33  ;;  %v733_v20 = vadd.f32 %v732_v8, %v2685_v35  ;;  %v623_v22 = vpop.f32.mrf.mxu0  ;;  %v736_v28 = vpop.f32.mrf.mxu1 }
 0x107   :  { %v622_v21 = vadd.f32 %v621_v13, %v2676_v32  ;;  %v1762_v23 = vadd.f32 %v1761_v9, %v1663_v14  ;;  %v735_v26 = vadd.f32 %v734_v16, %v2679_v0  ;;  %v624_v50 = vadd.f32 %v623_v22, %v2682_v33 }
 0x108   :  { %v1508_v24 = vadd.f32 %v1507_v1, %v731_v15  ;;  %v1665_v25 = vmul.f32 %v731_v15, %v731_v15  ;;  %v2200_v27 = vpack.c.bf16 %v620_v19, %v618_v59  ;;  %v1487_v53 = vadd.f32 %v1486_v5, %v620_v19  ;;  %v627_v34 = vpop.f32.mrf.mxu0  ;;  %v740_v40 = vpop.f32.mrf.mxu1 }
 0x109   :  { %v1664_v30 = vmul.f32 %v620_v19, %v620_v19  ;;  %v2201_v31 = vpack.c.bf16 %v733_v20, %v731_v15  ;;  %v1529_v37 = vadd.f32 %v1528_v11, %v733_v20  ;;  %v1666_v38 = vmul.f32 %v733_v20, %v733_v20 }
 0x10a   :  { %v1804_v36 = vadd.f32 %v1803_v10, %v1665_v25  ;;  %v1467_v39 = vadd.f32 %v1466_v54, %v622_v21  ;;  %1415 = vst [vmem:[%s3227_s5 + $0x80] sm:$0xff] %v2200_v27  ;;  %v1671_v42 = vmul.f32 %v622_v21, %v622_v21  ;;  %v1509_v43 = vadd.f32 %v1508_v24, %v735_v26  ;;  %v629_v45 = vpop.f32.mrf.mxu0  ;;  %v742_v55 = vpop.f32.mrf.mxu1 }
 0x10b   :  { %v1783_v41 = vadd.f32 %v1782_v17, %v1664_v30  ;;  %1416 = vst [vmem:[%s3227_s5 + $0x88] sm:$0xff] %v2201_v31  ;;  %v1673_v44 = vmul.f32 %v735_v26, %v735_v26  ;;  %v1825_v49 = vadd.f32 %v1824_v18, %v1666_v38  ;;  %v737_v51 = vadd.f32 %v736_v28, %v2685_v35 }
 0x10c   :  { %v628_v52 = vadd.f32 %v627_v34, %v2676_v32  ;;  %v1763_v56 = vadd.f32 %v1762_v23, %v1671_v42  ;;  %v741_v59 = vadd.f32 %v740_v40, %v2679_v0  ;;  %v630_v60 = vadd.f32 %v629_v45, %v2682_v33  ;;  %v631_v62 = vpop.f32.mrf.mxu0  ;;  %v744_v4 = vpop.f32.mrf.mxu1 }
 0x10d   :  { %v1805_v57 = vadd.f32 %v1804_v36, %v1673_v44  ;;  %v2204_v63 = vpack.c.bf16 %v624_v50, %v622_v21  ;;  %v1488_v1 = vadd.f32 %v1487_v53, %v624_v50  ;;  %v1672_v2 = vmul.f32 %v624_v50, %v624_v50 }
 0x10e   :  { %v2205_v3 = vpack.c.bf16 %v737_v51, %v735_v26  ;;  %v1530_v5 = vadd.f32 %v1529_v37, %v737_v51  ;;  %v1674_v6 = vmul.f32 %v737_v51, %v737_v51  ;;  %v1468_v7 = vadd.f32 %v1467_v39, %v628_v52  ;;  %v633_v9 = vpop.f32.mrf.mxu0  ;;  %v746_v17 = vpop.f32.mrf.mxu1 }
 0x10f   :  { %v1679_v8 = vmul.f32 %v628_v52, %v628_v52  ;;  %1419 = vst [vmem:[%s3227_s5 + $0xa0] sm:$0xff] %v2204_v63  ;;  %v1784_v10 = vadd.f32 %v1783_v41, %v1672_v2  ;;  %v1510_v11 = vadd.f32 %v1509_v43, %v741_v59  ;;  %v1681_v12 = vmul.f32 %v741_v59, %v741_v59 }
 0x110   :  { %1420 = vst [vmem:[%s3227_s5 + $0xa8] sm:$0xff] %v2205_v3  ;;  %v2208_v13 = vpack.c.bf16 %v630_v60, %v628_v52  ;;  %v1826_v54 = vadd.f32 %v1825_v49, %v1674_v6  ;;  %v1489_v15 = vadd.f32 %v1488_v1, %v630_v60  ;;  %v1680_v16 = vmul.f32 %v630_v60, %v630_v60  ;;  %v637_v18 = vpop.f32.mrf.mxu0  ;;  %v750_v23 = vpop.f32.mrf.mxu1 }
 0x111   :  { %v1764_v14 = vadd.f32 %v1763_v56, %v1679_v8  ;;  %v1806_v19 = vadd.f32 %v1805_v57, %v1681_v12  ;;  %v743_v20 = vadd.f32 %v742_v55, %v2685_v35  ;;  %v632_v21 = vadd.f32 %v631_v62, %v2676_v32 }
 0x112   :  { %1423 = vst [vmem:[%s3227_s5 + $0xc0] sm:$0xff] %v2208_v13  ;;  %v745_v22 = vadd.f32 %v744_v4, %v2679_v0  ;;  %v1785_v24 = vadd.f32 %v1784_v10, %v1680_v16  ;;  %v634_v25 = vadd.f32 %v633_v9, %v2682_v33  ;;  %v747_v26 = vadd.f32 %v746_v17, %v2685_v35  ;;  %v639_v27 = vpop.f32.mrf.mxu0  ;;  %v752_v36 = vpop.f32.mrf.mxu1 }
 0x113   :  { %v638_v28 = vadd.f32 %v637_v18, %v2676_v32  ;;  %v2209_v53 = vpack.c.bf16 %v743_v20, %v741_v59  ;;  %v1531_v30 = vadd.f32 %v1530_v5, %v743_v20  ;;  %v1682_v31 = vmul.f32 %v743_v20, %v743_v20 }
 0x114   :  { %v1469_v34 = vadd.f32 %v1468_v7, %v632_v21  ;;  %v1687_v37 = vmul.f32 %v632_v21, %v632_v21  ;;  %v1511_v38 = vadd.f32 %v1510_v11, %v745_v22  ;;  %v1689_v39 = vmul.f32 %v745_v22, %v745_v22  ;;  %v641_v41 = vpop.f32.mrf.mxu0  ;;  %v754_v49 = vpop.f32.mrf.mxu1 }
 0x115   :  { %v2212_v40 = vpack.c.bf16 %v634_v25, %v632_v21  ;;  %1424 = vst [vmem:[%s3227_s5 + $0xc8] sm:$0xff] %v2209_v53  ;;  %v1827_v42 = vadd.f32 %v1826_v54, %v1682_v31  ;;  %v1490_v43 = vadd.f32 %v1489_v15, %v634_v25  ;;  %v1688_v44 = vmul.f32 %v634_v25, %v634_v25 }
 0x116   :  { %v2213_v45 = vpack.c.bf16 %v747_v26, %v745_v22  ;;  %v1765_v50 = vadd.f32 %v1764_v14, %v1687_v37  ;;  %v1807_v51 = vadd.f32 %v1806_v19, %v1689_v39  ;;  %v1532_v52 = vadd.f32 %v1531_v30, %v747_v26  ;;  %v643_v56 = vpop.f32.mrf.mxu0  ;;  %v756_v63 = vpop.f32.mrf.mxu1 }
 0x117   :  { %1427 = vst [vmem:[%s3227_s5 + $0xe0] sm:$0xff] %v2212_v40  ;;  %v1690_v55 = vmul.f32 %v747_v26, %v747_v26  ;;  %v1786_v57 = vadd.f32 %v1785_v24, %v1688_v44  ;;  %v1470_v59 = vadd.f32 %v1469_v34, %v638_v28  ;;  %v1695_v60 = vmul.f32 %v638_v28, %v638_v28 }
 0x118   :  { %1428 = vst [vmem:[%s3227_s5 + $0xe8] sm:$0xff] %v2213_v45  ;;  %v751_v62 = vadd.f32 %v750_v23, %v2679_v0  ;;  %v640_v2 = vadd.f32 %v639_v27, %v2682_v33  ;;  %v753_v3 = vadd.f32 %v752_v36, %v2685_v35  ;;  %v642_v4 = vadd.f32 %v641_v41, %v2676_v32  ;;  %v647_v5 = vpop.f32.mrf.mxu0  ;;  %v760_v10 = vpop.f32.mrf.mxu1 }
 0x119   :  { %v1828_v1 = vadd.f32 %v1827_v42, %v1690_v55  ;;  %v1766_v6 = vadd.f32 %v1765_v50, %v1695_v60  ;;  %v755_v9 = vadd.f32 %v754_v49, %v2679_v0  ;;  %v644_v26 = vadd.f32 %v643_v56, %v2682_v33 }
 0x11a   :  { %v1512_v7 = vadd.f32 %v1511_v38, %v751_v62  ;;  %v1697_v8 = vmul.f32 %v751_v62, %v751_v62  ;;  %v2216_v11 = vpack.c.bf16 %v640_v2, %v638_v28  ;;  %v1491_v12 = vadd.f32 %v1490_v43, %v640_v2  ;;  %v649_v54 = vpop.f32.mrf.mxu0  ;;  %v762_v19 = vpop.f32.mrf.mxu1 }
 0x11b   :  { %v1696_v13 = vmul.f32 %v640_v2, %v640_v2  ;;  %v2217_v17 = vpack.c.bf16 %v753_v3, %v751_v62  ;;  %v1533_v15 = vadd.f32 %v1532_v52, %v753_v3  ;;  %v1698_v16 = vmul.f32 %v753_v3, %v753_v3 }
 0x11c   :  { %v1808_v14 = vadd.f32 %v1807_v51, %v1697_v8  ;;  %v1471_v18 = vadd.f32 %v1470_v59, %v642_v4  ;;  %1431 = vst [vmem:[%s3227_s5 + $0x100] sm:$0xff] %v2216_v11  ;;  %v1703_v21 = vmul.f32 %v642_v4, %v642_v4  ;;  %v1513_v22 = vadd.f32 %v1512_v7, %v755_v9  ;;  %v651_v24 = vpop.f32.mrf.mxu0  ;;  %v764_v53 = vpop.f32.mrf.mxu1 }
 0x11d   :  { %v1787_v20 = vadd.f32 %v1786_v57, %v1696_v13  ;;  %1432 = vst [vmem:[%s3227_s5 + $0x108] sm:$0xff] %v2217_v17  ;;  %v1705_v23 = vmul.f32 %v755_v9, %v755_v9  ;;  %v1829_v25 = vadd.f32 %v1828_v1, %v1698_v16  ;;  %v757_v28 = vadd.f32 %v756_v63, %v2685_v35 }
 0x11e   :  { %v648_v27 = vadd.f32 %v647_v5, %v2676_v32  ;;  %v1767_v30 = vadd.f32 %v1766_v6, %v1703_v21  ;;  %v761_v34 = vadd.f32 %v760_v10, %v2679_v0  ;;  %v650_v36 = vadd.f32 %v649_v54, %v2682_v33  ;;  %v653_v37 = vpop.f32.mrf.mxu0  ;;  %v766_v42 = vpop.f32.mrf.mxu1 }
 0x11f   :  { %v1809_v31 = vadd.f32 %v1808_v14, %v1705_v23  ;;  %v2220_v38 = vpack.c.bf16 %v644_v26, %v642_v4  ;;  %v1492_v39 = vadd.f32 %v1491_v12, %v644_v26  ;;  %v1704_v40 = vmul.f32 %v644_v26, %v644_v26 }
 0x120   :  { %v2221_v41 = vpack.c.bf16 %v757_v28, %v755_v9  ;;  %v1534_v43 = vadd.f32 %v1533_v15, %v757_v28  ;;  %v1706_v44 = vmul.f32 %v757_v28, %v757_v28  ;;  %v1472_v45 = vadd.f32 %v1471_v18, %v648_v27  ;;  %v657_v50 = vpop.f32.mrf.mxu0  ;;  %v770_v57 = vpop.f32.mrf.mxu1 }
 0x121   :  { %v1711_v49 = vmul.f32 %v648_v27, %v648_v27  ;;  %1435 = vst [vmem:[%s3227_s5 + $0x120] sm:$0xff] %v2220_v38  ;;  %v1788_v51 = vadd.f32 %v1787_v20, %v1704_v40  ;;  %v1514_v52 = vadd.f32 %v1513_v22, %v761_v34  ;;  %v1713_v55 = vmul.f32 %v761_v34, %v761_v34 }
 0x122   :  { %1436 = vst [vmem:[%s3227_s5 + $0x128] sm:$0xff] %v2221_v41  ;;  %v2224_v56 = vpack.c.bf16 %v650_v36, %v648_v27  ;;  %v1830_v59 = vadd.f32 %v1829_v25, %v1706_v44  ;;  %v1493_v62 = vadd.f32 %v1492_v39, %v650_v36  ;;  %v1712_v63 = vmul.f32 %v650_v36, %v650_v36  ;;  %v659_v1 = vpop.f32.mrf.mxu0  ;;  %v772_v6 = vpop.f32.mrf.mxu1 }
 0x123   :  { %v1768_v60 = vadd.f32 %v1767_v30, %v1711_v49  ;;  %v1810_v2 = vadd.f32 %v1809_v31, %v1713_v55  ;;  %v763_v3 = vadd.f32 %v762_v19, %v2685_v35  ;;  %v652_v4 = vadd.f32 %v651_v24, %v2676_v32 }
 0x124   :  { %1439 = vst [vmem:[%s3227_s5 + $0x140] sm:$0xff] %v2224_v56  ;;  %v765_v5 = vadd.f32 %v764_v53, %v2679_v0  ;;  %v1789_v7 = vadd.f32 %v1788_v51, %v1712_v63  ;;  %v654_v8 = vadd.f32 %v653_v37, %v2682_v33  ;;  %v767_v9 = vadd.f32 %v766_v42, %v2685_v35  ;;  %v661_v11 = vpop.f32.mrf.mxu0  ;;  %v774_v14 = vpop.f32.mrf.mxu1 }
 0x125   :  { %v658_v10 = vadd.f32 %v657_v50, %v2676_v32  ;;  %v2225_v12 = vpack.c.bf16 %v763_v3, %v761_v34  ;;  %v1535_v13 = vadd.f32 %v1534_v43, %v763_v3  ;;  %v1714_v17 = vmul.f32 %v763_v3, %v763_v3 }
 0x126   :  { %v1473_v54 = vadd.f32 %v1472_v45, %v652_v4  ;;  %v1719_v15 = vmul.f32 %v652_v4, %v652_v4  ;;  %v1515_v16 = vadd.f32 %v1514_v52, %v765_v5  ;;  %v1721_v18 = vmul.f32 %v765_v5, %v765_v5  ;;  %v663_v20 = vpop.f32.mrf.mxu0  ;;  %v776_v25 = vpop.f32.mrf.mxu1 }
 0x127   :  { %v2228_v19 = vpack.c.bf16 %v654_v8, %v652_v4  ;;  %1440 = vst [vmem:[%s3227_s5 + $0x148] sm:$0xff] %v2225_v12  ;;  %v1831_v21 = vadd.f32 %v1830_v59, %v1714_v17  ;;  %v1494_v22 = vadd.f32 %v1493_v62, %v654_v8  ;;  %v1720_v23 = vmul.f32 %v654_v8, %v654_v8 }
 0x128   :  { %v2229_v24 = vpack.c.bf16 %v767_v9, %v765_v5  ;;  %v1769_v26 = vadd.f32 %v1768_v60, %v1719_v15  ;;  %v1811_v28 = vadd.f32 %v1810_v2, %v1721_v18  ;;  %v1536_v27 = vadd.f32 %v1535_v13, %v767_v9  ;;  %v667_v30 = vpop.f32.mrf.mxu0  ;;  %v780_v38 = vpop.f32.mrf.mxu1 }
 0x129   :  { %1443 = vst [vmem:[%s3227_s5 + $0x160] sm:$0xff] %v2228_v19  ;;  %v1722_v53 = vmul.f32 %v767_v9, %v767_v9  ;;  %v1790_v31 = vadd.f32 %v1789_v7, %v1720_v23  ;;  %v1474_v34 = vadd.f32 %v1473_v54, %v658_v10  ;;  %v1727_v36 = vmul.f32 %v658_v10, %v658_v10 }
 0x12a   :  { %1444 = vst [vmem:[%s3227_s5 + $0x168] sm:$0xff] %v2229_v24  ;;  %v771_v37 = vadd.f32 %v770_v57, %v2679_v0  ;;  %v660_v40 = vadd.f32 %v659_v1, %v2682_v33  ;;  %v773_v41 = vadd.f32 %v772_v6, %v2685_v35  ;;  %v662_v42 = vadd.f32 %v661_v11, %v2676_v32  ;;  %v669_v43 = vpop.f32.mrf.mxu0  ;;  %v782_v51 = vpop.f32.mrf.mxu1 }
 0x12b   :  { %v1832_v39 = vadd.f32 %v1831_v21, %v1722_v53  ;;  %v1770_v44 = vadd.f32 %v1769_v26, %v1727_v36  ;;  %v775_v50 = vadd.f32 %v774_v14, %v2679_v0  ;;  %v664_v9 = vadd.f32 %v663_v20, %v2682_v33 }
 0x12c   :  { %v1516_v45 = vadd.f32 %v1515_v16, %v771_v37  ;;  %v1729_v49 = vmul.f32 %v771_v37, %v771_v37  ;;  %v2232_v52 = vpack.c.bf16 %v660_v40, %v658_v10  ;;  %v1495_v55 = vadd.f32 %v1494_v22, %v660_v40  ;;  %v671_v57 = vpop.f32.mrf.mxu0  ;;  %v784_v2 = vpop.f32.mrf.mxu1 }
 0x12d   :  { %v1728_v56 = vmul.f32 %v660_v40, %v660_v40  ;;  %v2233_v59 = vpack.c.bf16 %v773_v41, %v771_v37  ;;  %v1537_v62 = vadd.f32 %v1536_v27, %v773_v41  ;;  %v1730_v63 = vmul.f32 %v773_v41, %v773_v41 }
 0x12e   :  { %v1812_v60 = vadd.f32 %v1811_v28, %v1729_v49  ;;  %v1475_v1 = vadd.f32 %v1474_v34, %v662_v42  ;;  %1447 = vst [vmem:[%s3227_s5 + $0x180] sm:$0xff] %v2232_v52  ;;  %v1735_v4 = vmul.f32 %v662_v42, %v662_v42  ;;  %v1517_v5 = vadd.f32 %v1516_v45, %v775_v50  ;;  %v673_v7 = vpop.f32.mrf.mxu0  ;;  %v786_v12 = vpop.f32.mrf.mxu1 }
 0x12f   :  { %v1791_v3 = vadd.f32 %v1790_v31, %v1728_v56  ;;  %1448 = vst [vmem:[%s3227_s5 + $0x188] sm:$0xff] %v2233_v59  ;;  %v1737_v6 = vmul.f32 %v775_v50, %v775_v50  ;;  %v1833_v8 = vadd.f32 %v1832_v39, %v1730_v63  ;;  %v777_v10 = vadd.f32 %v776_v25, %v2685_v35 }
 0x130   :  { %v668_v11 = vadd.f32 %v667_v30, %v2676_v32  ;;  %v1771_v13 = vadd.f32 %v1770_v44, %v1735_v4  ;;  %v781_v54 = vadd.f32 %v780_v38, %v2679_v0  ;;  %v670_v14 = vadd.f32 %v669_v43, %v2682_v33  ;;  %v2844_v15 = vpop.f32.mrf.mxu0  ;;  %v2846_v22 = vpop.f32.mrf.mxu1 }
 0x131   :  { %v1813_v17 = vadd.f32 %v1812_v60, %v1737_v6  ;;  %v2236_v16 = vpack.c.bf16 %v664_v9, %v662_v42  ;;  %v1496_v18 = vadd.f32 %v1495_v55, %v664_v9  ;;  %v1736_v19 = vmul.f32 %v664_v9, %v664_v9 }
 0x132   :  { %v2237_v21 = vpack.c.bf16 %v777_v10, %v775_v50  ;;  %v1538_v20 = vadd.f32 %v1537_v62, %v777_v10  ;;  %v1738_v23 = vmul.f32 %v777_v10, %v777_v10  ;;  %v1476_v24 = vadd.f32 %v1475_v1, %v668_v11  ;;  %v2848_v26 = vpop.f32.mrf.mxu0  ;;  %v2856_v31 = vpop.f32.mrf.mxu1 }
 0x133   :  { %v1743_v25 = vmul.f32 %v668_v11, %v668_v11  ;;  %1451 = vst [vmem:[%s3227_s5 + $0x1a0] sm:$0xff] %v2236_v16  ;;  %v1792_v28 = vadd.f32 %v1791_v3, %v1736_v19  ;;  %v1518_v27 = vadd.f32 %v1517_v5, %v781_v54  ;;  %v1745_v53 = vmul.f32 %v781_v54, %v781_v54 }
 0x134   :  { %1452 = vst [vmem:[%s3227_s5 + $0x1a8] sm:$0xff] %v2237_v21  ;;  %v2240_v30 = vpack.c.bf16 %v670_v14, %v668_v11  ;;  %v1834_v34 = vadd.f32 %v1833_v8, %v1738_v23  ;;  %v1497_v37 = vadd.f32 %v1496_v18, %v670_v14  ;;  %v1744_v38 = vmul.f32 %v670_v14, %v670_v14  ;;  %v2858_v39 = vpop.f32.mrf.mxu0  ;;  %v2866_v44 = vpop.f32.mrf.mxu1 }
 0x135   :  { %v1772_v36 = vadd.f32 %v1771_v13, %v1743_v25  ;;  %v1814_v40 = vadd.f32 %v1813_v17, %v1745_v53  ;;  %v783_v41 = vadd.f32 %v782_v51, %v2685_v35  ;;  %v672_v42 = vadd.f32 %v671_v57, %v2676_v32 }
 0x136   :  { %1455 = vst [vmem:[%s3227_s5 + $0x1c0] sm:$0xff] %v2240_v30  ;;  %v785_v43 = vadd.f32 %v784_v2, %v2679_v0  ;;  %v1793_v45 = vadd.f32 %v1792_v28, %v1744_v38  ;;  %v674_v49 = vadd.f32 %v673_v7, %v2682_v33  ;;  %v1949_v50 = vunpack.c.0.s8 %v2721_v29  ;;  %v2871_v55 = vpop.f32.mrf.mxu0  ;;  %v2873_v51 = vpop.f32.mrf.mxu1 }
 0x137   :  { %v787_v52 = vadd.f32 %v786_v12, %v2685_v35  ;;  %v2241_v56 = vpack.c.bf16 %v783_v41, %v781_v54  ;;  %v1539_v59 = vadd.f32 %v1538_v20, %v783_v41  ;;  %v1746_v60 = vmul.f32 %v783_v41, %v783_v41 }
 0x138   :  { %v1477_v62 = vadd.f32 %v1476_v24, %v672_v42  ;;  %v1751_v32 = vmul.f32 %v672_v42, %v672_v42  ;;  %v1519_v57 = vadd.f32 %v1518_v27, %v785_v43  ;;  %v1753_v0 = vmul.f32 %v785_v43, %v785_v43  ;;  %v2875_v1 = vpop.f32.mrf.mxu0  ;;  %v2880_v4 = vpop.f32.mrf.mxu1 }
 0x139   :  { %v2244_v63 = vpack.c.bf16 %v674_v49, %v672_v42  ;;  %1456 = vst [vmem:[%s3227_s5 + $0x1c8] sm:$0xff] %v2241_v56  ;;  %v1835_v33 = vadd.f32 %v1834_v34, %v1746_v60  ;;  %v1498_v2 = vadd.f32 %v1497_v37, %v674_v49  ;;  %v1752_v3 = vmul.f32 %v674_v49, %v674_v49 }
 0x13a   :  { %v1478_v35 = vrot.slane %v1477_v62, 4  ;;  %v1773_v5 = vadd.f32 %v1772_v36, %v1751_v32  ;;  %v1520_v6 = vrot.slane %v1519_v57, 4  ;;  %v1815_v7 = vadd.f32 %v1814_v40, %v1753_v0  ;;  %v2885_v9 = vpop.f32.mrf.mxu0  ;;  %v2887_v17 = vpop.f32.mrf.mxu1 }
 0x13b   :  { %1459 = vst [vmem:[%s3227_s5 + $0x1e0] sm:$0xff] %v2244_v63  ;;  %v2245_v8 = vpack.c.bf16 %v787_v52, %v785_v43  ;;  %v1499_v11 = vrot.slane %v1498_v2, 4  ;;  %v1794_v12 = vadd.f32 %v1793_v45, %v1752_v3  ;;  %v1540_v13 = vadd.f32 %v1539_v59, %v787_v52 }
 0x13c   :  { %v1479_v10 = vadd.f32 %v1478_v35, %v1477_v62  ;;  %v1774_v54 = vrot.slane %v1773_v5, 4  ;;  %v1521_v14 = vadd.f32 %v1520_v6, %v1519_v57  ;;  %v1816_v16 = vrot.slane %v1815_v7, 4  ;;  %v2892_v19 = vpop.f32.mrf.mxu0  ;;  %v2894_v25 = vpop.f32.mrf.mxu1 }
 0x13d   :  { %1460 = vst [vmem:[%s3227_s5 + $0x1e8] sm:$0xff] %v2245_v8  ;;  %v1754_v18 = vmul.f32 %v787_v52, %v787_v52  ;;  %v1500_v20 = vadd.f32 %v1499_v11, %v1498_v2  ;;  %v1795_v23 = vrot.slane %v1794_v12, 4  ;;  %v1541_v24 = vrot.slane %v1540_v13, 4 }
 0x13e   :  { %v1480_v21 = vrot.slane %v1479_v10, 2  ;;  %v1775_v28 = vadd.f32 %v1774_v54, %v1773_v5  ;;  %v1522_v27 = vrot.slane %v1521_v14, 2  ;;  %v1817_v53 = vadd.f32 %v1816_v16, %v1815_v7  ;;  %v2896_v34 = vpop.f32.mrf.mxu0  ;;  %v2898_v41 = vpop.f32.mrf.mxu1 }
 0x13f   :  { %v1836_v30 = vadd.f32 %v1835_v33, %v1754_v18  ;;  %v1501_v37 = vrot.slane %v1500_v20, 2  ;;  %v1796_v38 = vadd.f32 %v1795_v23, %v1794_v12  ;;  %v1542_v40 = vadd.f32 %v1541_v24, %v1540_v13 }
 0x140   :  { %v1481_v36 = vadd.f32 %v1480_v21, %v1479_v10  ;;  %v1776_v42 = vrot.slane %v1775_v28, 2  ;;  %v1523_v43 = vadd.f32 %v1522_v27, %v1521_v14  ;;  %v1818_v45 = vrot.slane %v1817_v53, 2  ;;  %v2900_v52 = vpop.f32.mrf.mxu0  ;;  %v2902_v32 = vpop.f32.mrf.mxu1 }
 0x141   :  { %v1837_v49 = vrot.slane %v1836_v30, 4  ;;  %v1502_v59 = vadd.f32 %v1501_v37, %v1500_v20  ;;  %v1797_v60 = vrot.slane %v1796_v38, 2  ;;  %v1543_v62 = vrot.slane %v1542_v40, 2 }
 0x142   :  { %v1482_v56 = vrot.slane %v1481_v36, 1  ;;  %v1777_v57 = vadd.f32 %v1776_v42, %v1775_v28  ;;  %v1524_v0 = vrot.slane %v1523_v43, 1  ;;  %v1819_v63 = vadd.f32 %v1818_v45, %v1817_v53  ;;  %v2904_v35 = vpop.f32.mrf.mxu0  ;;  %v2911_v7 = vpop.f32.mrf.mxu1 }
 0x143   :  { %v1838_v33 = vadd.f32 %v1837_v49, %v1836_v30  ;;  %v1503_v2 = vrot.slane %v1502_v59, 1  ;;  %v1798_v3 = vadd.f32 %v1797_v60, %v1796_v38  ;;  %v2909_v5 = vsub.s32 %v1949_v50, %v2667_v58 }
 0x144   :  { %v1544_v6 = vadd.f32 %v1543_v62, %v1542_v40  ;;  %v1483_v8 = vadd.f32 %v1482_v56, %v1481_v36  ;;  %v1778_v10 = vrot.slane %v1777_v57, 1  ;;  %v824_v12 = vadd.f32 %v2844_v15, %v2694_v46  ;;  %v2915_v13 = vpop.f32.mrf.mxu0  ;;  %v2917_v21 = vpop.f32.mrf.mxu1 }
 0x145   :  { %v1839_v11 = vrot.slane %v1838_v33, 2  ;;  %v1525_v54 = vadd.f32 %v1524_v0, %v1523_v43  ;;  %v1504_v14 = vadd.f32 %v1503_v2, %v1502_v59  ;;  %v1799_v16 = vrot.slane %v1798_v3, 1 }
 0x146   :  { %v1545_v18 = vrot.slane %v1544_v6, 1  ;;  %v1779_v29 = vadd.f32 %v1778_v10, %v1777_v57  ;;  %v1820_v58 = vrot.slane %v1819_v63, 1  ;;  %v937_v20 = vadd.f32 %v2846_v22, %v2697_v48  ;;  %v2921_v23 = vpop.f32.mrf.mxu0  ;;  %v2925_v53 = vpop.f32.mrf.mxu1 }
 0x147   :  { %v1840_v50 = vadd.f32 %v1839_v11, %v1838_v33  ;;  %v1800_v24 = vadd.f32 %v1799_v16, %v1798_v3  ;;  %v1943_v28 = vcombine.low %v1483_v8, %v1504_v14  ;;  %v826_v15 = vadd.f32 %v2848_v26, %v2724_v47 }
 0x148   :  { %v1546_v27 = vadd.f32 %v1545_v18, %v1544_v6  ;;  %v939_v36 = vadd.f32 %v2856_v31, %v2740_v61  ;;  %v828_v37 = vadd.f32 %v2858_v39, %v2694_v46  ;;  %v2931_v38 = vpop.f32.mrf.mxu0  ;;  %v2936_v45 = vpop.f32.mrf.mxu1  ;;  %v1821_v26 = vadd.f32 %v1820_v58, %v1819_v63 }
 0x149   :  { %v1841_v30 = vrot.slane %v1840_v50, 1  ;;  %v2934_v22 = vrot.slane %v1943_v28, %v2909_v5  ;;  %v1992_v40 = vcombine.low %v1779_v29, %v1800_v24  ;;  %v2186_v43 = vpack.c.bf16 %v826_v15, %v824_v12 }
 0x14a   :  { %v1944_v42 = vcombine.low %v1525_v54, %v1546_v27  ;;  %v1635_v56 = vmul.f32 %v824_v12, %v824_v12  ;;  %v2187_v59 = vpack.c.bf16 %v939_v36, %v937_v20  ;;  %v2938_v60 = vpop.f32.mrf.mxu0  ;;  %v1637_v62 = vmul.f32 %v937_v20, %v937_v20  ;;  %v2949_v0 = vpop.f32.mrf.mxu1 }
 0x14b   :  { %v1842_v49 = vadd.f32 %v1841_v30, %v1840_v50  ;;  %v2941_v31 = vrot.slane %v1992_v40, %v2909_v5  ;;  %1401 = vst [vmem:[%s3227_s5 + $0x10] sm:$0xff] %v2186_v43  ;;  %v1643_v57 = vmul.f32 %v828_v37, %v828_v37  ;;  %v941_v33 = vadd.f32 %v2866_v44, %v2697_v48 }
 0x14c   :  { %v2944_v39 = vrot.slane %v1944_v42, %v2909_v5  ;;  %1402 = vst [vmem:[%s3227_s5 + $0x18] sm:$0xff] %v2187_v59  ;;  %v830_v2 = vadd.f32 %v2871_v55, %v2724_v47  ;;  %v943_v3 = vadd.f32 %v2873_v51, %v2740_v61  ;;  %v2960_v6 = vpop.f32.mrf.mxu0  ;;  %v1636_v10 = vmul.f32 %v826_v15, %v826_v15  ;;  %v2966_v14 = vpop.f32.mrf.mxu1 }
 0x14d   :  { %v1993_v63 = vcombine.low %v1821_v26, %v1842_v49  ;;  %v1638_v11 = vmul.f32 %v939_v36, %v939_v36  ;;  %v834_v54 = vadd.f32 %v2875_v1, %v2694_v46  ;;  %v1645_v16 = vmul.f32 %v941_v33, %v941_v33 }
 0x14e   :  { %v1975_v8 = vcombine.low %v2934_v22, %v2944_v39  ;;  %v2190_v55 = vpack.c.bf16 %v830_v2, %v828_v37  ;;  %v947_v51 = vadd.f32 %v2880_v4, %v2697_v48  ;;  %v2973_v18 = vpop.f32.mrf.mxu0  ;;  %v1547_v29 = vadd.f32 %v828_v37, %v824_v12  ;;  %v2975_v28 = vpop.f32.mrf.mxu1 }
 0x14f   :  { %v2969_v44 = vrot.slane %v1993_v63, %v2909_v5  ;;  %v1843_v58 = vadd.f32 %v1643_v57, %v1635_v56  ;;  %v1644_v50 = vmul.f32 %v830_v2, %v830_v2  ;;  %v2191_v24 = vpack.c.bf16 %v943_v3, %v941_v33 }
 0x150   :  { %v1589_v27 = vadd.f32 %v941_v33, %v937_v20  ;;  %1405 = vst [vmem:[%s3227_s5 + $0x30] sm:$0xff] %v2190_v55  ;;  %v1568_v30 = vadd.f32 %v830_v2, %v826_v15  ;;  %v1646_v40 = vmul.f32 %v943_v3, %v943_v3  ;;  %v2982_v42 = vpop.f32.mrf.mxu0  ;;  %v1885_v4 = vadd.f32 %v1645_v16, %v1637_v62  ;;  %v2987_v26 = vpop.f32.mrf.mxu1 }
 0x151   :  { %v2024_v1 = vcombine.low %v2941_v31, %v2969_v44  ;;  %v1864_v43 = vadd.f32 %v1644_v50, %v1636_v10  ;;  %1406 = vst [vmem:[%s3227_s5 + $0x38] sm:$0xff] %v2191_v24  ;;  %v1610_v12 = vadd.f32 %v943_v3, %v939_v36  ;;  %v1651_v37 = vmul.f32 %v834_v54, %v834_v54 }
 0x152   :  { %v1548_v49 = vadd.f32 %v1547_v29, %v834_v54  ;;  %v1590_v20 = vadd.f32 %v1589_v27, %v947_v51  ;;  %v1653_v56 = vmul.f32 %v947_v51, %v947_v51  ;;  %v836_v59 = vadd.f32 %v2885_v9, %v2724_v47  ;;  %v2991_v15 = vpop.f32.mrf.mxu0  ;;  %v2999_v33 = vpop.f32.mrf.mxu1 }
 0x153   :  { %v1906_v57 = vadd.f32 %v1646_v40, %v1638_v11  ;;  %v949_v62 = vadd.f32 %v2887_v17, %v2740_v61  ;;  %v838_v63 = vadd.f32 %v2892_v19, %v2694_v46  ;;  %v951_v36 = vadd.f32 %v2894_v25, %v2697_v48 }
 0x154   :  { %v1844_v2 = vadd.f32 %v1843_v58, %v1651_v37  ;;  %v1886_v3 = vadd.f32 %v1885_v4, %v1653_v56  ;;  %v2194_v10 = vpack.c.bf16 %v836_v59, %v834_v54  ;;  %v1652_v16 = vmul.f32 %v836_v59, %v836_v59  ;;  %v3001_v11 = vpop.f32.mrf.mxu0  ;;  %v3006_v27 = vpop.f32.mrf.mxu1 }
 0x155   :  { %v1569_v55 = vadd.f32 %v1568_v30, %v836_v59  ;;  %v2195_v9 = vpack.c.bf16 %v949_v62, %v947_v51  ;;  %v1611_v29 = vadd.f32 %v1610_v12, %v949_v62  ;;  %v1654_v50 = vmul.f32 %v949_v62, %v949_v62 }
 0x156   :  { %1409 = vst [vmem:[%s3227_s5 + $0x50] sm:$0xff] %v2194_v10  ;;  %v1865_v17 = vadd.f32 %v1864_v43, %v1652_v16  ;;  %v1549_v19 = vadd.f32 %v1548_v49, %v838_v63  ;;  %v1659_v24 = vmul.f32 %v838_v63, %v838_v63  ;;  %v1661_v25 = vmul.f32 %v951_v36, %v951_v36  ;;  %v3021_v59 = vpop.f32.mrf.mxu0  ;;  %v3023_v16 = vpop.f32.mrf.mxu1 }
 0x157   :  { %1410 = vst [vmem:[%s3227_s5 + $0x58] sm:$0xff] %v2195_v9  ;;  %v1591_v54 = vadd.f32 %v1590_v20, %v951_v36  ;;  %v840_v51 = vadd.f32 %v2896_v34, %v2724_v47  ;;  %v953_v58 = vadd.f32 %v2898_v41, %v2740_v61  ;;  %v844_v30 = vadd.f32 %v2900_v52, %v2694_v46 }
 0x158   :  { %v1907_v40 = vadd.f32 %v1906_v57, %v1654_v50  ;;  %v1845_v4 = vadd.f32 %v1844_v2, %v1659_v24  ;;  %v957_v43 = vadd.f32 %v2902_v32, %v2697_v48  ;;  %v846_v12 = vadd.f32 %v2904_v35, %v2724_v47 }
 0x159   :  { %v1887_v37 = vadd.f32 %v1886_v3, %v1661_v25  ;;  %v2198_v49 = vpack.c.bf16 %v840_v51, %v838_v63  ;;  %v1660_v20 = vmul.f32 %v840_v51, %v840_v51  ;;  %v2199_v56 = vpack.c.bf16 %v953_v58, %v951_v36 }
 0x15a   :  { %v1570_v34 = vadd.f32 %v1569_v55, %v840_v51  ;;  %v1612_v62 = vadd.f32 %v1611_v29, %v953_v58  ;;  %v1662_v41 = vmul.f32 %v953_v58, %v953_v58  ;;  %v1667_v10 = vmul.f32 %v844_v30, %v844_v30  ;;  %v3046_v51 = vpop.f32.mrf.mxu1 }
 0x15b   :  { %1413 = vst [vmem:[%s3227_s5 + $0x70] sm:$0xff] %v2198_v49  ;;  %v1866_v52 = vadd.f32 %v1865_v17, %v1660_v20  ;;  %1414 = vst [vmem:[%s3227_s5 + $0x78] sm:$0xff] %v2199_v56  ;;  %v1550_v32 = vadd.f32 %v1549_v19, %v844_v30  ;;  %v1669_v35 = vmul.f32 %v957_v43, %v957_v43  ;;  %v3040_v17 = vpop.f32.mrf.mxu0 }
 0x15c   :  { %v2202_v57 = vpack.c.bf16 %v846_v12, %v844_v30  ;;  %v1908_v63 = vadd.f32 %v1907_v40, %v1662_v41  ;;  %v1846_v36 = vadd.f32 %v1845_v4, %v1667_v10  ;;  %v1592_v2 = vadd.f32 %v1591_v54, %v957_v43 }
 0x15d   :  { %v1668_v3 = vmul.f32 %v846_v12, %v846_v12  ;;  %v1571_v55 = vadd.f32 %v1570_v34, %v846_v12  ;;  %v959_v9 = vadd.f32 %v2911_v7, %v2740_v61  ;;  %v848_v29 = vadd.f32 %v2915_v13, %v2694_v46  ;;  %v3053_v20 = vpop.f32.mrf.mxu0 }
 0x15e   :  { %1417 = vst [vmem:[%s3227_s5 + $0x90] sm:$0xff] %v2202_v57  ;;  %v961_v50 = vadd.f32 %v2917_v21, %v2697_v48  ;;  %v1888_v19 = vadd.f32 %v1887_v37, %v1669_v35  ;;  %v850_v25 = vadd.f32 %v2921_v23, %v2724_v47  ;;  %v963_v54 = vadd.f32 %v2925_v53, %v2740_v61 }
 0x15f   :  { %v1867_v24 = vadd.f32 %v1866_v52, %v1668_v3  ;;  %v2203_v58 = vpack.c.bf16 %v959_v9, %v957_v43  ;;  %v1613_v7 = vadd.f32 %v1612_v62, %v959_v9  ;;  %v1670_v30 = vmul.f32 %v959_v9, %v959_v9  ;;  %v3058_v62 = vpop.f32.mrf.mxu1 }
 0x160   :  { %v854_v13 = vadd.f32 %v2931_v38, %v2694_v46  ;;  %v1551_v40 = vadd.f32 %v1550_v32, %v848_v29  ;;  %v1675_v21 = vmul.f32 %v848_v29, %v848_v29  ;;  %v1677_v4 = vmul.f32 %v961_v50, %v961_v50 }
 0x161   :  { %v2206_v12 = vpack.c.bf16 %v850_v25, %v848_v29  ;;  %1418 = vst [vmem:[%s3227_s5 + $0x98] sm:$0xff] %v2203_v58  ;;  %v1909_v23 = vadd.f32 %v1908_v63, %v1670_v30  ;;  %v1593_v37 = vadd.f32 %v1592_v2, %v961_v50  ;;  %v1676_v49 = vmul.f32 %v850_v25, %v850_v25  ;;  %v3073_v29 = vpop.f32.mrf.mxu0 }
 0x162   :  { %v2207_v53 = vpack.c.bf16 %v963_v54, %v961_v50  ;;  %v1847_v43 = vadd.f32 %v1846_v36, %v1675_v21  ;;  %v1889_v56 = vadd.f32 %v1888_v19, %v1677_v4  ;;  %v1572_v38 = vadd.f32 %v1571_v55, %v850_v25  ;;  %v3075_v25 = vpop.f32.mrf.mxu1 }
 0x163   :  { %1421 = vst [vmem:[%s3227_s5 + $0xb0] sm:$0xff] %v2206_v12  ;;  %v1678_v34 = vmul.f32 %v963_v54, %v963_v54  ;;  %v1868_v41 = vadd.f32 %v1867_v24, %v1676_v49  ;;  %v1614_v10 = vadd.f32 %v1613_v7, %v963_v54  ;;  %v1683_v52 = vmul.f32 %v854_v13, %v854_v13  ;;  %v3089_v12 = vpop.f32.mrf.mxu0 }
 0x164   :  { %1422 = vst [vmem:[%s3227_s5 + $0xb8] sm:$0xff] %v2207_v53  ;;  %v967_v32 = vadd.f32 %v2936_v45, %v2697_v48  ;;  %v1552_v35 = vadd.f32 %v1551_v40, %v854_v13  ;;  %v856_v57 = vadd.f32 %v2938_v60, %v2724_v47  ;;  %v969_v63 = vadd.f32 %v2949_v0, %v2740_v61 }
 0x165   :  { %v858_v36 = vadd.f32 %v2960_v6, %v2694_v46  ;;  %v1910_v2 = vadd.f32 %v1909_v23, %v1678_v34  ;;  %v1848_v3 = vadd.f32 %v1847_v43, %v1683_v52  ;;  %v971_v9 = vadd.f32 %v2966_v14, %v2697_v48  ;;  %v3095_v43 = vpop.f32.mrf.mxu1 }
 0x166   :  { %v1685_v55 = vmul.f32 %v967_v32, %v967_v32  ;;  %v1594_v50 = vadd.f32 %v1593_v37, %v967_v32  ;;  %v2210_v45 = vpack.c.bf16 %v856_v57, %v854_v13  ;;  %v1684_v19 = vmul.f32 %v856_v57, %v856_v57 }
 0x167   :  { %v2211_v24 = vpack.c.bf16 %v969_v63, %v967_v32  ;;  %v1573_v54 = vadd.f32 %v1572_v38, %v856_v57  ;;  %v1615_v0 = vadd.f32 %v1614_v10, %v969_v63  ;;  %v1686_v58 = vmul.f32 %v969_v63, %v969_v63 }
 0x168   :  { %v1890_v60 = vadd.f32 %v1889_v56, %v1685_v55  ;;  %1425 = vst [vmem:[%s3227_s5 + $0xd0] sm:$0xff] %v2210_v45  ;;  %v1869_v6 = vadd.f32 %v1868_v41, %v1684_v19  ;;  %v1553_v14 = vadd.f32 %v1552_v35, %v858_v36  ;;  %v1691_v7 = vmul.f32 %v858_v36, %v858_v36  ;;  %v3103_v35 = vpop.f32.mrf.mxu0 }
 0x169   :  { %1426 = vst [vmem:[%s3227_s5 + $0xd8] sm:$0xff] %v2211_v24  ;;  %v1693_v30 = vmul.f32 %v971_v9, %v971_v9  ;;  %v1595_v13 = vadd.f32 %v1594_v50, %v971_v9  ;;  %v860_v40 = vadd.f32 %v2973_v18, %v2724_v47  ;;  %v973_v21 = vadd.f32 %v2975_v28, %v2740_v61 }
 0x16a   :  { %v864_v4 = vadd.f32 %v2982_v42, %v2694_v46  ;;  %v1911_v23 = vadd.f32 %v1910_v2, %v1686_v58  ;;  %v1849_v37 = vadd.f32 %v1848_v3, %v1691_v7  ;;  %v977_v49 = vadd.f32 %v2987_v26, %v2697_v48  ;;  %v3105_v3 = vpop.f32.mrf.mxu1 }
 0x16b   :  { %v866_v53 = vadd.f32 %v2991_v15, %v2724_v47  ;;  %v1891_v56 = vadd.f32 %v1890_v60, %v1693_v30  ;;  %v2214_v18 = vpack.c.bf16 %v860_v40, %v858_v36  ;;  %v1692_v38 = vmul.f32 %v860_v40, %v860_v40 }
 0x16c   :  { %v2215_v34 = vpack.c.bf16 %v973_v21, %v971_v9  ;;  %v1574_v28 = vadd.f32 %v1573_v54, %v860_v40  ;;  %v1616_v41 = vadd.f32 %v1615_v0, %v973_v21  ;;  %v1694_v10 = vmul.f32 %v973_v21, %v973_v21 }
 0x16d   :  { %v1699_v42 = vmul.f32 %v864_v4, %v864_v4  ;;  %1429 = vst [vmem:[%s3227_s5 + $0xf0] sm:$0xff] %v2214_v18  ;;  %v1870_v52 = vadd.f32 %v1869_v6, %v1692_v38  ;;  %v1554_v26 = vadd.f32 %v1553_v14, %v864_v4  ;;  %v1701_v15 = vmul.f32 %v977_v49, %v977_v49  ;;  %v885_v14 = vpop.f32.mrf.mxu0 }
 0x16e   :  { %1430 = vst [vmem:[%s3227_s5 + $0xf8] sm:$0xff] %v2215_v34  ;;  %v2218_v32 = vpack.c.bf16 %v866_v53, %v864_v4  ;;  %v1912_v57 = vadd.f32 %v1911_v23, %v1694_v10  ;;  %v1596_v36 = vadd.f32 %v1595_v13, %v977_v49  ;;  %v1700_v2 = vmul.f32 %v866_v53, %v866_v53 }
 0x16f   :  { %v1850_v63 = vadd.f32 %v1849_v37, %v1699_v42  ;;  %v1575_v55 = vadd.f32 %v1574_v28, %v866_v53  ;;  %v979_v9 = vadd.f32 %v2999_v33, %v2740_v61  ;;  %v868_v50 = vadd.f32 %v3001_v11, %v2694_v46  ;;  %v887_v38 = vpop.f32.mrf.mxu0 }
 0x170   :  { %1433 = vst [vmem:[%s3227_s5 + $0x110] sm:$0xff] %v2218_v32  ;;  %v981_v45 = vadd.f32 %v3006_v27, %v2697_v48  ;;  %v1892_v19 = vadd.f32 %v1891_v56, %v1701_v15  ;;  %v1871_v24 = vadd.f32 %v1870_v52, %v1700_v2  ;;  %v870_v60 = vadd.f32 %v3021_v59, %v2724_v47  ;;  %v3122_v27 = vpop.f32.mrf.mxu1 }
 0x171   :  { %v983_v54 = vadd.f32 %v3023_v16, %v2740_v61  ;;  %v2219_v0 = vpack.c.bf16 %v979_v9, %v977_v49  ;;  %v1617_v58 = vadd.f32 %v1616_v41, %v979_v9  ;;  %v1702_v6 = vmul.f32 %v979_v9, %v979_v9 }
 0x172   :  { %v874_v33 = vadd.f32 %v3040_v17, %v2694_v46  ;;  %v1555_v7 = vadd.f32 %v1554_v26, %v868_v50  ;;  %v1707_v11 = vmul.f32 %v868_v50, %v868_v50  ;;  %v1709_v30 = vmul.f32 %v981_v45, %v981_v45  ;;  %v1000_v42 = vpop.f32.mrf.mxu1 }
 0x173   :  { %v2222_v13 = vpack.c.bf16 %v870_v60, %v868_v50  ;;  %1434 = vst [vmem:[%s3227_s5 + $0x118] sm:$0xff] %v2219_v0  ;;  %v1913_v59 = vadd.f32 %v1912_v57, %v1702_v6  ;;  %v1597_v40 = vadd.f32 %v1596_v36, %v981_v45  ;;  %v1708_v16 = vmul.f32 %v870_v60, %v870_v60  ;;  %v889_v50 = vpop.f32.mrf.mxu0 }
 0x174   :  { %v2223_v21 = vpack.c.bf16 %v983_v54, %v981_v45  ;;  %v1851_v4 = vadd.f32 %v1850_v63, %v1707_v11  ;;  %v1893_v23 = vadd.f32 %v1892_v19, %v1709_v30  ;;  %v1576_v17 = vadd.f32 %v1575_v55, %v870_v60  ;;  %v1002_v19 = vpop.f32.mrf.mxu1 }
 0x175   :  { %1437 = vst [vmem:[%s3227_s5 + $0x130] sm:$0xff] %v2222_v13  ;;  %v1710_v37 = vmul.f32 %v983_v54, %v983_v54  ;;  %v1872_v49 = vadd.f32 %v1871_v24, %v1708_v16  ;;  %v1618_v53 = vadd.f32 %v1617_v58, %v983_v54  ;;  %v1715_v56 = vmul.f32 %v874_v33, %v874_v33 }
 0x176   :  { %1438 = vst [vmem:[%s3227_s5 + $0x138] sm:$0xff] %v2223_v21  ;;  %v987_v18 = vadd.f32 %v3046_v51, %v2697_v48  ;;  %v1556_v34 = vadd.f32 %v1555_v7, %v874_v33  ;;  %v876_v28 = vadd.f32 %v3053_v20, %v2724_v47  ;;  %v989_v41 = vadd.f32 %v3058_v62, %v2740_v61 }
 0x177   :  { %v878_v10 = vadd.f32 %v3073_v29, %v2694_v46  ;;  %v1914_v52 = vadd.f32 %v1913_v59, %v1710_v37  ;;  %v1852_v26 = vadd.f32 %v1851_v4, %v1715_v56  ;;  %v991_v32 = vadd.f32 %v3075_v25, %v2697_v48 }
 0x178   :  { %v1717_v15 = vmul.f32 %v987_v18, %v987_v18  ;;  %v1598_v57 = vadd.f32 %v1597_v40, %v987_v18  ;;  %v2226_v51 = vpack.c.bf16 %v876_v28, %v874_v33  ;;  %v1716_v63 = vmul.f32 %v876_v28, %v876_v28  ;;  %v893_v40 = vpop.f32.mrf.mxu0 }
 0x179   :  { %v2227_v36 = vpack.c.bf16 %v989_v41, %v987_v18  ;;  %v1577_v55 = vadd.f32 %v1576_v17, %v876_v28  ;;  %v1619_v20 = vadd.f32 %v1618_v53, %v989_v41  ;;  %v1718_v9 = vmul.f32 %v989_v41, %v989_v41 }
 0x17a   :  { %v1894_v2 = vadd.f32 %v1893_v23, %v1717_v15  ;;  %1441 = vst [vmem:[%s3227_s5 + $0x150] sm:$0xff] %v2226_v51  ;;  %v1873_v62 = vadd.f32 %v1872_v49, %v1716_v63  ;;  %v1557_v29 = vadd.f32 %v1556_v34, %v878_v10  ;;  %v1723_v25 = vmul.f32 %v878_v10, %v878_v10  ;;  %v895_v41 = vpop.f32.mrf.mxu0 }
 0x17b   :  { %1442 = vst [vmem:[%s3227_s5 + $0x158] sm:$0xff] %v2227_v36  ;;  %v1725_v45 = vmul.f32 %v991_v32, %v991_v32  ;;  %v1599_v24 = vadd.f32 %v1598_v57, %v991_v32  ;;  %v880_v60 = vadd.f32 %v3089_v12, %v2724_v47  ;;  %v993_v54 = vadd.f32 %v3095_v43, %v2740_v61  ;;  %v1006_v43 = vpop.f32.mrf.mxu1 }
 0x17c   :  { %v884_v0 = vadd.f32 %v3103_v35, %v2694_v46  ;;  %v1915_v58 = vadd.f32 %v1914_v52, %v1718_v9  ;;  %v1853_v6 = vadd.f32 %v1852_v26, %v1723_v25  ;;  %v997_v33 = vadd.f32 %v3105_v3, %v2697_v48 }
 0x17d   :  { %v886_v7 = vadd.f32 %v885_v14, %v2724_v47  ;;  %v1895_v11 = vadd.f32 %v1894_v2, %v1725_v45  ;;  %v2230_v30 = vpack.c.bf16 %v880_v60, %v878_v10  ;;  %v1724_v13 = vmul.f32 %v880_v60, %v880_v60 }
 0x17e   :  { %v2231_v59 = vpack.c.bf16 %v993_v54, %v991_v32  ;;  %v1578_v16 = vadd.f32 %v1577_v55, %v880_v60  ;;  %v1620_v12 = vadd.f32 %v1619_v20, %v993_v54  ;;  %v1726_v21 = vmul.f32 %v993_v54, %v993_v54  ;;  %v1008_v32 = vpop.f32.mrf.mxu1 }
 0x17f   :  { %v1731_v4 = vmul.f32 %v884_v0, %v884_v0  ;;  %1445 = vst [vmem:[%s3227_s5 + $0x170] sm:$0xff] %v2230_v30  ;;  %v1874_v35 = vadd.f32 %v1873_v62, %v1724_v13  ;;  %v1558_v3 = vadd.f32 %v1557_v29, %v884_v0  ;;  %v1733_v14 = vmul.f32 %v997_v33, %v997_v33  ;;  %v897_v62 = vpop.f32.mrf.mxu0 }
 0x180   :  { %1446 = vst [vmem:[%s3227_s5 + $0x178] sm:$0xff] %v2231_v59  ;;  %v2234_v23 = vpack.c.bf16 %v886_v7, %v884_v0  ;;  %v1916_v17 = vadd.f32 %v1915_v58, %v1726_v21  ;;  %v1600_v49 = vadd.f32 %v1599_v24, %v997_v33  ;;  %v1732_v53 = vmul.f32 %v886_v7, %v886_v7  ;;  %v1010_v24 = vpop.f32.mrf.mxu1 }
 0x181   :  { %v1854_v37 = vadd.f32 %v1853_v6, %v1731_v4  ;;  %v1579_v56 = vadd.f32 %v1578_v16, %v886_v7  ;;  %v999_v18 = vadd.f32 %v3122_v27, %v2740_v61  ;;  %v888_v34 = vadd.f32 %v887_v38, %v2694_v46 }
 0x182   :  { %1449 = vst [vmem:[%s3227_s5 + $0x190] sm:$0xff] %v2234_v23  ;;  %v1001_v28 = vadd.f32 %v1000_v42, %v2697_v48  ;;  %v1896_v10 = vadd.f32 %v1895_v11, %v1733_v14  ;;  %v1875_v52 = vadd.f32 %v1874_v35, %v1732_v53  ;;  %v890_v26 = vadd.f32 %v889_v50, %v2724_v47  ;;  %v899_v35 = vpop.f32.mrf.mxu0 }
 0x183   :  { %v1003_v15 = vadd.f32 %v1002_v19, %v2740_v61  ;;  %v2235_v57 = vpack.c.bf16 %v999_v18, %v997_v33  ;;  %v1621_v51 = vadd.f32 %v1620_v12, %v999_v18  ;;  %v1734_v63 = vmul.f32 %v999_v18, %v999_v18 }
 0x184   :  { %v894_v36 = vadd.f32 %v893_v40, %v2694_v46  ;;  %v1559_v2 = vadd.f32 %v1558_v3, %v888_v34  ;;  %v1739_v55 = vmul.f32 %v888_v34, %v888_v34  ;;  %v1741_v27 = vmul.f32 %v1001_v28, %v1001_v28  ;;  %v1012_v3 = vpop.f32.mrf.mxu1 }
 0x185   :  { %v2238_v20 = vpack.c.bf16 %v890_v26, %v888_v34  ;;  %1450 = vst [vmem:[%s3227_s5 + $0x198] sm:$0xff] %v2235_v57  ;;  %v1917_v38 = vadd.f32 %v1916_v17, %v1734_v63  ;;  %v1601_v42 = vadd.f32 %v1600_v49, %v1001_v28  ;;  %v1740_v9 = vmul.f32 %v890_v26, %v890_v26 }
 0x186   :  { %v2239_v50 = vpack.c.bf16 %v1003_v15, %v1001_v28  ;;  %v1855_v29 = vadd.f32 %v1854_v37, %v1739_v55  ;;  %v1897_v25 = vadd.f32 %v1896_v10, %v1741_v27  ;;  %v1580_v45 = vadd.f32 %v1579_v56, %v890_v26 }
 0x187   :  { %1453 = vst [vmem:[%s3227_s5 + $0x1b0] sm:$0xff] %v2238_v20  ;;  %v1742_v19 = vmul.f32 %v1003_v15, %v1003_v15  ;;  %v1876_v60 = vadd.f32 %v1875_v52, %v1740_v9  ;;  %v1622_v54 = vadd.f32 %v1621_v51, %v1003_v15  ;;  %v1747_v0 = vmul.f32 %v894_v36, %v894_v36 }
 0x188   :  { %1454 = vst [vmem:[%s3227_s5 + $0x1b8] sm:$0xff] %v2239_v50  ;;  %v1007_v58 = vadd.f32 %v1006_v43, %v2697_v48  ;;  %v1560_v6 = vadd.f32 %v1559_v2, %v894_v36  ;;  %v896_v33 = vadd.f32 %v895_v41, %v2724_v47  ;;  %v1009_v7 = vadd.f32 %v1008_v32, %v2740_v61 }
 0x189   :  { %v898_v11 = vadd.f32 %v897_v62, %v2694_v46  ;;  %v1918_v30 = vadd.f32 %v1917_v38, %v1742_v19  ;;  %v1856_v13 = vadd.f32 %v1855_v29, %v1747_v0  ;;  %v1011_v40 = vadd.f32 %v1010_v24, %v2697_v48 }
 0x18a   :  { %v1749_v59 = vmul.f32 %v1007_v58, %v1007_v58  ;;  %v1602_v16 = vadd.f32 %v1601_v42, %v1007_v58  ;;  %v2242_v12 = vpack.c.bf16 %v896_v33, %v894_v36  ;;  %v1748_v21 = vmul.f32 %v896_v33, %v896_v33 }
 0x18b   :  { %v2243_v4 = vpack.c.bf16 %v1009_v7, %v1007_v58  ;;  %v1581_v43 = vadd.f32 %v1580_v45, %v896_v33  ;;  %v1750_v23 = vmul.f32 %v1009_v7, %v1009_v7  ;;  %v1561_v17 = vadd.f32 %v1560_v6, %v898_v11 }
 0x18c   :  { %v1898_v14 = vadd.f32 %v1897_v25, %v1749_v59  ;;  %1457 = vst [vmem:[%s3227_s5 + $0x1d0] sm:$0xff] %v2242_v12  ;;  %v1623_v46 = vadd.f32 %v1622_v54, %v1009_v7  ;;  %v1755_v48 = vmul.f32 %v898_v11, %v898_v11  ;;  %v1603_v37 = vadd.f32 %v1602_v16, %v1011_v40 }
 0x18d   :  { %1458 = vst [vmem:[%s3227_s5 + $0x1d8] sm:$0xff] %v2243_v4  ;;  %v1757_v49 = vmul.f32 %v1011_v40, %v1011_v40  ;;  %v1877_v53 = vadd.f32 %v1876_v60, %v1748_v21  ;;  %v1562_v56 = vrot.slane %v1561_v17, 4  ;;  %v900_v18 = vadd.f32 %v899_v35, %v2724_v47 }
 0x18e   :  { %v1013_v34 = vadd.f32 %v1012_v3, %v2740_v61  ;;  %v1919_v28 = vadd.f32 %v1918_v30, %v1750_v23  ;;  %v1857_v41 = vadd.f32 %v1856_v13, %v1755_v48  ;;  %v1604_v10 = vrot.slane %v1603_v37, 4 }
 0x18f   :  { %v1899_v52 = vadd.f32 %v1898_v14, %v1757_v49  ;;  %v1563_v26 = vadd.f32 %v1562_v56, %v1561_v17  ;;  %v2246_v15 = vpack.c.bf16 %v900_v18, %v898_v11  ;;  %v1582_v32 = vadd.f32 %v1581_v43, %v900_v18 }
 0x190   :  { %v1756_v57 = vmul.f32 %v900_v18, %v900_v18  ;;  %v1858_v51 = vrot.slane %v1857_v41, 4  ;;  %v1605_v63 = vadd.f32 %v1604_v10, %v1603_v37  ;;  %v2247_v2 = vpack.c.bf16 %v1013_v34, %v1011_v40 }
 0x191   :  { %v1900_v36 = vrot.slane %v1899_v52, 4  ;;  %v1564_v55 = vrot.slane %v1563_v26, 2  ;;  %1461 = vst [vmem:[%s3227_s5 + $0x1f0] sm:$0xff] %v2246_v15  ;;  %v1583_v47 = vrot.slane %v1582_v32, 4  ;;  %v1624_v61 = vadd.f32 %v1623_v46, %v1013_v34 }
 0x192   :  { %v1878_v27 = vadd.f32 %v1877_v53, %v1756_v57  ;;  %v1859_v20 = vadd.f32 %v1858_v51, %v1857_v41  ;;  %v1606_v38 = vrot.slane %v1605_v63, 2  ;;  %1462 = vst [vmem:[%s3227_s5 + $0x1f8] sm:$0xff] %v2247_v2  ;;  %v1758_v9 = vmul.f32 %v1013_v34, %v1013_v34 }
 0x193   :  { %v1901_v42 = vadd.f32 %v1900_v36, %v1899_v52  ;;  %v1565_v50 = vadd.f32 %v1564_v55, %v1563_v26  ;;  %v1584_v62 = vadd.f32 %v1583_v47, %v1582_v32  ;;  %v1625_v25 = vrot.slane %v1624_v61, 4 }
 0x194   :  { %v1879_v29 = vrot.slane %v1878_v27, 4  ;;  %v1860_v45 = vrot.slane %v1859_v20, 2  ;;  %v1607_v19 = vadd.f32 %v1606_v38, %v1605_v63  ;;  %v1920_v60 = vadd.f32 %v1919_v28, %v1758_v9 }
 0x195   :  { %v1902_v24 = vrot.slane %v1901_v42, 2  ;;  %v1585_v54 = vrot.slane %v1584_v62, 2  ;;  %v1626_v58 = vadd.f32 %v1625_v25, %v1624_v61  ;;  %v1566_v7 = vrot.slane %v1565_v50, 1 }
 0x196   :  { %v1880_v0 = vadd.f32 %v1879_v29, %v1878_v27  ;;  %v1861_v6 = vadd.f32 %v1860_v45, %v1859_v20  ;;  %v1921_v33 = vrot.slane %v1920_v60, 4  ;;  %v1608_v59 = vrot.slane %v1607_v19, 1 }
 0x197   :  { %v1586_v11 = vadd.f32 %v1585_v54, %v1584_v62  ;;  %v1627_v13 = vrot.slane %v1626_v58, 2  ;;  %v1903_v40 = vadd.f32 %v1902_v24, %v1901_v42  ;;  %v1567_v14 = vadd.f32 %v1566_v7, %v1565_v50 }
 0x198   :  { %v1881_v30 = vrot.slane %v1880_v0, 2  ;;  %v1922_v16 = vadd.f32 %v1921_v33, %v1920_v60  ;;  %v1862_v12 = vrot.slane %v1861_v6, 1  ;;  %v1609_v46 = vadd.f32 %v1608_v59, %v1607_v19 }
 0x199   :  { %v1587_v21 = vrot.slane %v1586_v11, 1  ;;  %v1628_v35 = vadd.f32 %v1627_v13, %v1626_v58  ;;  %v1904_v48 = vrot.slane %v1903_v40, 1  ;;  %v1983_v36 = vrot.slane %v1975_v8, %v2909_v5 }
 0x19a   :  { %v1882_v4 = vadd.f32 %v1881_v30, %v1880_v0  ;;  %v1923_v3 = vrot.slane %v1922_v16, 2  ;;  %v1863_v49 = vadd.f32 %v1862_v12, %v1861_v6  ;;  %v2032_v27 = vrot.slane %v2024_v1, %v2909_v5 }
 0x19b   :  { %v1588_v43 = vadd.f32 %v1587_v21, %v1586_v11  ;;  %v1629_v17 = vrot.slane %v1628_v35, 1  ;;  %v1905_v52 = vadd.f32 %v1904_v48, %v1903_v40 }
 0x19c   :  { %v1883_v23 = vrot.slane %v1882_v4, 1  ;;  %v1924_v37 = vadd.f32 %v1923_v3, %v1922_v16 }
 0x19d   :  { %v1945_v56 = vcombine.low %v1567_v14, %v1588_v43  ;;  %v1630_v18 = vadd.f32 %v1629_v17, %v1628_v35 }
 0x19e   :  { %v1884_v53 = vadd.f32 %v1883_v23, %v1882_v4  ;;  %v1925_v34 = vrot.slane %v1924_v37, 1 }
 0x19f   :  { %v1967_v28 = vrot.slane %v1945_v56, %v2909_v5  ;;  %v1946_v10 = vcombine.low %v1609_v46, %v1630_v18 }
 0x1a0   :  { %v1994_v41 = vcombine.low %v1863_v49, %v1884_v53  ;;  %v1926_v26 = vadd.f32 %v1925_v34, %v1924_v37 }
 0x1a1   :  { %v1974_v15 = vrot.slane %v1946_v10, %v2909_v5 }
 0x1a2   :  { %v2016_v32 = vrot.slane %v1994_v41, %v2909_v5  ;;  %v1995_v57 = vcombine.low %v1905_v52, %v1926_v26 }
 0x1a3   :  { %v1976_v51 = vcombine.low %v1967_v28, %v1974_v15 }
 0x1a4   :  { %v2023_v63 = vrot.slane %v1995_v57, %v2909_v5 }
 0x1a5   :  { %v1990_v2 = vrot.slane %v1976_v51, %v2909_v5 }
 0x1a6   :  { %v2025_v55 = vcombine.low %v2016_v32, %v2023_v63 }
 0x1a7   :  { %v1991_v47 = vcombine.low %v1983_v36, %v1990_v2 }
 0x1a8   :  { %v2039_v61 = vrot.slane %v2025_v55, %v2909_v5 }
 0x1a9   :  { %2043 = vst [vmem:[%s3228_s6] sm:$0xff] %v1991_v47 }
 0x1aa   :  { %v2040_v20 = vcombine.low %v2032_v27, %v2039_v61 }
 0x1ac   :  { %2044 = vst [vmem:[%s3228_s6 + $0x8] sm:$0xff] %v2040_v20 }
 0x1ad   :  { %2053 = vsyncpa [#allocation3], 1 }

// kernel: momentum_transform_forward.16
= control target key start
LH: loop header
LB: loop body
LE: loop exit
PB: predicated region body
PF: predicated region fallthrough
CT: control target
= control target key end

     0   :  { %vm84_vm0 = vcmask 1043456   ;;  %vm85_vm1 = vcmask 1044480   ;;  %v250_v1 = vmov 65535   ;;  %vm59_vm2 = vcmask 72704   ;;  %s407_s1 = inlined_call_operand.vmem [shape: f32[1,9], index: 1, kind: input, shape index: {}]   ;;  %s408_s2 = inlined_call_operand.vmem [shape: f32[1,9], index: 2, kind: input, shape index: {}]   ;;  %s409_s3 = inlined_call_operand.vmem [shape: bf16[9,64], index: 3, kind: input, shape index: {}]   ;;  %s410_s0 = inlined_call_operand.vmem [shape: f32[128,9], index: 0, kind: input, shape index: {}]   ;;  %s411_s4 = inlined_call_operand.vmem [shape: f32[1,64], index: 4, kind: input, shape index: {}]   ;;  %s412_s5 = inlined_call_operand.vmem [shape: f32[128,64], index: 5, kind: output, shape index: {}]  }
   0x1   :  { %v249_v0 = vld [vmem:[%s409_s3] sm:$0x1f]   ;;  %v86_v2 = vsel %vm84_vm0, 4294967295, %v250_v1  ;;  %v22_v4 = vld [vmem:[%s410_s0 + $0x8] sm:$0xff]  ;;  %v23_v9 = vld [vmem:[%s410_s0 + $0x10] sm:$0xff]  ;;  %vm188_vm3 = vcmask 523264  }
   0x2   :  { %v21_v3 = vld [vmem:[%s410_s0] sm:$0xff]  ;;  %v87_v6 = vsel %vm85_vm1, %v86_v2, 0  ;;  %v30_v8 = vld [vmem:[%s410_s0 + $0x48] sm:$0xff]  ;;  %v24_v10 = vld [vmem:[%s410_s0 + $0x18] sm:$0xff] }
   0x3   :  { %v29_v5 = vld [vmem:[%s410_s0 + $0x40] sm:$0xff]  ;;  %v37_v7 = vpack.c.bf16 %v22_v4, %v21_v3  ;;  %v89_v11 = vand.u32 %v249_v0, %v87_v6  ;;  %v31_v13 = vld [vmem:[%s410_s0 + $0x50] sm:$0xff]  ;;  %v32_v14 = vld [vmem:[%s410_s0 + $0x58] sm:$0xff]  ;;  %v38_v19 = vpack.c.bf16 %v24_v10, %v23_v9 }
   0x4   :  { %v41_v12 = vpack.c.bf16 %v30_v8, %v29_v5  ;;  %v25_v15 = vld [vmem:[%s410_s0 + $0x20] sm:$0xff]  ;;  %v26_v16 = vld [vmem:[%s410_s0 + $0x28] sm:$0xff]  ;;  %v42_v20 = vpack.c.bf16 %v32_v14, %v31_v13  ;;  %v27_v23 = vld [vmem:[%s410_s0 + $0x30] sm:$0xff] }
   0x5   :  { %230 = vmatprep.mubr.msk.bf16.mxu0 %vm59_vm2, %v37_v7  ;;  %v33_v17 = vld [vmem:[%s410_s0 + $0x60] sm:$0xff]  ;;  %v34_v18 = vld [vmem:[%s410_s0 + $0x68] sm:$0xff]  ;;  %228 = vmatprep.subr.bf16.mxu0 %v89_v11  ;;  %v39_v21 = vpack.c.bf16 %v26_v16, %v25_v15  ;;  %v28_v24 = vld [vmem:[%s410_s0 + $0x38] sm:$0xff] }
   0x6   :  { %246 = vmatprep.subr.bf16.mxu1 %v89_v11  ;;  %229 = vmatpush3.bf16.msra.mxu0 %v89_v11  ;;  %v43_v22 = vpack.c.bf16 %v34_v18, %v33_v17  ;;  %v35_v25 = vld [vmem:[%s410_s0 + $0x70] sm:$0xff]  ;;  %v36_v26 = vld [vmem:[%s410_s0 + $0x78] sm:$0xff]  ;;  %v40_v27 = vpack.c.bf16 %v28_v24, %v27_v23  ;;  %v209_v29 = vld [vmem:[%s411_s4] ss:$0 sm:$0xff] }
   0x7   :  { %247 = vmatpush3.bf16.msra.mxu1 %v89_v11  ;;  %238 = vmatprep.mubr.msk.bf16.mxu1 %vm59_vm2, %v41_v12  ;;  %v44_v28 = vpack.c.bf16 %v36_v26, %v35_v25 }
   0x9   :  { %231 = vmatmul.mubr.msk.bf16.vlgmr.msra.gmra.mxu0 %vm59_vm2, %v38_v19 }
   0xa   :  { %239 = vmatmul.mubr.msk.bf16.vlgmr.msra.gmra.mxu1 %vm59_vm2, %v42_v20  ;;  %234 = vmatprep.mubr.msk.bf16.mxu0 %vm59_vm2, %v39_v21 }
   0xb   :  { %242 = vmatprep.mubr.msk.bf16.mxu1 %vm59_vm2, %v43_v22 }
  0x11   :  { %235 = vmatmul.mubr.msk.bf16.gmra.mxu0 %vm59_vm2, %v40_v27 }
  0x12   :  { %243 = vmatmul.mubr.msk.bf16.gmra.mxu1 %vm59_vm2, %v44_v28 }
  0xc9   :  { %v232_v30 = vpop.f32.mrf.mxu0 }
  0xca   :  { %v240_v31 = vpop.f32.mrf.mxu1  ;;  %v134_v32 = vadd.f32 %v232_v30, %v209_v29 }
  0xcb   :  { %v166_v33 = vadd.f32 %v240_v31, %v209_v29  ;;  %v125_v34 = vpop.f32.mrf.mxu0 }
  0xcc   :  { %v157_v35 = vpop.f32.mrf.mxu1  ;;  %191 = vst.msk [vmem:[%s412_s5 + $0x10] sm:$0xff] %vm188_vm3, %v134_v32  ;;  %v126_v36 = vadd.f32 %v209_v29, %v125_v34 }
  0xcd   :  { %199 = vst.msk [vmem:[%s412_s5 + $0x50] sm:$0xff] %vm188_vm3, %v166_v33  ;;  %v158_v37 = vadd.f32 %v209_v29, %v157_v35  ;;  %v233_v38 = vpop.f32.mrf.mxu0 }
  0xce   :  { %v241_v39 = vpop.f32.mrf.mxu1  ;;  %189 = vst.msk [vmem:[%s412_s5] sm:$0xff] %vm188_vm3, %v126_v36  ;;  %v137_v40 = vadd.f32 %v233_v38, %v209_v29 }
  0xcf   :  { %197 = vst.msk [vmem:[%s412_s5 + $0x40] sm:$0xff] %vm188_vm3, %v158_v37  ;;  %v169_v41 = vadd.f32 %v241_v39, %v209_v29  ;;  %v128_v42 = vpop.f32.mrf.mxu0 }
  0xd0   :  { %v160_v43 = vpop.f32.mrf.mxu1  ;;  %192 = vst.msk [vmem:[%s412_s5 + $0x18] sm:$0xff] %vm188_vm3, %v137_v40  ;;  %v129_v44 = vadd.f32 %v209_v29, %v128_v42 }
  0xd1   :  { %200 = vst.msk [vmem:[%s412_s5 + $0x58] sm:$0xff] %vm188_vm3, %v169_v41  ;;  %v161_v45 = vadd.f32 %v209_v29, %v160_v43  ;;  %v236_v46 = vpop.f32.mrf.mxu0 }
  0xd2   :  { %v244_v47 = vpop.f32.mrf.mxu1  ;;  %190 = vst.msk [vmem:[%s412_s5 + $0x8] sm:$0xff] %vm188_vm3, %v129_v44  ;;  %v150_v48 = vadd.f32 %v236_v46, %v209_v29 }
  0xd3   :  { %198 = vst.msk [vmem:[%s412_s5 + $0x48] sm:$0xff] %vm188_vm3, %v161_v45  ;;  %v182_v49 = vadd.f32 %v244_v47, %v209_v29  ;;  %v141_v50 = vpop.f32.mrf.mxu0 }
  0xd4   :  { %v173_v51 = vpop.f32.mrf.mxu1  ;;  %195 = vst.msk [vmem:[%s412_s5 + $0x30] sm:$0xff] %vm188_vm3, %v150_v48  ;;  %v142_v52 = vadd.f32 %v209_v29, %v141_v50 }
  0xd5   :  { %203 = vst.msk [vmem:[%s412_s5 + $0x70] sm:$0xff] %vm188_vm3, %v182_v49  ;;  %v174_v53 = vadd.f32 %v209_v29, %v173_v51  ;;  %v237_v54 = vpop.f32.mrf.mxu0 }
  0xd6   :  { %v245_v55 = vpop.f32.mrf.mxu1  ;;  %193 = vst.msk [vmem:[%s412_s5 + $0x20] sm:$0xff] %vm188_vm3, %v142_v52  ;;  %v153_v56 = vadd.f32 %v237_v54, %v209_v29 }
  0xd7   :  { %201 = vst.msk [vmem:[%s412_s5 + $0x60] sm:$0xff] %vm188_vm3, %v174_v53  ;;  %v185_v57 = vadd.f32 %v245_v55, %v209_v29  ;;  %v144_v58 = vpop.f32.mrf.mxu0 }
  0xd8   :  { %v176_v59 = vpop.f32.mrf.mxu1  ;;  %196 = vst.msk [vmem:[%s412_s5 + $0x38] sm:$0xff] %vm188_vm3, %v153_v56  ;;  %v145_v60 = vadd.f32 %v209_v29, %v144_v58 }
  0xd9   :  { %204 = vst.msk [vmem:[%s412_s5 + $0x78] sm:$0xff] %vm188_vm3, %v185_v57  ;;  %v177_v61 = vadd.f32 %v209_v29, %v176_v59 }
  0xda   :  { %194 = vst.msk [vmem:[%s412_s5 + $0x28] sm:$0xff] %vm188_vm3, %v145_v60 }
  0xdb   :  { %202 = vst.msk [vmem:[%s412_s5 + $0x68] sm:$0xff] %vm188_vm3, %v177_v61 }

// kernel: momentum_transform_forward.15
= control target key start
LH: loop header
LB: loop body
LE: loop exit
PB: predicated region body
PF: predicated region fallthrough
CT: control target
= control target key end

     0   :  { %vm78_vm0 = vcmask 1040384   ;;  %vm79_vm1 = vcmask 1041408   ;;  %v242_v1 = vmov 65535   ;;  %vm53_vm2 = vcmask 23552   ;;  %s399_s1 = inlined_call_operand.vmem [shape: f32[1,3], index: 1, kind: input, shape index: {}]   ;;  %s400_s2 = inlined_call_operand.vmem [shape: f32[1,3], index: 2, kind: input, shape index: {}]   ;;  %s401_s3 = inlined_call_operand.vmem [shape: bf16[3,64], index: 3, kind: input, shape index: {}]   ;;  %s402_s0 = inlined_call_operand.vmem [shape: f32[128,3], index: 0, kind: input, shape index: {}]   ;;  %s403_s4 = inlined_call_operand.vmem [shape: f32[1,64], index: 4, kind: input, shape index: {}]   ;;  %s404_s5 = inlined_call_operand.vmem [shape: f32[128,64], index: 5, kind: output, shape index: {}]  }
   0x1   :  { %v45_v0 = vld [vmem:[%s401_s3] sm:$0x3]  ;;  %v80_v2 = vsel %vm78_vm0, 4294967295, %v242_v1  ;;  %v22_v4 = vld [vmem:[%s402_s0 + $0x8] sm:$0xff]  ;;  %v23_v9 = vld [vmem:[%s402_s0 + $0x10] sm:$0xff]  ;;  %vm182_vm3 = vcmask 523264  }
   0x2   :  { %v21_v3 = vld [vmem:[%s402_s0] sm:$0xff]  ;;  %v81_v5 = vsel %vm79_vm1, %v80_v2, 0  ;;  %v30_v8 = vld [vmem:[%s402_s0 + $0x48] sm:$0xff]  ;;  %v24_v12 = vld [vmem:[%s402_s0 + $0x18] sm:$0xff] }
   0x3   :  { %v37_v6 = vpack.c.bf16 %v22_v4, %v21_v3  ;;  %v29_v7 = vld [vmem:[%s402_s0 + $0x40] sm:$0xff]  ;;  %v83_v10 = vand.u32 %v81_v5, %v45_v0  ;;  %v31_v13 = vld [vmem:[%s402_s0 + $0x50] sm:$0xff]  ;;  %v32_v14 = vld [vmem:[%s402_s0 + $0x58] sm:$0xff]  ;;  %v38_v18 = vpack.c.bf16 %v24_v12, %v23_v9 }
   0x4   :  { %v41_v11 = vpack.c.bf16 %v30_v8, %v29_v7  ;;  %v25_v15 = vld [vmem:[%s402_s0 + $0x20] sm:$0xff]  ;;  %v26_v16 = vld [vmem:[%s402_s0 + $0x28] sm:$0xff]  ;;  %v42_v19 = vpack.c.bf16 %v32_v14, %v31_v13  ;;  %v27_v23 = vld [vmem:[%s402_s0 + $0x30] sm:$0xff] }
   0x5   :  { %223 = vmatprep.mubr.msk.bf16.mxu0 %vm53_vm2, %v37_v6  ;;  %v33_v17 = vld [vmem:[%s402_s0 + $0x60] sm:$0xff]  ;;  %221 = vmatprep.subr.bf16.mxu0 %v83_v10  ;;  %v34_v20 = vld [vmem:[%s402_s0 + $0x68] sm:$0xff]  ;;  %v39_v21 = vpack.c.bf16 %v26_v16, %v25_v15  ;;  %v28_v24 = vld [vmem:[%s402_s0 + $0x38] sm:$0xff] }
   0x6   :  { %239 = vmatprep.subr.bf16.mxu1 %v83_v10  ;;  %222 = vmatpush3.bf16.msra.mxu0 %v83_v10  ;;  %v43_v22 = vpack.c.bf16 %v34_v20, %v33_v17  ;;  %v35_v25 = vld [vmem:[%s402_s0 + $0x70] sm:$0xff]  ;;  %v36_v26 = vld [vmem:[%s402_s0 + $0x78] sm:$0xff]  ;;  %v40_v27 = vpack.c.bf16 %v28_v24, %v27_v23  ;;  %v203_v29 = vld [vmem:[%s403_s4] ss:$0 sm:$0xff] }
   0x7   :  { %240 = vmatpush3.bf16.msra.mxu1 %v83_v10  ;;  %231 = vmatprep.mubr.msk.bf16.mxu1 %vm53_vm2, %v41_v11  ;;  %v44_v28 = vpack.c.bf16 %v36_v26, %v35_v25 }
   0x9   :  { %224 = vmatmul.mubr.msk.bf16.vlgmr.msra.gmra.mxu0 %vm53_vm2, %v38_v18 }
   0xa   :  { %232 = vmatmul.mubr.msk.bf16.vlgmr.msra.gmra.mxu1 %vm53_vm2, %v42_v19  ;;  %227 = vmatprep.mubr.msk.bf16.mxu0 %vm53_vm2, %v39_v21 }
   0xb   :  { %235 = vmatprep.mubr.msk.bf16.mxu1 %vm53_vm2, %v43_v22 }
  0x11   :  { %228 = vmatmul.mubr.msk.bf16.gmra.mxu0 %vm53_vm2, %v40_v27 }
  0x12   :  { %236 = vmatmul.mubr.msk.bf16.gmra.mxu1 %vm53_vm2, %v44_v28 }
  0xc9   :  { %v225_v30 = vpop.f32.mrf.mxu0 }
  0xca   :  { %v233_v31 = vpop.f32.mrf.mxu1  ;;  %v128_v32 = vadd.f32 %v225_v30, %v203_v29 }
  0xcb   :  { %v160_v33 = vadd.f32 %v233_v31, %v203_v29  ;;  %v119_v34 = vpop.f32.mrf.mxu0 }
  0xcc   :  { %v151_v35 = vpop.f32.mrf.mxu1  ;;  %185 = vst.msk [vmem:[%s404_s5 + $0x10] sm:$0xff] %vm182_vm3, %v128_v32  ;;  %v120_v36 = vadd.f32 %v203_v29, %v119_v34 }
  0xcd   :  { %193 = vst.msk [vmem:[%s404_s5 + $0x50] sm:$0xff] %vm182_vm3, %v160_v33  ;;  %v152_v37 = vadd.f32 %v203_v29, %v151_v35  ;;  %v226_v38 = vpop.f32.mrf.mxu0 }
  0xce   :  { %v234_v39 = vpop.f32.mrf.mxu1  ;;  %183 = vst.msk [vmem:[%s404_s5] sm:$0xff] %vm182_vm3, %v120_v36  ;;  %v131_v40 = vadd.f32 %v226_v38, %v203_v29 }
  0xcf   :  { %191 = vst.msk [vmem:[%s404_s5 + $0x40] sm:$0xff] %vm182_vm3, %v152_v37  ;;  %v163_v41 = vadd.f32 %v234_v39, %v203_v29  ;;  %v122_v42 = vpop.f32.mrf.mxu0 }
  0xd0   :  { %v154_v43 = vpop.f32.mrf.mxu1  ;;  %186 = vst.msk [vmem:[%s404_s5 + $0x18] sm:$0xff] %vm182_vm3, %v131_v40  ;;  %v123_v44 = vadd.f32 %v203_v29, %v122_v42 }
  0xd1   :  { %194 = vst.msk [vmem:[%s404_s5 + $0x58] sm:$0xff] %vm182_vm3, %v163_v41  ;;  %v155_v45 = vadd.f32 %v203_v29, %v154_v43  ;;  %v229_v46 = vpop.f32.mrf.mxu0 }
  0xd2   :  { %v237_v47 = vpop.f32.mrf.mxu1  ;;  %184 = vst.msk [vmem:[%s404_s5 + $0x8] sm:$0xff] %vm182_vm3, %v123_v44  ;;  %v144_v48 = vadd.f32 %v229_v46, %v203_v29 }
  0xd3   :  { %192 = vst.msk [vmem:[%s404_s5 + $0x48] sm:$0xff] %vm182_vm3, %v155_v45  ;;  %v176_v49 = vadd.f32 %v237_v47, %v203_v29  ;;  %v135_v50 = vpop.f32.mrf.mxu0 }
  0xd4   :  { %v167_v51 = vpop.f32.mrf.mxu1  ;;  %189 = vst.msk [vmem:[%s404_s5 + $0x30] sm:$0xff] %vm182_vm3, %v144_v48  ;;  %v136_v52 = vadd.f32 %v203_v29, %v135_v50 }
  0xd5   :  { %197 = vst.msk [vmem:[%s404_s5 + $0x70] sm:$0xff] %vm182_vm3, %v176_v49  ;;  %v168_v53 = vadd.f32 %v203_v29, %v167_v51  ;;  %v230_v54 = vpop.f32.mrf.mxu0 }
  0xd6   :  { %v238_v55 = vpop.f32.mrf.mxu1  ;;  %187 = vst.msk [vmem:[%s404_s5 + $0x20] sm:$0xff] %vm182_vm3, %v136_v52  ;;  %v147_v56 = vadd.f32 %v230_v54, %v203_v29 }
  0xd7   :  { %195 = vst.msk [vmem:[%s404_s5 + $0x60] sm:$0xff] %vm182_vm3, %v168_v53  ;;  %v179_v57 = vadd.f32 %v238_v55, %v203_v29  ;;  %v138_v58 = vpop.f32.mrf.mxu0 }
  0xd8   :  { %v170_v59 = vpop.f32.mrf.mxu1  ;;  %190 = vst.msk [vmem:[%s404_s5 + $0x38] sm:$0xff] %vm182_vm3, %v147_v56  ;;  %v139_v60 = vadd.f32 %v203_v29, %v138_v58 }
  0xd9   :  { %198 = vst.msk [vmem:[%s404_s5 + $0x78] sm:$0xff] %vm182_vm3, %v179_v57  ;;  %v171_v61 = vadd.f32 %v203_v29, %v170_v59 }
  0xda   :  { %188 = vst.msk [vmem:[%s404_s5 + $0x28] sm:$0xff] %vm182_vm3, %v139_v60 }
  0xdb   :  { %196 = vst.msk [vmem:[%s404_s5 + $0x68] sm:$0xff] %vm182_vm3, %v171_v61 }

// kernel: momentum_transform_forward.17
= control target key start
LH: loop header
LB: loop body
LE: loop exit
PB: predicated region body
PF: predicated region fallthrough
CT: control target
= control target key end

     0   :  { %v413_v60 = vmov 1966171168   ;;  %v271_v62 = vlaneseq  ;;  %s503_s1 = inlined_call_operand.vmem [shape: f32[1,128], index: 1, kind: input, shape index: {}]   ;;  %s504_s2 = inlined_call_operand.vmem [shape: f32[1,128], index: 2, kind: input, shape index: {}]   ;;  %s505_s3 = inlined_call_operand.vmem [shape: bf16[128,128], index: 3, kind: input, shape index: {}]   ;;  %s506_s0 = inlined_call_operand.vmem [shape: bf16[64,128], index: 0, kind: input, shape index: {}]   ;;  %s507_s4 = inlined_call_operand.vmem [shape: f32[1,128], index: 4, kind: input, shape index: {}]   ;;  %s508_s5 = inlined_call_operand.vmem [shape: bf16[64,128], index: 5, kind: output, shape index: {0}]   ;;  %s509_s6 = inlined_call_operand.vmem [shape: f32[1,1,256], index: 6, kind: output, shape index: {1}]  }
   0x1   :  { %v401_v0 = vld [vmem:[%s505_s3 + $0x38] sm:$0xff]   ;;  %v402_v1 = vld [vmem:[%s505_s3 + $0x30] sm:$0xff]   ;;  %v403_v2 = vld [vmem:[%s505_s3 + $0x28] sm:$0xff]   ;;  %v269_v61 = vunpack.c.l.s4 %v413_v60 }
   0x2   :  { %360 = vmatprep.subr.bf16.mxu0 %v401_v0  ;;  %384 = vmatprep.subr.bf16.mxu1 %v401_v0  ;;  %v404_v3 = vld [vmem:[%s505_s3 + $0x20] sm:$0xff]   ;;  %v411_v5 = vld [vmem:[%s506_s0 + $0x10] sm:$0xff]   ;;  %v405_v6 = vld [vmem:[%s505_s3 + $0x18] sm:$0xff]   ;;  %vm285_vm0 = vcmp.lt.s32.totalorder %v271_v62, 256 }
   0x3   :  { %361 = vmatpush3.bf16.msra.mxu0 %v401_v0  ;;  %392 = vmatpush3.bf16.msra.mxu1 %v401_v0  ;;  %v409_v4 = vld [vmem:[%s506_s0] sm:$0xff]   ;;  %v406_v7 = vld [vmem:[%s505_s3 + $0x10] sm:$0xff]   ;;  %v407_v8 = vld [vmem:[%s505_s3 + $0x8] sm:$0xff]  }
   0x4   :  { %362 = vmatprep.subr.bf16.mxu0 %v402_v1  ;;  %385 = vmatprep.subr.bf16.mxu1 %v402_v1  ;;  %v408_v9 = vld [vmem:[%s505_s3] sm:$0xff]   ;;  %v410_v10 = vld [vmem:[%s506_s0 + $0x8] sm:$0xff]   ;;  %v412_v11 = vld [vmem:[%s506_s0 + $0x18] sm:$0xff]  }
   0x5   :  { %376 = vmatprep.mubr.bf16.mxu0 %v409_v4  ;;  %380 = vmatprep.mubr.bf16.mxu1 %v411_v5  ;;  %v296_v14 = vld [vmem:[%s507_s4] ss:$0 sm:$0xff]  ;;  %v272_v4 = vshrl.u32 %v271_v62, 7 }
   0x7   :  { %363 = vmatpush3.bf16.msra.mxu0 %v402_v1  ;;  %393 = vmatpush3.bf16.msra.mxu1 %v402_v1 }
   0x8   :  { %364 = vmatprep.subr.bf16.mxu0 %v403_v2  ;;  %386 = vmatprep.subr.bf16.mxu1 %v403_v2 }
   0xb   :  { %365 = vmatpush3.bf16.msra.mxu0 %v403_v2  ;;  %394 = vmatpush3.bf16.msra.mxu1 %v403_v2 }
   0xc   :  { %366 = vmatprep.subr.bf16.mxu0 %v404_v3  ;;  %387 = vmatprep.subr.bf16.mxu1 %v404_v3 }
   0xf   :  { %367 = vmatpush3.bf16.msra.mxu0 %v404_v3  ;;  %395 = vmatpush3.bf16.msra.mxu1 %v404_v3  ;;  %v270_v3 = vunpack.c.0.s8 %v269_v61 }
  0x10   :  { %368 = vmatprep.subr.bf16.mxu0 %v405_v6  ;;  %388 = vmatprep.subr.bf16.mxu1 %v405_v6 }
  0x13   :  { %369 = vmatpush3.bf16.msra.mxu0 %v405_v6  ;;  %396 = vmatpush3.bf16.msra.mxu1 %v405_v6 }
  0x14   :  { %370 = vmatprep.subr.bf16.mxu0 %v406_v7  ;;  %389 = vmatprep.subr.bf16.mxu1 %v406_v7 }
  0x17   :  { %371 = vmatpush3.bf16.msra.mxu0 %v406_v7  ;;  %397 = vmatpush3.bf16.msra.mxu1 %v406_v7 }
  0x18   :  { %372 = vmatprep.subr.bf16.mxu0 %v407_v8  ;;  %390 = vmatprep.subr.bf16.mxu1 %v407_v8 }
  0x1b   :  { %373 = vmatpush3.bf16.msra.mxu0 %v407_v8  ;;  %398 = vmatpush3.bf16.msra.mxu1 %v407_v8  ;;  %v273_v8 = vsub.s32 %v270_v3, %v272_v4 }
  0x1c   :  { %374 = vmatprep.subr.bf16.mxu0 %v408_v9  ;;  %391 = vmatprep.subr.bf16.mxu1 %v408_v9 }
  0x1f   :  { %375 = vmatpush3.bf16.msra.mxu0 %v408_v9  ;;  %399 = vmatpush3.bf16.msra.mxu1 %v408_v9 }
  0x22   :  { %377 = vmatmul.mubr.bf16.vlgmr.msra.gmra.mxu0 %v410_v10  ;;  %381 = vmatmul.mubr.bf16.vlgmr.msra.gmra.mxu1 %v412_v11 }
  0xe2   :  { %v378_v12 = vpop.f32.mrf.mxu0  ;;  %v382_v13 = vpop.f32.mrf.mxu1 }
  0xe3   :  { %v185_v17 = vadd.f32 %v382_v13, %v296_v14  ;;  %v169_v20 = vadd.f32 %v378_v12, %v296_v14 }
  0xe4   :  { %v160_v15 = vpop.f32.mrf.mxu0  ;;  %v176_v16 = vpop.f32.mrf.mxu1 }
  0xe5   :  { %v161_v21 = vadd.f32 %v296_v14, %v160_v15  ;;  %v177_v24 = vadd.f32 %v296_v14, %v176_v16  ;;  %v246_v36 = vmul.f32 %v169_v20, %v169_v20  ;;  %v250_v48 = vmul.f32 %v185_v17, %v185_v17 }
  0xe6   :  { %v379_v18 = vpop.f32.mrf.mxu0  ;;  %v383_v19 = vpop.f32.mrf.mxu1 }
  0xe7   :  { %v172_v22 = vadd.f32 %v379_v18, %v296_v14  ;;  %v188_v23 = vadd.f32 %v383_v19, %v296_v14  ;;  %v244_v31 = vmul.f32 %v161_v21, %v161_v21  ;;  %v248_v42 = vmul.f32 %v177_v24, %v177_v24 }
  0xe8   :  { %v163_v25 = vpop.f32.mrf.mxu0  ;;  %v179_v26 = vpop.f32.mrf.mxu1 }
  0xe9   :  { %v333_v27 = vpack.c.bf16 %v172_v22, %v169_v20  ;;  %v164_v28 = vadd.f32 %v296_v14, %v163_v25  ;;  %v343_v29 = vpack.c.bf16 %v188_v23, %v185_v17  ;;  %v180_v30 = vadd.f32 %v296_v14, %v179_v26 }
  0xea   :  { %v247_v39 = vmul.f32 %v172_v22, %v172_v22  ;;  %v251_v51 = vmul.f32 %v188_v23, %v188_v23 }
  0xeb   :  { %345 = vst [vmem:[%s508_s5 + $0x8] sm:$0xff] %v333_v27   ;;  %v328_v32 = vpack.c.bf16 %v164_v28, %v161_v21  ;;  %v231_v33 = vadd.f32 %v164_v28, %v161_v21  ;;  %v245_v34 = vmul.f32 %v164_v28, %v164_v28  ;;  %347 = vst [vmem:[%s508_s5 + $0x18] sm:$0xff] %v343_v29  }
  0xec   :  { %v338_v35 = vpack.c.bf16 %v180_v30, %v177_v24  ;;  %v249_v46 = vmul.f32 %v180_v30, %v180_v30 }
  0xed   :  { %329 = vst [vmem:[%s508_s5] sm:$0xff] %v328_v32   ;;  %v232_v37 = vadd.f32 %v231_v33, %v169_v20  ;;  %v252_v38 = vadd.f32 %v245_v34, %v244_v31 }
  0xee   :  { %346 = vst [vmem:[%s508_s5 + $0x10] sm:$0xff] %v338_v35  }
  0xef   :  { %v253_v40 = vadd.f32 %v252_v38, %v246_v36  ;;  %v233_v41 = vadd.f32 %v232_v37, %v172_v22 }
  0xf1   :  { %v234_v43 = vadd.f32 %v233_v41, %v177_v24  ;;  %v254_v44 = vadd.f32 %v253_v40, %v247_v39 }
  0xf3   :  { %v235_v45 = vadd.f32 %v234_v43, %v180_v30  ;;  %v255_v47 = vadd.f32 %v254_v44, %v248_v42 }
  0xf5   :  { %v236_v49 = vadd.f32 %v235_v45, %v185_v17  ;;  %v256_v50 = vadd.f32 %v255_v47, %v249_v46 }
  0xf7   :  { %v237_v52 = vadd.f32 %v236_v49, %v188_v23  ;;  %v257_v53 = vadd.f32 %v256_v50, %v250_v48 }
  0xf9   :  { %v238_v54 = vrot.slane %v237_v52, 4  ;;  %v258_v55 = vadd.f32 %v257_v53, %v251_v51 }
  0xfb   :  { %v239_v56 = vadd.f32 %v238_v54, %v237_v52  ;;  %v259_v57 = vrot.slane %v258_v55, 4 }
  0xfd   :  { %v240_v58 = vrot.slane %v239_v56, 2  ;;  %v260_v59 = vadd.f32 %v259_v57, %v258_v55 }
  0xff   :  { %v241_v63 = vadd.f32 %v240_v58, %v239_v56  ;;  %v261_v0 = vrot.slane %v260_v59, 2 }
 0x101   :  { %v242_v1 = vrot.slane %v241_v63, 1  ;;  %v262_v2 = vadd.f32 %v261_v0, %v260_v59 }
 0x103   :  { %v263_v5 = vrot.slane %v262_v2, 1  ;;  %v243_v6 = vadd.f32 %v242_v1, %v241_v63 }
 0x105   :  { %v264_v7 = vadd.f32 %v263_v5, %v262_v2 }
 0x107   :  { %v267_v9 = vcombine.low %v243_v6, %v264_v7 }
 0x109   :  { %v274_v10 = vrot.slane %v267_v9, %v273_v8 }
 0x10b   :  { %v281_v11 = vrot.slane %v274_v10, %v273_v8 }
 0x10d   :  { %287 = vst.msk [vmem:[%s509_s6] sm:$0x3] %vm285_vm0, %v281_v11 }

// kernel: momentum_transform_forward.18
= control target key start
LH: loop header
LB: loop body
LE: loop exit
PB: predicated region body
PF: predicated region fallthrough
CT: control target
= control target key end

     0   :  { %s548_s3 = inlined_call_operand.vmem [shape: bf16[128,128], index: 3, kind: input, shape index: {}]   ;;  %s549_s0 = inlined_call_operand.vmem [shape: bf16[64,128], index: 0, kind: input, shape index: {}]   ;;  %s550_s1 = inlined_call_operand.vmem [shape: f32[1,128], index: 1, kind: input, shape index: {}]   ;;  %s551_s2 = inlined_call_operand.vmem [shape: f32[1,128], index: 2, kind: input, shape index: {}]   ;;  %s552_s4 = inlined_call_operand.vmem [shape: f32[1,128], index: 4, kind: input, shape index: {}]   ;;  %s553_s5 = inlined_call_operand.vmem [shape: bf16[64,128], index: 5, kind: output, shape index: {0}]   ;;  %s554_s6 = inlined_call_operand.vmem [shape: f32[1,1,256], index: 6, kind: output, shape index: {1}]  }
   0x1   :  { %v444_v0 = vld [vmem:[%s548_s3 + $0x38] sm:$0xff]   ;;  %v445_v1 = vld [vmem:[%s548_s3 + $0x30] sm:$0xff]   ;;  %v446_v2 = vld [vmem:[%s548_s3 + $0x28] sm:$0xff]  }
   0x2   :  { %403 = vmatprep.subr.bf16.mxu0 %v444_v0  ;;  %427 = vmatprep.subr.bf16.mxu1 %v444_v0  ;;  %v447_v3 = vld [vmem:[%s548_s3 + $0x20] sm:$0xff]   ;;  %v386_v8 = vld [vmem:[%s549_s0 + $0x10] sm:$0xff]   ;;  %v385_v10 = vld [vmem:[%s549_s0 + $0x8] sm:$0xff]  }
   0x3   :  { %404 = vmatpush3.bf16.msra.mxu0 %v444_v0  ;;  %435 = vmatpush3.bf16.msra.mxu1 %v444_v0  ;;  %v350_v4 = vld [vmem:[%s549_s0] sm:$0xff]   ;;  %v359_v11 = vunpack.c.l.bf16 %v386_v8  ;;  %v360_v12 = vunpack.c.h.bf16 %v386_v8  ;;  %v387_v15 = vld [vmem:[%s549_s0 + $0x18] sm:$0xff]   ;;  %v355_v20 = vunpack.c.l.bf16 %v385_v10  ;;  %v356_v22 = vunpack.c.h.bf16 %v385_v10  ;;  %v449_v29 = vld [vmem:[%s548_s3 + $0x10] sm:$0xff]  }
   0x4   :  { %405 = vmatprep.subr.bf16.mxu0 %v445_v1  ;;  %428 = vmatprep.subr.bf16.mxu1 %v445_v1  ;;  %v322_v5 = vld [vmem:[%s550_s1] ss:$0 sm:$0xff]  ;;  %v351_v6 = vunpack.c.l.bf16 %v350_v4  ;;  %v352_v7 = vunpack.c.h.bf16 %v350_v4  ;;  %v448_v16 = vld [vmem:[%s548_s3 + $0x18] sm:$0xff]   ;;  %v363_v24 = vunpack.c.l.bf16 %v387_v15  ;;  %v364_v25 = vunpack.c.h.bf16 %v387_v15  ;;  %v450_v38 = vld [vmem:[%s548_s3 + $0x8] sm:$0xff]  }
   0x5   :  { %v323_v9 = vld [vmem:[%s551_s2] ss:$0 sm:$0xff]  ;;  %v50_v17 = vmul.f32 %v359_v11, %v322_v5  ;;  %v51_v21 = vmul.f32 %v360_v12, %v322_v5  ;;  %v48_v33 = vmul.f32 %v355_v20, %v322_v5  ;;  %v49_v34 = vmul.f32 %v356_v22, %v322_v5 }
   0x6   :  { %v46_v13 = vmul.f32 %v351_v6, %v322_v5  ;;  %v47_v14 = vmul.f32 %v352_v7, %v322_v5  ;;  %v52_v35 = vmul.f32 %v363_v24, %v322_v5  ;;  %v53_v36 = vmul.f32 %v364_v25, %v322_v5  ;;  %v451_v43 = vld [vmem:[%s548_s3] sm:$0xff]  }
   0x7   :  { %406 = vmatpush3.bf16.msra.mxu0 %v445_v1  ;;  %436 = vmatpush3.bf16.msra.mxu1 %v445_v1  ;;  %v65_v23 = vadd.f32 %v323_v9, %v50_v17  ;;  %v66_v28 = vadd.f32 %v323_v9, %v51_v21  ;;  %v63_v39 = vadd.f32 %v323_v9, %v48_v33  ;;  %v324_v52 = vld [vmem:[%s552_s4] ss:$0 sm:$0xff] }
   0x8   :  { %407 = vmatprep.subr.bf16.mxu0 %v446_v2  ;;  %429 = vmatprep.subr.bf16.mxu1 %v446_v2  ;;  %v61_v18 = vadd.f32 %v323_v9, %v46_v13  ;;  %v62_v19 = vadd.f32 %v323_v9, %v47_v14  ;;  %v64_v40 = vadd.f32 %v323_v9, %v49_v34  ;;  %v452_v34 = vmov 1966171168  }
   0x9   :  { %v73_v30 = vmax.f32 %v65_v23, 0.0  ;;  %v74_v32 = vmax.f32 %v66_v28, 0.0  ;;  %v67_v41 = vadd.f32 %v323_v9, %v52_v35  ;;  %v68_v42 = vadd.f32 %v323_v9, %v53_v36 }
   0xa   :  { %v69_v26 = vmax.f32 %v61_v18, 0.0  ;;  %v70_v27 = vmax.f32 %v62_v19, 0.0  ;;  %v71_v44 = vmax.f32 %v63_v39, 0.0  ;;  %v72_v45 = vmax.f32 %v64_v40, 0.0 }
   0xb   :  { %408 = vmatpush3.bf16.msra.mxu0 %v446_v2  ;;  %437 = vmatpush3.bf16.msra.mxu1 %v446_v2  ;;  %v79_v37 = vpack.c.bf16 %v74_v32, %v73_v30  ;;  %v75_v46 = vmax.f32 %v67_v41, 0.0  ;;  %v76_v47 = vmax.f32 %v68_v42, 0.0  ;;  %v295_v35 = vunpack.c.l.s4 %v452_v34 }
   0xc   :  { %409 = vmatprep.subr.bf16.mxu0 %v447_v3  ;;  %430 = vmatprep.subr.bf16.mxu1 %v447_v3  ;;  %v77_v31 = vpack.c.bf16 %v70_v27, %v69_v26  ;;  %v78_v48 = vpack.c.bf16 %v72_v45, %v71_v44  ;;  %v297_v36 = vlaneseq }
   0xd   :  { %423 = vmatprep.mubr.bf16.mxu1 %v79_v37  ;;  %v80_v49 = vpack.c.bf16 %v76_v47, %v75_v46  ;;  %v296_v41 = vunpack.c.0.s8 %v295_v35 }
   0xe   :  { %419 = vmatprep.mubr.bf16.mxu0 %v77_v31  ;;  %v298_v42 = vshrl.u32 %v297_v36, 7  ;;  %vm311_vm0 = vcmp.lt.s32.totalorder %v297_v36, 256 }
   0xf   :  { %410 = vmatpush3.bf16.msra.mxu0 %v447_v3  ;;  %438 = vmatpush3.bf16.msra.mxu1 %v447_v3 }
  0x10   :  { %411 = vmatprep.subr.bf16.mxu0 %v448_v16  ;;  %431 = vmatprep.subr.bf16.mxu1 %v448_v16  ;;  %v299_v46 = vsub.s32 %v296_v41, %v298_v42 }
  0x13   :  { %412 = vmatpush3.bf16.msra.mxu0 %v448_v16  ;;  %439 = vmatpush3.bf16.msra.mxu1 %v448_v16 }
  0x14   :  { %413 = vmatprep.subr.bf16.mxu0 %v449_v29  ;;  %432 = vmatprep.subr.bf16.mxu1 %v449_v29 }
  0x17   :  { %414 = vmatpush3.bf16.msra.mxu0 %v449_v29  ;;  %440 = vmatpush3.bf16.msra.mxu1 %v449_v29 }
  0x18   :  { %415 = vmatprep.subr.bf16.mxu0 %v450_v38  ;;  %433 = vmatprep.subr.bf16.mxu1 %v450_v38 }
  0x1b   :  { %416 = vmatpush3.bf16.msra.mxu0 %v450_v38  ;;  %441 = vmatpush3.bf16.msra.mxu1 %v450_v38 }
  0x1c   :  { %417 = vmatprep.subr.bf16.mxu0 %v451_v43  ;;  %434 = vmatprep.subr.bf16.mxu1 %v451_v43 }
  0x1f   :  { %418 = vmatpush3.bf16.msra.mxu0 %v451_v43  ;;  %442 = vmatpush3.bf16.msra.mxu1 %v451_v43 }
  0x22   :  { %420 = vmatmul.mubr.bf16.vlgmr.msra.gmra.mxu0 %v78_v48  ;;  %424 = vmatmul.mubr.bf16.vlgmr.msra.gmra.mxu1 %v80_v49 }
  0xe2   :  { %v421_v50 = vpop.f32.mrf.mxu0  ;;  %v425_v51 = vpop.f32.mrf.mxu1 }
  0xe3   :  { %v211_v55 = vadd.f32 %v425_v51, %v324_v52  ;;  %v195_v58 = vadd.f32 %v421_v50, %v324_v52 }
  0xe4   :  { %v186_v53 = vpop.f32.mrf.mxu0  ;;  %v202_v54 = vpop.f32.mrf.mxu1 }
  0xe5   :  { %v187_v59 = vadd.f32 %v324_v52, %v186_v53  ;;  %v203_v62 = vadd.f32 %v324_v52, %v202_v54  ;;  %v272_v10 = vmul.f32 %v195_v58, %v195_v58  ;;  %v276_v22 = vmul.f32 %v211_v55, %v211_v55 }
  0xe6   :  { %v422_v56 = vpop.f32.mrf.mxu0  ;;  %v426_v57 = vpop.f32.mrf.mxu1 }
  0xe7   :  { %v198_v60 = vadd.f32 %v422_v56, %v324_v52  ;;  %v214_v61 = vadd.f32 %v426_v57, %v324_v52  ;;  %v270_v5 = vmul.f32 %v187_v59, %v187_v59  ;;  %v274_v16 = vmul.f32 %v203_v62, %v203_v62 }
  0xe8   :  { %v189_v63 = vpop.f32.mrf.mxu0  ;;  %v205_v0 = vpop.f32.mrf.mxu1 }
  0xe9   :  { %v373_v1 = vpack.c.bf16 %v198_v60, %v195_v58  ;;  %v190_v2 = vadd.f32 %v324_v52, %v189_v63  ;;  %v383_v3 = vpack.c.bf16 %v214_v61, %v211_v55  ;;  %v206_v4 = vadd.f32 %v324_v52, %v205_v0 }
  0xea   :  { %v273_v13 = vmul.f32 %v198_v60, %v198_v60  ;;  %v277_v25 = vmul.f32 %v214_v61, %v214_v61 }
  0xeb   :  { %388 = vst [vmem:[%s553_s5 + $0x8] sm:$0xff] %v373_v1   ;;  %v368_v6 = vpack.c.bf16 %v190_v2, %v187_v59  ;;  %v257_v7 = vadd.f32 %v190_v2, %v187_v59  ;;  %v271_v8 = vmul.f32 %v190_v2, %v190_v2  ;;  %390 = vst [vmem:[%s553_s5 + $0x18] sm:$0xff] %v383_v3  }
  0xec   :  { %v378_v9 = vpack.c.bf16 %v206_v4, %v203_v62  ;;  %v275_v20 = vmul.f32 %v206_v4, %v206_v4 }
  0xed   :  { %369 = vst [vmem:[%s553_s5] sm:$0xff] %v368_v6   ;;  %v258_v11 = vadd.f32 %v257_v7, %v195_v58  ;;  %v278_v12 = vadd.f32 %v271_v8, %v270_v5 }
  0xee   :  { %389 = vst [vmem:[%s553_s5 + $0x10] sm:$0xff] %v378_v9  }
  0xef   :  { %v279_v14 = vadd.f32 %v278_v12, %v272_v10  ;;  %v259_v15 = vadd.f32 %v258_v11, %v198_v60 }
  0xf1   :  { %v260_v17 = vadd.f32 %v259_v15, %v203_v62  ;;  %v280_v18 = vadd.f32 %v279_v14, %v273_v13 }
  0xf3   :  { %v261_v19 = vadd.f32 %v260_v17, %v206_v4  ;;  %v281_v21 = vadd.f32 %v280_v18, %v274_v16 }
  0xf5   :  { %v262_v23 = vadd.f32 %v261_v19, %v211_v55  ;;  %v282_v24 = vadd.f32 %v281_v21, %v275_v20 }
  0xf7   :  { %v263_v26 = vadd.f32 %v262_v23, %v214_v61  ;;  %v283_v27 = vadd.f32 %v282_v24, %v276_v22 }
  0xf9   :  { %v264_v28 = vrot.slane %v263_v26, 4  ;;  %v284_v29 = vadd.f32 %v283_v27, %v277_v25 }
  0xfb   :  { %v265_v30 = vadd.f32 %v264_v28, %v263_v26  ;;  %v285_v31 = vrot.slane %v284_v29, 4 }
  0xfd   :  { %v266_v32 = vrot.slane %v265_v30, 2  ;;  %v286_v33 = vadd.f32 %v285_v31, %v284_v29 }
  0xff   :  { %v267_v37 = vadd.f32 %v266_v32, %v265_v30  ;;  %v287_v38 = vrot.slane %v286_v33, 2 }
 0x101   :  { %v268_v39 = vrot.slane %v267_v37, 1  ;;  %v288_v40 = vadd.f32 %v287_v38, %v286_v33 }
 0x103   :  { %v289_v43 = vrot.slane %v288_v40, 1  ;;  %v269_v44 = vadd.f32 %v268_v39, %v267_v37 }
 0x105   :  { %v290_v45 = vadd.f32 %v289_v43, %v288_v40 }
 0x107   :  { %v293_v47 = vcombine.low %v269_v44, %v290_v45 }
 0x109   :  { %v300_v48 = vrot.slane %v293_v47, %v299_v46 }
 0x10b   :  { %v307_v49 = vrot.slane %v300_v48, %v299_v46 }
 0x10d   :  { %313 = vst.msk [vmem:[%s554_s6] sm:$0x3] %vm311_vm0, %v307_v49 }

// kernel: momentum_transform_forward.21
= control target key start
LH: loop header
LB: loop body
LE: loop exit
PB: predicated region body
PF: predicated region fallthrough
CT: control target
= control target key end

     0   :  { %s1444_s18 = smov 0   ;;  %s1446_s19 = smov 0   ;;  %s1850_s0 = inlined_call_operand.vmem [shape: bf16[2,64,128], index: 0, kind: input, shape index: {}]   ;;  %s1851_s1 = inlined_call_operand.vmem [shape: f32[1,128], index: 1, kind: input, shape index: {}]   ;;  %s1852_s2 = inlined_call_operand.vmem [shape: f32[1,128], index: 2, kind: input, shape index: {}]   ;;  %s1853_s3 = inlined_call_operand.vmem [shape: bf16[128,1024], index: 3, kind: input, shape index: {}]   ;;  %s1854_s4 = inlined_call_operand.vmem [shape: f32[1,1024], index: 4, kind: input, shape index: {}]   ;;  %s1855_s5 = inlined_call_operand.vmem [shape: f32[2,1,1024], index: 5, kind: output, shape index: {}]  }
   0x1   :  { %s1448_s20 = smov 0  }
   0x2 LB: > { %s27_s21 = sadd.s32 1, %s1406_s19  ;;  %p1269_p0 = scmp.ge.s32.totalorder %s1410_s20, 1  ;;  %s1410_s20 = sphi %s1448_s20, %s15_s20   ;;  %s1406_s19 = sphi %s1446_s19, %s1857_s19   ;;  %s1402_s18 = sphi %s1444_s18, %s1856_s18  }
   0x3   : > { %p29_p1 = scmp.ge.s32.totalorder %s27_s21, 2  ;;  %p206_p2 = scmp.lt.s32.totalorder %s1410_s20, 3 }
   0x5   : > { %s1859_s21 = smov (%p29_p1, %s27_s21), 0  ;;  %p207_p3 = pnand %p1269_p0, %p206_p2 }
   0x6   : > { %p238_p4 = scmp.lt.s32.totalorder (!%p207_p3), %s1402_s18, 1 }
   0x7   : > { %210 = sbr.rel (%p207_p3) target bundleno = 330 (0x14a), region = 40 }
   0xc   : > { %v371_v0 = vld [vmem:[%s1853_s3 + $0x1c0] sm:$0xff]  ;;  %v372_v2 = vld [vmem:[%s1853_s3 + $0x1c8] sm:$0xff]  ;;  %v1412_v8 = vmov 0   ;;  %s1861_s18 = smov (!%p238_p4, %s1402_s18), 1 }
   0xd   : > { %v375_v1 = vld [vmem:[%s1853_s3 + $0x1e0] sm:$0xff]  ;;  %v376_v4 = vld [vmem:[%s1853_s3 + $0x1e8] sm:$0xff]  ;;  %773 = vmatprep.mubr.bf16.mxu0 %v1412_v8  ;;  %846 = vmatprep.mubr.bf16.mxu1 %v1412_v8  ;;  %s1341_s25 = sshll.u32 %s1861_s18, 5  ;;  %s1272_s12 = sshll.u32 %s1861_s18, 3 }
   0xe   : > { %v1332_v3 = vcombine.high %v371_v0, %v375_v1  ;;  %v1331_v5 = vcombine.low %v371_v0, %v375_v1  ;;  %v363_v6 = vld [vmem:[%s1853_s3 + $0x180] sm:$0xff]  ;;  %v1334_v9 = vcombine.high %v372_v2, %v376_v4  ;;  %v1333_v10 = vcombine.low %v372_v2, %v376_v4  ;;  %v364_v12 = vld [vmem:[%s1853_s3 + $0x188] sm:$0xff]  ;;  %s1519_s11 = scalar_lea.vmem %s1850_s0, %s1341_s25  ;;  %s250_s15 = scalar_lea.vmem %s1855_s5, %s1272_s12 }
   0xf   : > { %v367_v7 = vld [vmem:[%s1853_s3 + $0x1a0] sm:$0xff]  ;;  %v368_v13 = vld [vmem:[%s1853_s3 + $0x1a8] sm:$0xff] }
  0x10   : > { %v1324_v11 = vcombine.high %v363_v6, %v367_v7  ;;  %v355_v14 = vld [vmem:[%s1853_s3 + $0x140] sm:$0xff]  ;;  %741 = vmatprep.subr.bf16.mxu0 %v1332_v3  ;;  %v1326_v15 = vcombine.high %v364_v12, %v368_v13  ;;  %v356_v17 = vld [vmem:[%s1853_s3 + $0x148] sm:$0xff]  ;;  %814 = vmatprep.subr.bf16.mxu1 %v1334_v9  ;;  %v1323_v19 = vcombine.low %v363_v6, %v367_v7 }
  0x11   : > { %v359_v16 = vld [vmem:[%s1853_s3 + $0x160] sm:$0xff]  ;;  %v360_v18 = vld [vmem:[%s1853_s3 + $0x168] sm:$0xff]  ;;  %742 = vmatpush1.bf16.msra.mxu0 %v1331_v5  ;;  %815 = vmatpush1.bf16.msra.mxu1 %v1333_v10  ;;  %v1325_v20 = vcombine.low %v364_v12, %v368_v13 }
  0x12   : > { %743 = vmatprep.subr.bf16.mxu0 %v1324_v11  ;;  %v1316_v21 = vcombine.high %v355_v14, %v359_v16  ;;  %816 = vmatprep.subr.bf16.mxu1 %v1326_v15  ;;  %v1318_v22 = vcombine.high %v356_v17, %v360_v18  ;;  %v347_v23 = vld [vmem:[%s1853_s3 + $0x100] sm:$0xff]  ;;  %v348_v25 = vld [vmem:[%s1853_s3 + $0x108] sm:$0xff]  ;;  %v1315_v27 = vcombine.low %v355_v14, %v359_v16  ;;  %v373_v14 = vld [vmem:[%s1853_s3 + $0x1d0] sm:$0xff] }
  0x13   : > { %v351_v24 = vld [vmem:[%s1853_s3 + $0x120] sm:$0xff]  ;;  %v352_v26 = vld [vmem:[%s1853_s3 + $0x128] sm:$0xff]  ;;  %v1317_v28 = vcombine.low %v356_v17, %v360_v18  ;;  %v377_v15 = vld [vmem:[%s1853_s3 + $0x1f0] sm:$0xff] }
  0x14   : > { %v1308_v29 = vcombine.high %v347_v23, %v351_v24  ;;  %v1310_v30 = vcombine.high %v348_v25, %v352_v26  ;;  %v339_v31 = vld [vmem:[%s1853_s3 + $0xc0] sm:$0xff]  ;;  %v340_v33 = vld [vmem:[%s1853_s3 + $0xc8] sm:$0xff]  ;;  %v1307_v36 = vcombine.low %v347_v23, %v351_v24  ;;  %v1309_v37 = vcombine.low %v348_v25, %v352_v26  ;;  %v374_v16 = vld [vmem:[%s1853_s3 + $0x1d8] sm:$0xff] }
  0x15   : > { %744 = vmatpush1.bf16.msra.mxu0 %v1323_v19  ;;  %817 = vmatpush1.bf16.msra.mxu1 %v1325_v20  ;;  %v343_v32 = vld [vmem:[%s1853_s3 + $0xe0] sm:$0xff]  ;;  %v344_v34 = vld [vmem:[%s1853_s3 + $0xe8] sm:$0xff]  ;;  %v378_v17 = vld [vmem:[%s1853_s3 + $0x1f8] sm:$0xff]  ;;  %v1336_v23 = vcombine.high %v373_v14, %v377_v15 }
  0x16   : > { %745 = vmatprep.subr.bf16.mxu0 %v1316_v21  ;;  %818 = vmatprep.subr.bf16.mxu1 %v1318_v22  ;;  %v1343_v35 = vld [vmem:[%s1519_s11] sm:$0xff]   ;;  %v1300_v38 = vcombine.high %v339_v31, %v343_v32  ;;  %v1302_v39 = vcombine.high %v340_v33, %v344_v34  ;;  %v332_v44 = vld [vmem:[%s1853_s3 + $0x88] sm:$0xff]  ;;  %v1299_v47 = vcombine.low %v339_v31, %v343_v32  ;;  %v1359_v21 = vld [vmem:[%s1519_s11 + $0x10] sm:$0xff]  }
  0x17   : > { %v331_v40 = vld [vmem:[%s1853_s3 + $0x80] sm:$0xff]  ;;  %v1344_v42 = vunpack.c.l.bf16 %v1343_v35  ;;  %v1345_v43 = vunpack.c.h.bf16 %v1343_v35  ;;  %v336_v45 = vld [vmem:[%s1853_s3 + $0xa8] sm:$0xff]  ;;  %v1301_v48 = vcombine.low %v340_v33, %v344_v34  ;;  %v1338_v25 = vcombine.high %v374_v16, %v378_v17  ;;  %v365_v26 = vld [vmem:[%s1853_s3 + $0x190] sm:$0xff] }
  0x18   : > { %v335_v41 = vld [vmem:[%s1853_s3 + $0xa0] sm:$0xff]  ;;  %v1294_v50 = vcombine.high %v332_v44, %v336_v45  ;;  %v324_v55 = vld [vmem:[%s1853_s3 + $0x48] sm:$0xff]  ;;  %v1293_v60 = vcombine.low %v332_v44, %v336_v45  ;;  %v1352_v32 = vunpack.c.l.bf16 %v1359_v21  ;;  %v1353_v33 = vunpack.c.h.bf16 %v1359_v21 }
  0x19   : > { %746 = vmatpush1.bf16.msra.mxu0 %v1315_v27  ;;  %819 = vmatpush1.bf16.msra.mxu1 %v1317_v28  ;;  %v1549_v46 = vld [vmem:[%s1851_s1] ss:$0 sm:$0xff]  ;;  %v1292_v49 = vcombine.high %v331_v40, %v335_v41  ;;  %v328_v56 = vld [vmem:[%s1853_s3 + $0x68] sm:$0xff]  ;;  %v1291_v58 = vcombine.low %v331_v40, %v335_v41  ;;  %v369_v27 = vld [vmem:[%s1853_s3 + $0x1b0] sm:$0xff]  ;;  %v1335_v34 = vcombine.low %v373_v14, %v377_v15 }
  0x1a   : > { %747 = vmatprep.subr.bf16.mxu0 %v1308_v29  ;;  %820 = vmatprep.subr.bf16.mxu1 %v1310_v30  ;;  %v323_v51 = vld [vmem:[%s1853_s3 + $0x40] sm:$0xff]  ;;  %v280_v53 = vmul.f32 %v1344_v42, %v1549_v46  ;;  %v281_v54 = vmul.f32 %v1345_v43, %v1549_v46  ;;  %v1358_v59 = vld [vmem:[%s1519_s11 + $0x8] sm:$0xff]   ;;  %v1286_v62 = vcombine.high %v324_v55, %v328_v56  ;;  %v366_v28 = vld [vmem:[%s1853_s3 + $0x198] sm:$0xff] }
  0x1b   : > { %v327_v52 = vld [vmem:[%s1853_s3 + $0x60] sm:$0xff]  ;;  %v316_v3 = vld [vmem:[%s1853_s3 + $0x8] sm:$0xff]  ;;  %v1348_v5 = vunpack.c.l.bf16 %v1358_v59  ;;  %v1349_v6 = vunpack.c.h.bf16 %v1358_v59  ;;  %v1285_v9 = vcombine.low %v324_v55, %v328_v56  ;;  %v370_v29 = vld [vmem:[%s1853_s3 + $0x1b8] sm:$0xff]  ;;  %v1337_v35 = vcombine.low %v374_v16, %v378_v17 }
  0x1c   : > { %v1568_v57 = vld [vmem:[%s1852_s2] ss:$0 sm:$0xff]  ;;  %v1284_v61 = vcombine.high %v323_v51, %v327_v52  ;;  %v320_v4 = vld [vmem:[%s1853_s3 + $0x28] sm:$0xff]  ;;  %v1283_v7 = vcombine.low %v323_v51, %v327_v52  ;;  %v358_v42 = vld [vmem:[%s1853_s3 + $0x158] sm:$0xff]  ;;  %v284_v44 = vmul.f32 %v1352_v32, %v1549_v46  ;;  %v285_v45 = vmul.f32 %v1353_v33, %v1549_v46 }
  0x1d   : > { %748 = vmatpush1.bf16.msra.mxu0 %v1307_v36  ;;  %821 = vmatpush1.bf16.msra.mxu1 %v1309_v37  ;;  %v315_v63 = vld [vmem:[%s1853_s3] sm:$0xff]  ;;  %v295_v1 = vadd.f32 %v1568_v57, %v280_v53  ;;  %v296_v2 = vadd.f32 %v1568_v57, %v281_v54  ;;  %v1278_v11 = vcombine.high %v316_v3, %v320_v4  ;;  %v362_v43 = vld [vmem:[%s1853_s3 + $0x178] sm:$0xff]  ;;  %v349_v52 = vld [vmem:[%s1853_s3 + $0x110] sm:$0xff] }
  0x1e   : > { %749 = vmatprep.subr.bf16.mxu0 %v1300_v38  ;;  %822 = vmatprep.subr.bf16.mxu1 %v1302_v39  ;;  %v319_v0 = vld [vmem:[%s1853_s3 + $0x20] sm:$0xff]  ;;  %v282_v18 = vmul.f32 %v1348_v5, %v1549_v46  ;;  %v283_v19 = vmul.f32 %v1349_v6, %v1549_v46  ;;  %v1277_v22 = vcombine.low %v316_v3, %v320_v4  ;;  %v357_v38 = vld [vmem:[%s1853_s3 + $0x150] sm:$0xff]  ;;  %v350_v56 = vld [vmem:[%s1853_s3 + $0x118] sm:$0xff] }
  0x1f   : > { %v1276_v10 = vcombine.high %v315_v63, %v319_v0  ;;  %v303_v12 = vmax.f32 %v295_v1, 0.0  ;;  %v304_v13 = vmax.f32 %v296_v2, 0.0  ;;  %v1275_v20 = vcombine.low %v315_v63, %v319_v0  ;;  %v361_v39 = vld [vmem:[%s1853_s3 + $0x170] sm:$0xff]  ;;  %v342_v6 = vld [vmem:[%s1853_s3 + $0xd8] sm:$0xff] }
  0x20   : > { %v297_v30 = vadd.f32 %v1568_v57, %v282_v18  ;;  %v298_v31 = vadd.f32 %v1568_v57, %v283_v19  ;;  %v1328_v36 = vcombine.high %v365_v26, %v369_v27  ;;  %v1330_v37 = vcombine.high %v366_v28, %v370_v29  ;;  %v353_v53 = vld [vmem:[%s1853_s3 + $0x130] sm:$0xff]  ;;  %v334_v17 = vld [vmem:[%s1853_s3 + $0x98] sm:$0xff] }
  0x21   : > { %750 = vmatpush1.bf16.msra.mxu0 %v1299_v47  ;;  %823 = vmatpush1.bf16.msra.mxu1 %v1301_v48  ;;  %v1600_v24 = vpack.c.bf16 %v304_v13, %v303_v12  ;;  %v1360_v47 = vld [vmem:[%s1519_s11 + $0x18] sm:$0xff]   ;;  %v1327_v48 = vcombine.low %v365_v26, %v369_v27  ;;  %v1322_v51 = vcombine.high %v358_v42, %v362_v43  ;;  %v341_v2 = vld [vmem:[%s1853_s3 + $0xd0] sm:$0xff] }
  0x22   : > { %751 = vmatprep.subr.bf16.mxu0 %v1292_v49  ;;  %824 = vmatprep.subr.bf16.mxu1 %v1294_v50  ;;  %v305_v40 = vmax.f32 %v297_v30, 0.0  ;;  %v306_v41 = vmax.f32 %v298_v31, 0.0  ;;  %v1329_v49 = vcombine.low %v366_v28, %v370_v29  ;;  %v1320_v50 = vcombine.high %v357_v38, %v361_v39  ;;  %v345_v3 = vld [vmem:[%s1853_s3 + $0xf0] sm:$0xff]  ;;  %v338_v18 = vld [vmem:[%s1853_s3 + $0xb8] sm:$0xff] }
  0x23   : > { %v1356_v54 = vunpack.c.l.bf16 %v1360_v47  ;;  %v299_v59 = vadd.f32 %v1568_v57, %v284_v44  ;;  %v1321_v63 = vcombine.low %v358_v42, %v362_v43  ;;  %v1312_v0 = vcombine.high %v349_v52, %v353_v53  ;;  %v333_v15 = vld [vmem:[%s1853_s3 + $0x90] sm:$0xff]  ;;  %v326_v29 = vld [vmem:[%s1853_s3 + $0x58] sm:$0xff] }
  0x24   : > { %v1641_v55 = vpack.c.bf16 %v306_v41, %v305_v40  ;;  %v1304_v13 = vcombine.high %v341_v2, %v345_v3  ;;  %v1303_v21 = vcombine.low %v341_v2, %v345_v3  ;;  %v325_v26 = vld [vmem:[%s1853_s3 + $0x50] sm:$0xff]  ;;  %v330_v30 = vld [vmem:[%s1853_s3 + $0x78] sm:$0xff]  ;;  %v1297_v32 = vcombine.low %v334_v17, %v338_v18 }
  0x25   : > { %752 = vmatpush1.bf16.msra.mxu0 %v1291_v58  ;;  %825 = vmatpush1.bf16.msra.mxu1 %v1293_v60  ;;  %v354_v58 = vld [vmem:[%s1853_s3 + $0x138] sm:$0xff]  ;;  %v300_v60 = vadd.f32 %v1568_v57, %v285_v45  ;;  %v307_v4 = vmax.f32 %v299_v59, 0.0  ;;  %v329_v27 = vld [vmem:[%s1853_s3 + $0x70] sm:$0xff]  ;;  %v1289_v41 = vcombine.low %v326_v29, %v330_v30 }
  0x26   : > { %753 = vmatprep.subr.bf16.mxu0 %v1284_v61  ;;  %826 = vmatprep.subr.bf16.mxu1 %v1286_v62  ;;  %v1357_v61 = vunpack.c.h.bf16 %v1360_v47  ;;  %v1319_v62 = vcombine.low %v357_v38, %v361_v39  ;;  %v1314_v1 = vcombine.high %v350_v56, %v354_v58  ;;  %v1313_v12 = vcombine.low %v350_v56, %v354_v58  ;;  %v318_v38 = vld [vmem:[%s1853_s3 + $0x18] sm:$0xff] }
  0x27   : > { %v308_v5 = vmax.f32 %v300_v60, 0.0  ;;  %v1288_v33 = vcombine.high %v325_v26, %v329_v27  ;;  %v322_v39 = vld [vmem:[%s1853_s3 + $0x38] sm:$0xff]  ;;  %v1287_v40 = vcombine.low %v325_v26, %v329_v27  ;;  %v381_v58 = vlaneseq }
  0x28   : > { %v1282_v43 = vcombine.high %v318_v38, %v322_v39  ;;  %v1281_v45 = vcombine.low %v318_v38, %v322_v39 }
  0x29   : > { %754 = vmatpush1.bf16.msra.mxu0 %v1283_v7  ;;  %827 = vmatpush1.bf16.msra.mxu1 %v1285_v9  ;;  %v346_v7 = vld [vmem:[%s1853_s3 + $0xf8] sm:$0xff]  ;;  %v286_v9 = vmul.f32 %v1356_v54, %v1549_v46  ;;  %v1675_v16 = vpack.c.bf16 %v308_v5, %v307_v4 }
  0x2a   : > { %755 = vmatprep.subr.bf16.mxu0 %v1276_v10  ;;  %828 = vmatprep.subr.bf16.mxu1 %v1278_v11  ;;  %v287_v10 = vmul.f32 %v1357_v61, %v1549_v46  ;;  %v1311_v11 = vcombine.low %v349_v52, %v353_v53  ;;  %v1306_v14 = vcombine.high %v342_v6, %v346_v7  ;;  %v337_v46 = vld [vmem:[%s1853_s3 + $0xb0] sm:$0xff] }
  0x2b   : > { %v301_v19 = vadd.f32 %v1568_v57, %v286_v9  ;;  %v1295_v31 = vcombine.low %v333_v15, %v337_v46 }
  0x2d   : > { %756 = vmatpush1.bf16.msra.mxu0 %v1275_v20  ;;  %829 = vmatpush1.bf16.msra.mxu1 %v1277_v22  ;;  %v302_v20 = vadd.f32 %v1568_v57, %v287_v10  ;;  %v1305_v22 = vcombine.low %v342_v6, %v346_v7  ;;  %v309_v28 = vmax.f32 %v301_v19, 0.0  ;;  %v1735_v7 = vld [vmem:[%s1854_s4] sm:$0xff] }
  0x2e   : > { %887 = vmatprep.subr.bf16.mxu0 %v1336_v23  ;;  %960 = vmatprep.subr.bf16.mxu1 %v1338_v25  ;;  %v1296_v23 = vcombine.high %v333_v15, %v337_v46  ;;  %v1298_v25 = vcombine.high %v334_v17, %v338_v18 }
  0x2f   : > { %v310_v57 = vmax.f32 %v302_v20, 0.0 }
  0x30   : > { %774 = vmatmul.mubr.bf16.vlgmr.msra.gmra.mxu0 %v1600_v24  ;;  %847 = vmatmul.mubr.bf16.vlgmr.msra.gmra.mxu1 %v1600_v24 }
  0x31   : > { %888 = vmatpush1.bf16.msra.mxu0 %v1335_v34  ;;  %961 = vmatpush1.bf16.msra.mxu1 %v1337_v35  ;;  %v1290_v34 = vcombine.high %v326_v29, %v330_v30  ;;  %v317_v35 = vld [vmem:[%s1853_s3 + $0x10] sm:$0xff] }
  0x32   : > { %889 = vmatprep.subr.bf16.mxu0 %v1328_v36  ;;  %962 = vmatprep.subr.bf16.mxu1 %v1330_v37  ;;  %v321_v36 = vld [vmem:[%s1853_s3 + $0x30] sm:$0xff]  ;;  %v314_v37 = vpack.c.bf16 %v310_v57, %v309_v28 }
  0x33   : > { %783 = vmatprep.mubr.bf16.mxu0 %v1412_v8  ;;  %856 = vmatprep.mubr.bf16.mxu1 %v1412_v8  ;;  %v1280_v42 = vcombine.high %v317_v35, %v321_v36  ;;  %v1279_v44 = vcombine.low %v317_v35, %v321_v36 }
  0x35   : > { %890 = vmatpush1.bf16.msra.mxu0 %v1327_v48  ;;  %963 = vmatpush1.bf16.msra.mxu1 %v1329_v49 }
  0x36   : > { %891 = vmatprep.subr.bf16.mxu0 %v1320_v50  ;;  %964 = vmatprep.subr.bf16.mxu1 %v1322_v51 }
  0x38   : > { %784 = vmatmul.mubr.bf16.gmra.mxu0 %v1641_v55  ;;  %857 = vmatmul.mubr.bf16.gmra.mxu1 %v1641_v55 }
  0x39   : > { %892 = vmatpush1.bf16.msra.mxu0 %v1319_v62  ;;  %965 = vmatpush1.bf16.msra.mxu1 %v1321_v63  ;;  %v1727_v63 = vshrl.u32 %v381_v58, 7 }
  0x3a   : > { %893 = vmatprep.subr.bf16.mxu0 %v1312_v0  ;;  %966 = vmatprep.subr.bf16.mxu1 %v1314_v1 }
  0x3b   : > { %793 = vmatprep.mubr.bf16.mxu0 %v1412_v8  ;;  %866 = vmatprep.mubr.bf16.mxu1 %v1412_v8  ;;  %v387_v1 = vsub.s32 1, %v1727_v63  ;;  %v395_v3 = vsub.s32 3, %v1727_v63  ;;  %v383_v5 = vsub.s32 0, %v1727_v63  ;;  %v391_v9 = vsub.s32 2, %v1727_v63 }
  0x3d   : > { %894 = vmatpush1.bf16.msra.mxu0 %v1311_v11  ;;  %967 = vmatpush1.bf16.msra.mxu1 %v1313_v12  ;;  %v388_v11 = vrot.slane %v1735_v7, %v387_v1  ;;  %v1743_v15 = vrot.slane %v1735_v7, %v383_v5  ;;  %v1746_v17 = vrot.slane %v1735_v7, %v391_v9 }
  0x3e   : > { %895 = vmatprep.subr.bf16.mxu0 %v1304_v13  ;;  %968 = vmatprep.subr.bf16.mxu1 %v1306_v14  ;;  %v1740_v13 = vrot.slane %v1735_v7, %v395_v3 }
  0x40   : > { %794 = vmatmul.mubr.bf16.gmra.mxu0 %v1675_v16  ;;  %867 = vmatmul.mubr.bf16.gmra.mxu1 %v1675_v16 }
  0x41   : > { %896 = vmatpush1.bf16.msra.mxu0 %v1303_v21  ;;  %969 = vmatpush1.bf16.msra.mxu1 %v1305_v22 }
  0x42   : > { %897 = vmatprep.subr.bf16.mxu0 %v1296_v23  ;;  %970 = vmatprep.subr.bf16.mxu1 %v1298_v25 }
  0x43   : > { %803 = vmatprep.mubr.bf16.mxu0 %v1412_v8  ;;  %876 = vmatprep.mubr.bf16.mxu1 %v1412_v8 }
  0x45   : > { %898 = vmatpush1.bf16.msra.mxu0 %v1295_v31  ;;  %971 = vmatpush1.bf16.msra.mxu1 %v1297_v32 }
  0x46   : > { %899 = vmatprep.subr.bf16.mxu0 %v1288_v33  ;;  %972 = vmatprep.subr.bf16.mxu1 %v1290_v34 }
  0x48   : > { %804 = vmatmul.mubr.bf16.gmra.mxu0 %v314_v37  ;;  %877 = vmatmul.mubr.bf16.gmra.mxu1 %v314_v37 }
  0x49   : > { %900 = vmatpush1.bf16.msra.mxu0 %v1287_v40  ;;  %973 = vmatpush1.bf16.msra.mxu1 %v1289_v41 }
  0x4a   : > { %901 = vmatprep.subr.bf16.mxu0 %v1280_v42  ;;  %974 = vmatprep.subr.bf16.mxu1 %v1282_v43 }
  0x4b   : > { %919 = vmatprep.mubr.bf16.mxu0 %v1412_v8  ;;  %992 = vmatprep.mubr.bf16.mxu1 %v1412_v8 }
  0x4d   : > { %902 = vmatpush1.bf16.msra.mxu0 %v1279_v44  ;;  %975 = vmatpush1.bf16.msra.mxu1 %v1281_v45 }
  0x50   : > { %920 = vmatmul.mubr.bf16.vlgmr.msra.gmra.mxu0 %v1600_v24  ;;  %993 = vmatmul.mubr.bf16.vlgmr.msra.gmra.mxu1 %v1600_v24 }
  0x51   : > { %929 = vmatprep.mubr.bf16.mxu0 %v1412_v8  ;;  %1002 = vmatprep.mubr.bf16.mxu1 %v1412_v8 }
  0x58   : > { %930 = vmatmul.mubr.bf16.gmra.mxu0 %v1641_v55  ;;  %1003 = vmatmul.mubr.bf16.gmra.mxu1 %v1641_v55 }
  0x59   : > { %939 = vmatprep.mubr.bf16.mxu0 %v1412_v8  ;;  %1012 = vmatprep.mubr.bf16.mxu1 %v1412_v8 }
  0x60   : > { %940 = vmatmul.mubr.bf16.gmra.mxu0 %v1675_v16  ;;  %1013 = vmatmul.mubr.bf16.gmra.mxu1 %v1675_v16 }
  0x61   : > { %949 = vmatprep.mubr.bf16.mxu0 %v1412_v8  ;;  %1022 = vmatprep.mubr.bf16.mxu1 %v1412_v8 }
  0x68   : > { %950 = vmatmul.mubr.bf16.gmra.mxu0 %v314_v37  ;;  %1023 = vmatmul.mubr.bf16.gmra.mxu1 %v314_v37 }
  0xf0   : > { %v775_v24 = vpop.f32.mrf.mxu0  ;;  %v848_v47 = vpop.f32.mrf.mxu1 }
  0xf1   : > { %v776_v57 = vadd.f32 %v775_v24, %v1743_v15  ;;  %v849_v33 = vadd.f32 %v848_v47, %v1746_v17 }
  0xf2   : > { %v777_v48 = vpop.f32.mrf.mxu0  ;;  %v850_v49 = vpop.f32.mrf.mxu1 }
  0xf3   : > { %v778_v20 = vadd.f32 %v777_v48, %v388_v11  ;;  %v851_v25 = vadd.f32 %v850_v49, %v1740_v13 }
  0xf4   : > { %v779_v50 = vpop.f32.mrf.mxu0  ;;  %v852_v51 = vpop.f32.mrf.mxu1 }
  0xf5   : > { %v780_v21 = vadd.f32 %v779_v50, %v1743_v15  ;;  %v853_v26 = vadd.f32 %v852_v51, %v1746_v17 }
  0xf6   : > { %v781_v52 = vpop.f32.mrf.mxu0  ;;  %v854_v53 = vpop.f32.mrf.mxu1 }
  0xf7   : > { %v782_v46 = vadd.f32 %v781_v52, %v388_v11  ;;  %v855_v18 = vadd.f32 %v854_v53, %v1740_v13  ;;  %v1034_v38 = vmax.f32 %v776_v57, %v780_v21  ;;  %v1060_v43 = vmax.f32 %v849_v33, %v853_v26 }
  0xf8   : > { %v785_v54 = vpop.f32.mrf.mxu0  ;;  %v858_v55 = vpop.f32.mrf.mxu1 }
  0xf9   : > { %v1047_v29 = vmax.f32 %v778_v20, %v782_v46  ;;  %v786_v30 = vadd.f32 %v785_v54, %v1743_v15  ;;  %v1073_v34 = vmax.f32 %v851_v25, %v855_v18  ;;  %v859_v35 = vadd.f32 %v858_v55, %v1746_v17 }
  0xfa   : > { %v787_v56 = vpop.f32.mrf.mxu0  ;;  %v860_v59 = vpop.f32.mrf.mxu1 }
  0xfb   : > { %v788_v22 = vadd.f32 %v787_v56, %v388_v11  ;;  %v861_v27 = vadd.f32 %v860_v59, %v1740_v13  ;;  %v1035_v47 = vmax.f32 %v1034_v38, %v786_v30  ;;  %v1061_v53 = vmax.f32 %v1060_v43, %v859_v35 }
  0xfc   : > { %v789_v60 = vpop.f32.mrf.mxu0  ;;  %v862_v61 = vpop.f32.mrf.mxu1  ;;  %v403_v35 = vsub.s32 5, %v1727_v63 }
  0xfd   : > { %v1048_v39 = vmax.f32 %v1047_v29, %v788_v22  ;;  %v790_v40 = vadd.f32 %v789_v60, %v1743_v15  ;;  %v1074_v44 = vmax.f32 %v1073_v34, %v861_v27  ;;  %v863_v45 = vadd.f32 %v862_v61, %v1746_v17 }
  0xfe   : > { %v791_v62 = vpop.f32.mrf.mxu0  ;;  %v864_v8 = vpop.f32.mrf.mxu1 }
  0xff   : > { %v792_v31 = vadd.f32 %v791_v62, %v388_v11  ;;  %v865_v36 = vadd.f32 %v864_v8, %v1740_v13  ;;  %v1036_v59 = vmax.f32 %v1035_v47, %v790_v40  ;;  %v1062_v1 = vmax.f32 %v1061_v53, %v863_v45 }
 0x100   : > { %v795_v0 = vpop.f32.mrf.mxu0  ;;  %v868_v2 = vpop.f32.mrf.mxu1  ;;  %v1783_v45 = vrot.slane %v1735_v7, %v403_v35 }
 0x101   : > { %v1049_v49 = vmax.f32 %v1048_v39, %v792_v31  ;;  %v796_v50 = vadd.f32 %v795_v0, %v1743_v15  ;;  %v1075_v54 = vmax.f32 %v1074_v44, %v865_v36  ;;  %v869_v55 = vadd.f32 %v868_v2, %v1746_v17 }
 0x102   : > { %v797_v4 = vpop.f32.mrf.mxu0  ;;  %v870_v6 = vpop.f32.mrf.mxu1 }
 0x103   : > { %v798_v41 = vadd.f32 %v797_v4, %v388_v11  ;;  %v871_v24 = vadd.f32 %v870_v6, %v1740_v13  ;;  %v1037_v6 = vmax.f32 %v1036_v59, %v796_v50 }
 0x104   : > { %v799_v10 = vpop.f32.mrf.mxu0  ;;  %v872_v12 = vpop.f32.mrf.mxu1 }
 0x105   : > { %v1050_v60 = vmax.f32 %v1049_v49, %v798_v41  ;;  %v800_v61 = vadd.f32 %v799_v10, %v1743_v15  ;;  %v1076_v3 = vmax.f32 %v1075_v54, %v871_v24  ;;  %v873_v4 = vadd.f32 %v872_v12, %v1746_v17 }
 0x106   : > { %v801_v14 = vpop.f32.mrf.mxu0  ;;  %v874_v16 = vpop.f32.mrf.mxu1 }
 0x107   : > { %v802_v51 = vadd.f32 %v801_v14, %v388_v11  ;;  %v875_v56 = vadd.f32 %v874_v16, %v1740_v13  ;;  %v1063_v16 = vmax.f32 %v1062_v1, %v869_v55  ;;  %v1038_v22 = vmax.f32 %v1037_v6, %v800_v61 }
 0x108   : > { %v805_v19 = vpop.f32.mrf.mxu0  ;;  %v878_v23 = vpop.f32.mrf.mxu1 }
 0x109   : > { %v1051_v9 = vmax.f32 %v1050_v60, %v802_v51  ;;  %v806_v2 = vadd.f32 %v805_v19, %v1743_v15  ;;  %v1077_v18 = vmax.f32 %v1076_v3, %v875_v56  ;;  %v879_v20 = vadd.f32 %v878_v23, %v1746_v17 }
 0x10a   : > { %v807_v28 = vpop.f32.mrf.mxu0  ;;  %v880_v32 = vpop.f32.mrf.mxu1  ;;  %v1064_v27 = vmax.f32 %v1063_v16, %v873_v4  ;;  %v399_v23 = vsub.s32 4, %v1727_v63 }
 0x10b   : > { %v808_v62 = vadd.f32 %v807_v28, %v388_v11  ;;  %v881_v0 = vadd.f32 %v880_v32, %v1740_v13  ;;  %v1039_v19 = vmax.f32 %v1038_v22, %v806_v2 }
 0x10c   : > { %v809_v37 = vpop.f32.mrf.mxu0  ;;  %v882_v42 = vpop.f32.mrf.mxu1  ;;  %v1065_v31 = vmax.f32 %v1064_v27, %v879_v20  ;;  %v1777_v41 = vrot.slane %v1735_v7, %v399_v23 }
 0x10d   : > { %v1052_v25 = vmax.f32 %v1051_v9, %v808_v62  ;;  %v810_v12 = vadd.f32 %v809_v37, %v1743_v15  ;;  %v1078_v28 = vmax.f32 %v1077_v18, %v881_v0  ;;  %v883_v57 = vadd.f32 %v882_v42, %v1746_v17 }
 0x10e   : > { %v811_v48 = vpop.f32.mrf.mxu0  ;;  %v884_v52 = vpop.f32.mrf.mxu1  ;;  %v411_v37 = vsub.s32 7, %v1727_v63 }
 0x10f   : > { %v812_v14 = vadd.f32 %v811_v48, %v388_v11  ;;  %v885_v10 = vadd.f32 %v884_v52, %v1740_v13  ;;  %v407_v13 = vsub.s32 6, %v1727_v63  ;;  %v1040_v34 = vmax.f32 %v1039_v19, %v810_v12 }
 0x110   : > { %v921_v58 = vpop.f32.mrf.mxu0  ;;  %v994_v8 = vpop.f32.mrf.mxu1  ;;  %v1066_v36 = vmax.f32 %v1065_v31, %v883_v57  ;;  %v1786_v47 = vrot.slane %v1735_v7, %v411_v37 }
 0x111   : > { %v1053_v11 = vmax.f32 %v1052_v25, %v812_v14  ;;  %v1079_v32 = vmax.f32 %v1078_v28, %v885_v10  ;;  %v1780_v42 = vrot.slane %v1735_v7, %v407_v13  ;;  %v1041_v44 = vrot.slane %v1040_v34, 4 }
 0x112   : > { %v923_v5 = vpop.f32.mrf.mxu0  ;;  %v996_v46 = vpop.f32.mrf.mxu1  ;;  %v1067_v48 = vrot.slane %v1066_v36, 4  ;;  %v922_v54 = vadd.f32 %v921_v58, %v1777_v41 }
 0x113   : > { %v1054_v17 = vrot.slane %v1053_v11, 4  ;;  %v1080_v40 = vrot.slane %v1079_v32, 4  ;;  %v995_v55 = vadd.f32 %v994_v8, %v1780_v42  ;;  %v1796_v60 = vmax.f32 %v1040_v34, %v1041_v44 }
 0x114   : > { %v925_v21 = vpop.f32.mrf.mxu0  ;;  %v998_v26 = vpop.f32.mrf.mxu1  ;;  %v924_v7 = vadd.f32 %v923_v5, %v1783_v45  ;;  %v1801_v3 = vmax.f32 %v1066_v36, %v1067_v48  ;;  %v997_v4 = vadd.f32 %v996_v46, %v1786_v47 }
 0x115   : > { %v1788_v50 = vmax.f32 %v1053_v11, %v1054_v17  ;;  %v926_v51 = vadd.f32 %v925_v21, %v1777_v41  ;;  %v1791_v53 = vmax.f32 %v1079_v32, %v1080_v40  ;;  %v999_v56 = vadd.f32 %v998_v26, %v1780_v42 }
 0x116   : > { %v927_v29 = vpop.f32.mrf.mxu0  ;;  %v1000_v30 = vpop.f32.mrf.mxu1 }
 0x117   : > { %v928_v61 = vadd.f32 %v927_v29, %v1783_v45  ;;  %v1001_v58 = vadd.f32 %v1000_v30, %v1786_v47  ;;  %v1056_v6 = vrot.slane %v1788_v50, 2  ;;  %v1086_v9 = vmax.f32 %v922_v54, %v926_v51 }
 0x118   : > { %v931_v33 = vpop.f32.mrf.mxu0  ;;  %v1004_v15 = vpop.f32.mrf.mxu1  ;;  %v1082_v16 = vrot.slane %v1791_v53, 2  ;;  %v1112_v18 = vmax.f32 %v995_v55, %v999_v56  ;;  %v1069_v56 = vrot.slane %v1801_v3, 2 }
 0x119   : > { %v932_v62 = vadd.f32 %v931_v33, %v1777_v41  ;;  %v1005_v8 = vadd.f32 %v1004_v15, %v1780_v42  ;;  %v1099_v21 = vmax.f32 %v924_v7, %v928_v61  ;;  %v1125_v27 = vmax.f32 %v997_v4, %v1001_v58 }
 0x11a   : > { %v933_v38 = vpop.f32.mrf.mxu0  ;;  %v1006_v39 = vpop.f32.mrf.mxu1 }
 0x11b   : > { %v934_v2 = vadd.f32 %v933_v38, %v1783_v45  ;;  %v1007_v20 = vadd.f32 %v1006_v39, %v1786_v47  ;;  %v1087_v22 = vmax.f32 %v1086_v9, %v932_v62  ;;  %v1113_v28 = vmax.f32 %v1112_v18, %v1005_v8 }
 0x11c   : > { %v935_v43 = vpop.f32.mrf.mxu0  ;;  %v1008_v24 = vpop.f32.mrf.mxu1  ;;  %v1083_v9 = vmax.f32 %v1791_v53, %v1082_v16 }
 0x11d   : > { %v936_v5 = vadd.f32 %v935_v43, %v1777_v41  ;;  %v1009_v46 = vadd.f32 %v1008_v24, %v1780_v42  ;;  %v1100_v11 = vmax.f32 %v1099_v21, %v934_v2  ;;  %v1126_v13 = vmax.f32 %v1125_v27, %v1007_v20 }
 0x11e   : > { %v937_v49 = vpop.f32.mrf.mxu0  ;;  %v1010_v52 = vpop.f32.mrf.mxu1 }
 0x11f   : > { %v938_v25 = vadd.f32 %v937_v49, %v1783_v45  ;;  %v1011_v57 = vadd.f32 %v1010_v52, %v1786_v47  ;;  %v1088_v30 = vmax.f32 %v1087_v22, %v936_v5  ;;  %v1114_v33 = vmax.f32 %v1113_v28, %v1009_v46 }
 0x120   : > { %v941_v59 = vpop.f32.mrf.mxu0  ;;  %v1014_v1 = vpop.f32.mrf.mxu1  ;;  %v1043_v49 = vrot.slane %v1796_v60, 2 }
 0x121   : > { %v942_v12 = vadd.f32 %v941_v59, %v1777_v41  ;;  %v1015_v29 = vadd.f32 %v1014_v1, %v1780_v42  ;;  %v1101_v36 = vmax.f32 %v1100_v11, %v938_v25  ;;  %v1127_v40 = vmax.f32 %v1126_v13, %v1011_v57 }
 0x122   : > { %v943_v0 = vpop.f32.mrf.mxu0  ;;  %v1016_v14 = vpop.f32.mrf.mxu1  ;;  %v1057_v1 = vmax.f32 %v1788_v50, %v1056_v6  ;;  %v1044_v20 = vmax.f32 %v1796_v60, %v1043_v49  ;;  %v1070_v50 = vmax.f32 %v1801_v3, %v1069_v56 }
 0x123   : > { %v944_v31 = vadd.f32 %v943_v0, %v1783_v45  ;;  %v1017_v34 = vadd.f32 %v1016_v14, %v1786_v47  ;;  %v1089_v37 = vmax.f32 %v1088_v30, %v942_v12  ;;  %v1115_v43 = vmax.f32 %v1114_v33, %v1015_v29 }
 0x124   : > { %v945_v10 = vpop.f32.mrf.mxu0  ;;  %v1018_v26 = vpop.f32.mrf.mxu1  ;;  %v1413_v12 = vmov 1966171168   ;;  %v1058_v27 = vrot.slane %v1057_v1, 1  ;;  %v1071_v11 = vrot.slane %v1070_v50, 1 }
 0x125   : > { %v946_v32 = vadd.f32 %v945_v10, %v1777_v41  ;;  %v1019_v35 = vadd.f32 %v1018_v26, %v1780_v42  ;;  %v1102_v51 = vmax.f32 %v1101_v36, %v944_v31  ;;  %v1128_v59 = vmax.f32 %v1127_v40, %v1017_v34 }
 0x126   : > { %v947_v19 = vpop.f32.mrf.mxu0  ;;  %v1020_v23 = vpop.f32.mrf.mxu1  ;;  %v1151_v53 = vunpack.c.l.s4 %v1413_v12  ;;  %v1072_v36 = vmax.f32 %v1070_v50, %v1071_v11 }
 0x127   : > { %v948_v38 = vadd.f32 %v947_v19, %v1783_v45  ;;  %v1021_v44 = vadd.f32 %v1020_v23, %v1786_v47  ;;  %v1090_v52 = vmax.f32 %v1089_v37, %v946_v32  ;;  %v1116_v7 = vmax.f32 %v1115_v43, %v1019_v35 }
 0x128   : > { %v951_v15 = vpop.f32.mrf.mxu0  ;;  %v1024_v39 = vpop.f32.mrf.mxu1  ;;  %v1045_v19 = vrot.slane %v1044_v20, 1  ;;  %v1152_v31 = vunpack.c.0.s8 %v1151_v53  ;;  %v1059_v23 = vmax.f32 %v1057_v1, %v1058_v27 }
 0x129   : > { %v952_v17 = vadd.f32 %v951_v15, %v1777_v41  ;;  %v1025_v24 = vadd.f32 %v1024_v39, %v1780_v42  ;;  %v1103_v4 = vmax.f32 %v1102_v51, %v948_v38  ;;  %v1129_v2 = vmax.f32 %v1128_v59, %v1021_v44 }
 0x12a   : > { %v953_v48 = vpop.f32.mrf.mxu0  ;;  %v1026_v55 = vpop.f32.mrf.mxu1  ;;  %v1046_v15 = vmax.f32 %v1044_v20, %v1045_v19 }
 0x12b   : > { %v954_v54 = vadd.f32 %v953_v48, %v1783_v45  ;;  %v1027_v61 = vadd.f32 %v1026_v55, %v1786_v47  ;;  %v1091_v58 = vmax.f32 %v1090_v52, %v952_v17  ;;  %v1117_v5 = vmax.f32 %v1116_v7, %v1025_v24 }
 0x12c   : > { %v955_v62 = vpop.f32.mrf.mxu0  ;;  %v1028_v0 = vpop.f32.mrf.mxu1  ;;  %v1155_v17 = vsub.s32 %v1152_v31, %v1727_v63  ;;  %v1146_v43 = vcombine.low %v1046_v15, %v1059_v23 }
 0x12d   : > { %v956_v8 = vadd.f32 %v955_v62, %v1777_v41  ;;  %v1029_v14 = vadd.f32 %v1028_v0, %v1780_v42  ;;  %v1104_v46 = vmax.f32 %v1103_v4, %v954_v54  ;;  %v1130_v6 = vmax.f32 %v1129_v2, %v1027_v61 }
 0x12e   : > { %v957_v18 = vpop.f32.mrf.mxu0  ;;  %v1030_v22 = vpop.f32.mrf.mxu1  ;;  %v1084_v42 = vrot.slane %v1083_v9, 1  ;;  %v1156_v55 = vrot.slane %v1146_v43, %v1155_v17 }
 0x12f   : > { %v1092_v10 = vmax.f32 %v1091_v58, %v956_v8  ;;  %v958_v21 = vadd.f32 %v957_v18, %v1783_v45  ;;  %v1118_v25 = vmax.f32 %v1117_v5, %v1029_v14  ;;  %v1031_v41 = vadd.f32 %v1030_v22, %v1786_v47 }
 0x130   : > { %v1085_v13 = vmax.f32 %v1083_v9, %v1084_v42 }
 0x131   : > { %v1093_v16 = vrot.slane %v1092_v10, 4  ;;  %v1105_v26 = vmax.f32 %v1104_v46, %v958_v21  ;;  %v1119_v28 = vrot.slane %v1118_v25, 4  ;;  %v1131_v57 = vmax.f32 %v1130_v6, %v1031_v41 }
 0x132   : > { %v1147_v44 = vcombine.low %v1072_v36, %v1085_v13 }
 0x133   : > { %v1094_v60 = vmax.f32 %v1092_v10, %v1093_v16  ;;  %v1106_v29 = vrot.slane %v1105_v26, 4  ;;  %v1120_v45 = vmax.f32 %v1118_v25, %v1119_v28  ;;  %v1132_v30 = vrot.slane %v1131_v57, 4 }
 0x134   : > { %v1163_v56 = vrot.slane %v1147_v44, %v1155_v17 }
 0x135   : > { %v1095_v3 = vrot.slane %v1094_v60, 2  ;;  %v1107_v32 = vmax.f32 %v1105_v26, %v1106_v29  ;;  %v1121_v47 = vrot.slane %v1120_v45, 2  ;;  %v1133_v33 = vmax.f32 %v1131_v57, %v1132_v30 }
 0x136   : > { %v1178_v4 = vcombine.low %v1156_v55, %v1163_v56 }
 0x137   : > { %v1096_v34 = vmax.f32 %v1094_v60, %v1095_v3  ;;  %v1108_v35 = vrot.slane %v1107_v32, 2  ;;  %v1122_v37 = vmax.f32 %v1120_v45, %v1121_v47  ;;  %v1134_v38 = vrot.slane %v1133_v33, 2 }
 0x138   : > { %v1186_v8 = vrot.slane %v1178_v4, %v1155_v17 }
 0x139   : > { %v1097_v39 = vrot.slane %v1096_v34, 1  ;;  %v1109_v40 = vmax.f32 %v1107_v32, %v1108_v35  ;;  %v1123_v24 = vrot.slane %v1122_v37, 1  ;;  %v1135_v48 = vmax.f32 %v1133_v33, %v1134_v38 }
 0x13b   : > { %v1110_v49 = vrot.slane %v1109_v40, 1  ;;  %v1136_v51 = vrot.slane %v1135_v48, 1  ;;  %v1098_v52 = vmax.f32 %v1096_v34, %v1097_v39  ;;  %v1124_v59 = vmax.f32 %v1122_v37, %v1123_v24 }
 0x13d   : > { %v1111_v54 = vmax.f32 %v1109_v40, %v1110_v49  ;;  %v1137_v7 = vmax.f32 %v1135_v48, %v1136_v51 }
 0x13f   : > { %v1148_v61 = vcombine.low %v1098_v52, %v1111_v54  ;;  %v1149_v62 = vcombine.low %v1124_v59, %v1137_v7 }
 0x141   : > { %v1170_v1 = vrot.slane %v1148_v61, %v1155_v17  ;;  %v1177_v63 = vrot.slane %v1149_v62, %v1155_v17 }
 0x143   : > { %v1179_v58 = vcombine.low %v1170_v1, %v1177_v63 }
 0x145   : > { %v1193_v0 = vrot.slane %v1179_v58, %v1155_v17 }
 0x147   : > { %v1194_v9 = vcombine.low %v1186_v8, %v1193_v0 }
 0x149   : > { %1197 = vst [vmem:[%s250_s15] sm:$0xff] %v1194_v9 }
 0x14a PF: > { %s15_s20 = sadd.s32 1, %s1410_s20   ;;  %s1856_s18 = smov %s1406_s19 }
 0x14b   : > { %p12_p5 = scmp.ge.s32.totalorder %s15_s20, 4   ;;  %s1857_s19 = smov %s1859_s21 }
 0x14d   :  { %14 = sbr.rel (!%p12_p5) target bundleno = 2 (0x2), region = 74 }

</bundles_post_ra>
